<compile_context>
chip_gen: v5e
topology: v5e:2x2
jax: 0.10.0
libtpu: 0.0.40
codegen_flags: <defaults>
</compile_context>

<pallas_src>
import functools

import jax
import jax.numpy as jnp
from jax.experimental import pallas as pl
from jax.experimental.pallas import tpu as pltpu

# LeNet geometry (fixed by the PyTorch module for 32x32 inputs).
_K = 5        # conv kernel size (both convs)
_H1 = 14      # pooled conv1 spatial size (28 / 2)
_S1PAD = 256  # per-pool-group padded spatial block (196 -> 256, 128-aligned)
_L2 = 140     # conv2 output lanes per image: 10 rows * 14 (valid ow2 < 10)
_LP2 = 121    # pooled-conv2 lanes kept per image (max offset 120, +1)
_OC1 = 8      # conv1 out-channels padded 6 -> 8 (sublane-aligned contraction)


# ------------------------------------------------------------------
# The single fused kernel
# ------------------------------------------------------------------
def _lenet2_kernel(cols_ref, w1_ref, b1_ref, w2_ref, b2_ref,
                   wf1_ref, bf1_ref, wf2_ref, bf2_ref, wf3_ref, bf3_ref,
                   o_ref, *, tb):
    """Whole LeNet2 forward for one batch tile of `tb` images.

    Activation layout: features on sublanes, (spatial * batch) on lanes; the
    lane index of pooled-conv1 spatial position s for image i is s*tb + i.
    """
    s1 = _S1PAD * tb

    # ---- conv1 + bias + ReLU with the 2x2 maxpool folded in ----------------
    # cols lanes: g*(256*tb) + s*tb + i, g = position inside the pool window,
    # s = ph*14 + pw on the pooled 14x14 grid (s < 196 valid, rest zero pad).
    z1 = jnp.dot(w1_ref[...], cols_ref[0],
                 preferred_element_type=jnp.float32)              # (8, 4*s1)
    zp = jnp.maximum(jnp.maximum(z1[:, 0:s1], z1[:, s1:2 * s1]),
                     jnp.maximum(z1[:, 2 * s1:3 * s1], z1[:, 3 * s1:4 * s1]))
    # relu(max_g z_g + b) == maxpool(relu(conv + b)): per-channel bias,
    # monotone ReLU.
    h1 = jnp.maximum(zp + b1_ref[...], 0.0).astype(jnp.bfloat16)  # (8, s1)

    # ---- conv2 as 25 shifted dots (implicit im2col, stays in VMEM) ---------
    l2 = _L2 * tb
    z2 = jnp.zeros((16, l2), jnp.float32)
    for kh in range(_K):
        for kw in range(_K):
            off = (kh * _H1 + kw) * tb
            z2 += jnp.dot(w2_ref[kh * _K + kw], h1[:, off:off + l2],
                          preferred_element_type=jnp.float32)
    # z2 lane u*tb + i holds conv2(oh2=u//14, ow2=u%14); ow2 >= 10 is garbage.

    # ---- 2x2 maxpool of conv2 via 4 shifted slices, then bias + ReLU -------
    lp = _LP2 * tb
    m = jnp.maximum(
        jnp.maximum(z2[:, 0:lp], z2[:, tb:lp + tb]),
        jnp.maximum(z2[:, _H1 * tb:_H1 * tb + lp],
                    z2[:, (_H1 + 1) * tb:(_H1 + 1) * tb + lp]))
    p2 = jnp.maximum(m + b2_ref[...], 0.0).astype(jnp.bfloat16)   # (16, lp)
    # pooled value for position (i, j) sits at lane (28*i + 2*j)*tb + image.

    # ---- fc1: flatten folded into the weight layout, 25 chunked dots -------
    acc = jnp.zeros((120, tb), jnp.float32)
    for i in range(5):
        for j in range(5):
            d = (2 * i * _H1 + 2 * j) * tb
            acc += jnp.dot(wf1_ref[i * 5 + j], p2[:, d:d + tb],
                           preferred_element_type=jnp.float32)
    h = jnp.maximum(acc + bf1_ref[...], 0.0).astype(jnp.bfloat16)  # (120, tb)

    # ---- fc2 + ReLU, fc3 ----------------------------------------------------
    h = jnp.dot(wf2_ref[...], h, preferred_element_type=jnp.float32)
    h = jnp.maximum(h + bf2_ref[...], 0.0).astype(jnp.bfloat16)    # (84, tb)
    out = jnp.dot(wf3_ref[...], h, preferred_element_type=jnp.float32)
    o_ref[0] = (out + bf3_ref[...]).astype(o_ref.dtype)            # (C, tb)


# ------------------------------------------------------------------
# Wrapper glue: conv1 im2col grouped by 2x2 pool position, batch-tiled
# ------------------------------------------------------------------
def _conv1_pool_grouped_cols(x_nchw, tb):
    """Returns (nb, 75, 4*256*tb) patches for conv1.

    Lane = g*(256*tb) + s*tb + i: g = a*2+b is the position inside the 2x2
    pool window, s = ph*14 + pw the pooled spatial position (zero padded
    196 -> 256), i the image inside the batch tile.  Feature axis (dim 1) is
    ordered (c, kh, kw) by construction, matching conv_w.reshape(oc, -1).
    """
    n, c, h, _ = x_nchw.shape
    oh = h - _K + 1                      # 28
    ph = oh // 2                         # 14
    nb = n // tb
    p = jnp.stack([x_nchw[:, :, kh:kh + oh, kw:kw + oh]
                   for kh in range(_K) for kw in range(_K)], axis=2)
    # (n, c, 25, 28, 28)
    p = p.reshape(nb, tb, c * _K * _K, ph, 2, ph, 2)
    p = p.transpose(0, 2, 4, 6, 3, 5, 1)          # (nb, 75, a, b, ph, pw, tb)
    p = p.reshape(nb, c * _K * _K, 4, ph * ph, tb)
    p = jnp.pad(p, ((0, 0), (0, 0), (0, 0), (0, _S1PAD - ph * ph), (0, 0)))
    return p.reshape(nb, c * _K * _K, 4 * _S1PAD * tb)


def _prep_params(params, cdt=jnp.bfloat16):
    """Tiny layout-only weight prep (runs fused inside the jit)."""
    c1w, c1b = params["conv1_w"], params["conv1_b"]
    w1 = jnp.zeros((_OC1, c1w.shape[1] * _K * _K), jnp.float32)
    w1 = w1.at[:6].set(c1w.reshape(6, -1)).astype(cdt)             # (8, 75)
    b1 = jnp.zeros((_OC1, 1), jnp.float32).at[:6, 0].set(c1b)      # (8, 1)

    c2w = params["conv2_w"]                                        # (16,6,5,5)
    w2 = jnp.zeros((_K * _K, 16, _OC1), jnp.float32)
    w2 = w2.at[:, :, :6].set(
        c2w.transpose(2, 3, 0, 1).reshape(_K * _K, 16, 6)).astype(cdt)
    b2 = params["conv2_b"].reshape(16, 1).astype(jnp.float32)

    f1w = params["fc1_w"].reshape(120, 16, _K, _K)
    wf1 = f1w.transpose(2, 3, 0, 1).reshape(_K * _K, 120, 16).astype(cdt)
    bf1 = params["fc1_b"].reshape(120, 1).astype(jnp.float32)
    wf2 = params["fc2_w"].astype(cdt)                              # (84, 120)
    bf2 = params["fc2_b"].reshape(84, 1).astype(jnp.float32)
    wf3 = params["fc3_w"].astype(cdt)                              # (C, 84)
    bf3 = params["fc3_b"].reshape(-1, 1).astype(jnp.float32)
    return w1, b1, w2, b2, wf1, bf1, wf2, bf2, wf3, bf3


# ------------------------------------------------------------------
# LeNet2 forward: ONE pallas_call, grid over batch tiles
# ------------------------------------------------------------------
def lenet2_forward(x, params, *, batch_tile=None):
    n = x.shape[0]
    classes = params["fc3_b"].shape[0]
    tb = batch_tile if batch_tile is not None else min(n, 4)
    nb = -(-n // tb)
    n_pad = nb * tb

    xb = x.astype(jnp.bfloat16)
    if n_pad != n:
        xb = jnp.pad(xb, ((0, n_pad - n), (0, 0), (0, 0), (0, 0)))

    cols = _conv1_pool_grouped_cols(xb, tb)          # (nb, 75, 1024*tb)
    w1, b1, w2, b2, wf1, bf1, wf2, bf2, wf3, bf3 = _prep_params(params)

    def const_spec(a):
        return pl.BlockSpec(a.shape, lambda *_, nd=a.ndim: (0,) * nd)

    out = pl.pallas_call(
        functools.partial(_lenet2_kernel, tb=tb),
        grid=(nb,),
        out_shape=jax.ShapeDtypeStruct((nb, classes, tb), jnp.float32),
        in_specs=[pl.BlockSpec((1,) + cols.shape[1:], lambda b: (b, 0, 0))]
                 + [const_spec(a) for a in
                    (w1, b1, w2, b2, wf1, bf1, wf2, bf2, wf3, bf3)],
        out_specs=pl.BlockSpec((1, classes, tb), lambda b: (b, 0, 0)),
        compiler_params=pltpu.CompilerParams(
            dimension_semantics=("parallel",)),
    )(cols, w1, b1, w2, b2, wf1, bf1, wf2, bf2, wf3, bf3)

    out = out.transpose(0, 2, 1).reshape(n_pad, classes)
    return out[:n]


# ------------------------------------------------------------------
# Pure-JAX f32 reference (mirrors the PyTorch module exactly)
# ------------------------------------------------------------------
def lenet2_reference(x, params):
    dn = ("NCHW", "OIHW", "NCHW")
    y = jax.lax.conv_general_dilated(x, params["conv1_w"], (1, 1), "VALID",
                                     dimension_numbers=dn)
    y = jax.nn.relu(y + params["conv1_b"].reshape(1, -1, 1, 1))
    y = jax.lax.reduce_window(y, -jnp.inf, jax.lax.max,
                              (1, 1, 2, 2), (1, 1, 2, 2), "VALID")
    y = jax.lax.conv_general_dilated(y, params["conv2_w"], (1, 1), "VALID",
                                     dimension_numbers=dn)
    y = jax.nn.relu(y + params["conv2_b"].reshape(1, -1, 1, 1))
    y = jax.lax.reduce_window(y, -jnp.inf, jax.lax.max,
                              (1, 1, 2, 2), (1, 1, 2, 2), "VALID")
    y = y.reshape(y.shape[0], -1)                  # (N, 400), order (c, ph, pw)
    y = jax.nn.relu(y @ params["fc1_w"].T + params["fc1_b"])
    y = jax.nn.relu(y @ params["fc2_w"].T + params["fc2_b"])
    return y @ params["fc3_w"].T + params["fc3_b"]


# ------------------------------------------------------------------
# Synthetic parameters (PyTorch-style shapes)
# ------------------------------------------------------------------
def init_params(key, classes):
    ks = jax.random.split(key, 10)

    def w(k, shape, fan_in):
        return jax.random.normal(k, shape, jnp.float32) / jnp.sqrt(fan_in)

    return {
        "conv1_w": w(ks[0], (6, 3, 5, 5), 3 * 5 * 5),
        "conv1_b": w(ks[1], (6,), 3 * 5 * 5),
        "conv2_w": w(ks[2], (16, 6, 5, 5), 6 * 5 * 5),
        "conv2_b": w(ks[3], (16,), 6 * 5 * 5),
        "fc1_w": w(ks[4], (120, 400), 400),
        "fc1_b": w(ks[5], (120,), 400),
        "fc2_w": w(ks[6], (84, 120), 120),
        "fc2_b": w(ks[7], (84,), 120),
        "fc3_w": w(ks[8], (classes, 84), 84),
        "fc3_b": w(ks[9], (classes,), 84),
    }


if __name__ == "__main__":
    classes = 10
    key = jax.random.PRNGKey(0)
    k_x, k_p = jax.random.split(key)
    # LeNet requires 32x32 spatial input so features flatten to 16*5*5 = 400.
    x = jax.random.normal(k_x, (2, 3, 32, 32), jnp.float32)
    params = init_params(k_p, classes)

    out = jax.block_until_ready(jax.jit(lenet2_forward)(x, params))
    ref = jax.block_until_ready(lenet2_reference(x, params))

    assert out.shape == (2, classes), out.shape
    assert out.dtype == jnp.float32
    assert bool(jnp.all(jnp.isfinite(out)))
    # bf16 matmul operands with f32 accumulation -> ~1e-2 level deviation.
    assert bool(jnp.allclose(out, ref, rtol=5e-2, atol=1e-1)), (
        float(jnp.max(jnp.abs(out - ref))))
    print("KERNEL_OK")
</pallas_src>

<mosaic_0001>
module attributes {stable_mosaic.version = 11 : i64} {
  func.func @_lenet2_kernel(%arg0: i32, %arg1: memref<1x75x2048xbf16, #tpu.memory_space<vmem>>, %arg2: memref<8x75xbf16, #tpu.memory_space<vmem>>, %arg3: memref<8x1xf32, #tpu.memory_space<vmem>>, %arg4: memref<25x16x8xbf16, #tpu.memory_space<vmem>>, %arg5: memref<16x1xf32, #tpu.memory_space<vmem>>, %arg6: memref<25x120x16xbf16, #tpu.memory_space<vmem>>, %arg7: memref<120x1xf32, #tpu.memory_space<vmem>>, %arg8: memref<84x120xbf16, #tpu.memory_space<vmem>>, %arg9: memref<84x1xf32, #tpu.memory_space<vmem>>, %arg10: memref<10x84xbf16, #tpu.memory_space<vmem>>, %arg11: memref<10x1xf32, #tpu.memory_space<vmem>>, %arg12: memref<1x10x2xf32, #tpu.memory_space<vmem>>) attributes {dimension_semantics = [#tpu.dimension_semantics<parallel>], iteration_bounds = array<i64: 1>, scalar_prefetch = 0 : i64, scratch_operands = 0 : i64, tpu.core_type = #tpu.core_type<tc>, window_params = [{transform_indices = @transform_0, window_bounds = array<i64: 1, 75, 2048>}, {pipeline_mode = #tpu.pipeline_mode<synchronous>, transform_indices = @transform_1, window_bounds = array<i64: 8, 75>}, {pipeline_mode = #tpu.pipeline_mode<synchronous>, transform_indices = @transform_2, window_bounds = array<i64: 8, 1>}, {pipeline_mode = #tpu.pipeline_mode<synchronous>, transform_indices = @transform_3, window_bounds = array<i64: 25, 16, 8>}, {pipeline_mode = #tpu.pipeline_mode<synchronous>, transform_indices = @transform_4, window_bounds = array<i64: 16, 1>}, {pipeline_mode = #tpu.pipeline_mode<synchronous>, transform_indices = @transform_5, window_bounds = array<i64: 25, 120, 16>}, {pipeline_mode = #tpu.pipeline_mode<synchronous>, transform_indices = @transform_6, window_bounds = array<i64: 120, 1>}, {pipeline_mode = #tpu.pipeline_mode<synchronous>, transform_indices = @transform_7, window_bounds = array<i64: 84, 120>}, {pipeline_mode = #tpu.pipeline_mode<synchronous>, transform_indices = @transform_8, window_bounds = array<i64: 84, 1>}, {pipeline_mode = #tpu.pipeline_mode<synchronous>, transform_indices = @transform_9, window_bounds = array<i64: 10, 84>}, {pipeline_mode = #tpu.pipeline_mode<synchronous>, transform_indices = @transform_10, window_bounds = array<i64: 10, 1>}, {transform_indices = @transform_11, window_bounds = array<i64: 1, 10, 2>}]} {
    %c0 = arith.constant 0 : index
    %c0_0 = arith.constant 0 : index
    %0 = vector.load %arg2[%c0, %c0_0] : memref<8x75xbf16, #tpu.memory_space<vmem>>, vector<8x75xbf16>
    %c0_1 = arith.constant 0 : index
    %c0_2 = arith.constant 0 : index
    %c0_3 = arith.constant 0 : index
    %1 = vector.load %arg1[%c0_1, %c0_2, %c0_3] : memref<1x75x2048xbf16, #tpu.memory_space<vmem>>, vector<1x75x2048xbf16>
    %2 = vector.shape_cast %1 : vector<1x75x2048xbf16> to vector<75x2048xbf16>
    %cst = arith.constant dense<0.000000e+00> : vector<8x2048xf32>
    %3 = tpu.matmul %0, %2, %cst {dimension_numbers = #tpu.dot_dimension_numbers<[1], [0], [0], [1], [0, 0, 1, 1], [], []>} : vector<8x75xbf16>, vector<75x2048xbf16>, vector<8x2048xf32> -> vector<8x2048xf32>
    %4 = vector.extract_strided_slice %3 {offsets = [0, 0], sizes = [8, 512], strides = [1, 1]} : vector<8x2048xf32> to vector<8x512xf32>
    %5 = vector.extract_strided_slice %3 {offsets = [0, 512], sizes = [8, 512], strides = [1, 1]} : vector<8x2048xf32> to vector<8x512xf32>
    %6 = arith.maximumf %4, %5 : vector<8x512xf32>
    %7 = vector.extract_strided_slice %3 {offsets = [0, 1024], sizes = [8, 512], strides = [1, 1]} : vector<8x2048xf32> to vector<8x512xf32>
    %8 = vector.extract_strided_slice %3 {offsets = [0, 1536], sizes = [8, 512], strides = [1, 1]} : vector<8x2048xf32> to vector<8x512xf32>
    %9 = arith.maximumf %7, %8 : vector<8x512xf32>
    %10 = arith.maximumf %6, %9 : vector<8x512xf32>
    %c0_4 = arith.constant 0 : index
    %c0_5 = arith.constant 0 : index
    %11 = vector.load %arg3[%c0_4, %c0_5] : memref<8x1xf32, #tpu.memory_space<vmem>>, vector<8x1xf32>
    %12 = vector.broadcast %11 : vector<8x1xf32> to vector<8x512xf32>
    %13 = arith.addf %10, %12 : vector<8x512xf32>
    %cst_6 = arith.constant 0.000000e+00 : f32
    %14 = vector.broadcast %cst_6 : f32 to vector<8x512xf32>
    %15 = arith.maximumf %13, %14 : vector<8x512xf32>
    %16 = arith.truncf %15 : vector<8x512xf32> to vector<8x512xbf16>
    %cst_7 = arith.constant 0.000000e+00 : f32
    %17 = vector.broadcast %cst_7 : f32 to vector<16x280xf32>
    %c0_8 = arith.constant 0 : index
    %c0_9 = arith.constant 0 : index
    %c0_10 = arith.constant 0 : index
    %18 = vector.load %arg4[%c0_8, %c0_9, %c0_10] : memref<25x16x8xbf16, #tpu.memory_space<vmem>>, vector<1x16x8xbf16>
    %19 = vector.shape_cast %18 : vector<1x16x8xbf16> to vector<16x8xbf16>
    %20 = vector.extract_strided_slice %16 {offsets = [0, 0], sizes = [8, 280], strides = [1, 1]} : vector<8x512xbf16> to vector<8x280xbf16>
    %cst_11 = arith.constant dense<0.000000e+00> : vector<16x280xf32>
    %21 = tpu.matmul %19, %20, %cst_11 {dimension_numbers = #tpu.dot_dimension_numbers<[1], [0], [0], [1], [0, 0, 1, 1], [], []>} : vector<16x8xbf16>, vector<8x280xbf16>, vector<16x280xf32> -> vector<16x280xf32>
    %22 = arith.addf %17, %21 : vector<16x280xf32>
    %c1 = arith.constant 1 : index
    %c0_12 = arith.constant 0 : index
    %c0_13 = arith.constant 0 : index
    %23 = vector.load %arg4[%c1, %c0_12, %c0_13] : memref<25x16x8xbf16, #tpu.memory_space<vmem>>, vector<1x16x8xbf16>
    %24 = vector.shape_cast %23 : vector<1x16x8xbf16> to vector<16x8xbf16>
    %25 = vector.extract_strided_slice %16 {offsets = [0, 2], sizes = [8, 280], strides = [1, 1]} : vector<8x512xbf16> to vector<8x280xbf16>
    %cst_14 = arith.constant dense<0.000000e+00> : vector<16x280xf32>
    %26 = tpu.matmul %24, %25, %cst_14 {dimension_numbers = #tpu.dot_dimension_numbers<[1], [0], [0], [1], [0, 0, 1, 1], [], []>} : vector<16x8xbf16>, vector<8x280xbf16>, vector<16x280xf32> -> vector<16x280xf32>
    %27 = arith.addf %22, %26 : vector<16x280xf32>
    %c2 = arith.constant 2 : index
    %c0_15 = arith.constant 0 : index
    %c0_16 = arith.constant 0 : index
    %28 = vector.load %arg4[%c2, %c0_15, %c0_16] : memref<25x16x8xbf16, #tpu.memory_space<vmem>>, vector<1x16x8xbf16>
    %29 = vector.shape_cast %28 : vector<1x16x8xbf16> to vector<16x8xbf16>
    %30 = vector.extract_strided_slice %16 {offsets = [0, 4], sizes = [8, 280], strides = [1, 1]} : vector<8x512xbf16> to vector<8x280xbf16>
    %cst_17 = arith.constant dense<0.000000e+00> : vector<16x280xf32>
    %31 = tpu.matmul %29, %30, %cst_17 {dimension_numbers = #tpu.dot_dimension_numbers<[1], [0], [0], [1], [0, 0, 1, 1], [], []>} : vector<16x8xbf16>, vector<8x280xbf16>, vector<16x280xf32> -> vector<16x280xf32>
    %32 = arith.addf %27, %31 : vector<16x280xf32>
    %c3 = arith.constant 3 : index
    %c0_18 = arith.constant 0 : index
    %c0_19 = arith.constant 0 : index
    %33 = vector.load %arg4[%c3, %c0_18, %c0_19] : memref<25x16x8xbf16, #tpu.memory_space<vmem>>, vector<1x16x8xbf16>
    %34 = vector.shape_cast %33 : vector<1x16x8xbf16> to vector<16x8xbf16>
    %35 = vector.extract_strided_slice %16 {offsets = [0, 6], sizes = [8, 280], strides = [1, 1]} : vector<8x512xbf16> to vector<8x280xbf16>
    %cst_20 = arith.constant dense<0.000000e+00> : vector<16x280xf32>
    %36 = tpu.matmul %34, %35, %cst_20 {dimension_numbers = #tpu.dot_dimension_numbers<[1], [0], [0], [1], [0, 0, 1, 1], [], []>} : vector<16x8xbf16>, vector<8x280xbf16>, vector<16x280xf32> -> vector<16x280xf32>
    %37 = arith.addf %32, %36 : vector<16x280xf32>
    %c4 = arith.constant 4 : index
    %c0_21 = arith.constant 0 : index
    %c0_22 = arith.constant 0 : index
    %38 = vector.load %arg4[%c4, %c0_21, %c0_22] : memref<25x16x8xbf16, #tpu.memory_space<vmem>>, vector<1x16x8xbf16>
    %39 = vector.shape_cast %38 : vector<1x16x8xbf16> to vector<16x8xbf16>
    %40 = vector.extract_strided_slice %16 {offsets = [0, 8], sizes = [8, 280], strides = [1, 1]} : vector<8x512xbf16> to vector<8x280xbf16>
    %cst_23 = arith.constant dense<0.000000e+00> : vector<16x280xf32>
    %41 = tpu.matmul %39, %40, %cst_23 {dimension_numbers = #tpu.dot_dimension_numbers<[1], [0], [0], [1], [0, 0, 1, 1], [], []>} : vector<16x8xbf16>, vector<8x280xbf16>, vector<16x280xf32> -> vector<16x280xf32>
    %42 = arith.addf %37, %41 : vector<16x280xf32>
    %c5 = arith.constant 5 : index
    %c0_24 = arith.constant 0 : index
    %c0_25 = arith.constant 0 : index
    %43 = vector.load %arg4[%c5, %c0_24, %c0_25] : memref<25x16x8xbf16, #tpu.memory_space<vmem>>, vector<1x16x8xbf16>
    %44 = vector.shape_cast %43 : vector<1x16x8xbf16> to vector<16x8xbf16>
    %45 = vector.extract_strided_slice %16 {offsets = [0, 28], sizes = [8, 280], strides = [1, 1]} : vector<8x512xbf16> to vector<8x280xbf16>
    %cst_26 = arith.constant dense<0.000000e+00> : vector<16x280xf32>
    %46 = tpu.matmul %44, %45, %cst_26 {dimension_numbers = #tpu.dot_dimension_numbers<[1], [0], [0], [1], [0, 0, 1, 1], [], []>} : vector<16x8xbf16>, vector<8x280xbf16>, vector<16x280xf32> -> vector<16x280xf32>
    %47 = arith.addf %42, %46 : vector<16x280xf32>
    %c6 = arith.constant 6 : index
    %c0_27 = arith.constant 0 : index
    %c0_28 = arith.constant 0 : index
    %48 = vector.load %arg4[%c6, %c0_27, %c0_28] : memref<25x16x8xbf16, #tpu.memory_space<vmem>>, vector<1x16x8xbf16>
    %49 = vector.shape_cast %48 : vector<1x16x8xbf16> to vector<16x8xbf16>
    %50 = vector.extract_strided_slice %16 {offsets = [0, 30], sizes = [8, 280], strides = [1, 1]} : vector<8x512xbf16> to vector<8x280xbf16>
    %cst_29 = arith.constant dense<0.000000e+00> : vector<16x280xf32>
    %51 = tpu.matmul %49, %50, %cst_29 {dimension_numbers = #tpu.dot_dimension_numbers<[1], [0], [0], [1], [0, 0, 1, 1], [], []>} : vector<16x8xbf16>, vector<8x280xbf16>, vector<16x280xf32> -> vector<16x280xf32>
    %52 = arith.addf %47, %51 : vector<16x280xf32>
    %c7 = arith.constant 7 : index
    %c0_30 = arith.constant 0 : index
    %c0_31 = arith.constant 0 : index
    %53 = vector.load %arg4[%c7, %c0_30, %c0_31] : memref<25x16x8xbf16, #tpu.memory_space<vmem>>, vector<1x16x8xbf16>
    %54 = vector.shape_cast %53 : vector<1x16x8xbf16> to vector<16x8xbf16>
    %55 = vector.extract_strided_slice %16 {offsets = [0, 32], sizes = [8, 280], strides = [1, 1]} : vector<8x512xbf16> to vector<8x280xbf16>
    %cst_32 = arith.constant dense<0.000000e+00> : vector<16x280xf32>
    %56 = tpu.matmul %54, %55, %cst_32 {dimension_numbers = #tpu.dot_dimension_numbers<[1], [0], [0], [1], [0, 0, 1, 1], [], []>} : vector<16x8xbf16>, vector<8x280xbf16>, vector<16x280xf32> -> vector<16x280xf32>
    %57 = arith.addf %52, %56 : vector<16x280xf32>
    %c8 = arith.constant 8 : index
    %c0_33 = arith.constant 0 : index
    %c0_34 = arith.constant 0 : index
    %58 = vector.load %arg4[%c8, %c0_33, %c0_34] : memref<25x16x8xbf16, #tpu.memory_space<vmem>>, vector<1x16x8xbf16>
    %59 = vector.shape_cast %58 : vector<1x16x8xbf16> to vector<16x8xbf16>
    %60 = vector.extract_strided_slice %16 {offsets = [0, 34], sizes = [8, 280], strides = [1, 1]} : vector<8x512xbf16> to vector<8x280xbf16>
    %cst_35 = arith.constant dense<0.000000e+00> : vector<16x280xf32>
    %61 = tpu.matmul %59, %60, %cst_35 {dimension_numbers = #tpu.dot_dimension_numbers<[1], [0], [0], [1], [0, 0, 1, 1], [], []>} : vector<16x8xbf16>, vector<8x280xbf16>, vector<16x280xf32> -> vector<16x280xf32>
    %62 = arith.addf %57, %61 : vector<16x280xf32>
    %c9 = arith.constant 9 : index
    %c0_36 = arith.constant 0 : index
    %c0_37 = arith.constant 0 : index
    %63 = vector.load %arg4[%c9, %c0_36, %c0_37] : memref<25x16x8xbf16, #tpu.memory_space<vmem>>, vector<1x16x8xbf16>
    %64 = vector.shape_cast %63 : vector<1x16x8xbf16> to vector<16x8xbf16>
    %65 = vector.extract_strided_slice %16 {offsets = [0, 36], sizes = [8, 280], strides = [1, 1]} : vector<8x512xbf16> to vector<8x280xbf16>
    %cst_38 = arith.constant dense<0.000000e+00> : vector<16x280xf32>
    %66 = tpu.matmul %64, %65, %cst_38 {dimension_numbers = #tpu.dot_dimension_numbers<[1], [0], [0], [1], [0, 0, 1, 1], [], []>} : vector<16x8xbf16>, vector<8x280xbf16>, vector<16x280xf32> -> vector<16x280xf32>
    %67 = arith.addf %62, %66 : vector<16x280xf32>
    %c10 = arith.constant 10 : index
    %c0_39 = arith.constant 0 : index
    %c0_40 = arith.constant 0 : index
    %68 = vector.load %arg4[%c10, %c0_39, %c0_40] : memref<25x16x8xbf16, #tpu.memory_space<vmem>>, vector<1x16x8xbf16>
    %69 = vector.shape_cast %68 : vector<1x16x8xbf16> to vector<16x8xbf16>
    %70 = vector.extract_strided_slice %16 {offsets = [0, 56], sizes = [8, 280], strides = [1, 1]} : vector<8x512xbf16> to vector<8x280xbf16>
    %cst_41 = arith.constant dense<0.000000e+00> : vector<16x280xf32>
    %71 = tpu.matmul %69, %70, %cst_41 {dimension_numbers = #tpu.dot_dimension_numbers<[1], [0], [0], [1], [0, 0, 1, 1], [], []>} : vector<16x8xbf16>, vector<8x280xbf16>, vector<16x280xf32> -> vector<16x280xf32>
    %72 = arith.addf %67, %71 : vector<16x280xf32>
    %c11 = arith.constant 11 : index
    %c0_42 = arith.constant 0 : index
    %c0_43 = arith.constant 0 : index
    %73 = vector.load %arg4[%c11, %c0_42, %c0_43] : memref<25x16x8xbf16, #tpu.memory_space<vmem>>, vector<1x16x8xbf16>
    %74 = vector.shape_cast %73 : vector<1x16x8xbf16> to vector<16x8xbf16>
    %75 = vector.extract_strided_slice %16 {offsets = [0, 58], sizes = [8, 280], strides = [1, 1]} : vector<8x512xbf16> to vector<8x280xbf16>
    %cst_44 = arith.constant dense<0.000000e+00> : vector<16x280xf32>
    %76 = tpu.matmul %74, %75, %cst_44 {dimension_numbers = #tpu.dot_dimension_numbers<[1], [0], [0], [1], [0, 0, 1, 1], [], []>} : vector<16x8xbf16>, vector<8x280xbf16>, vector<16x280xf32> -> vector<16x280xf32>
    %77 = arith.addf %72, %76 : vector<16x280xf32>
    %c12 = arith.constant 12 : index
    %c0_45 = arith.constant 0 : index
    %c0_46 = arith.constant 0 : index
    %78 = vector.load %arg4[%c12, %c0_45, %c0_46] : memref<25x16x8xbf16, #tpu.memory_space<vmem>>, vector<1x16x8xbf16>
    %79 = vector.shape_cast %78 : vector<1x16x8xbf16> to vector<16x8xbf16>
    %80 = vector.extract_strided_slice %16 {offsets = [0, 60], sizes = [8, 280], strides = [1, 1]} : vector<8x512xbf16> to vector<8x280xbf16>
    %cst_47 = arith.constant dense<0.000000e+00> : vector<16x280xf32>
    %81 = tpu.matmul %79, %80, %cst_47 {dimension_numbers = #tpu.dot_dimension_numbers<[1], [0], [0], [1], [0, 0, 1, 1], [], []>} : vector<16x8xbf16>, vector<8x280xbf16>, vector<16x280xf32> -> vector<16x280xf32>
    %82 = arith.addf %77, %81 : vector<16x280xf32>
    %c13 = arith.constant 13 : index
    %c0_48 = arith.constant 0 : index
    %c0_49 = arith.constant 0 : index
    %83 = vector.load %arg4[%c13, %c0_48, %c0_49] : memref<25x16x8xbf16, #tpu.memory_space<vmem>>, vector<1x16x8xbf16>
    %84 = vector.shape_cast %83 : vector<1x16x8xbf16> to vector<16x8xbf16>
    %85 = vector.extract_strided_slice %16 {offsets = [0, 62], sizes = [8, 280], strides = [1, 1]} : vector<8x512xbf16> to vector<8x280xbf16>
    %cst_50 = arith.constant dense<0.000000e+00> : vector<16x280xf32>
    %86 = tpu.matmul %84, %85, %cst_50 {dimension_numbers = #tpu.dot_dimension_numbers<[1], [0], [0], [1], [0, 0, 1, 1], [], []>} : vector<16x8xbf16>, vector<8x280xbf16>, vector<16x280xf32> -> vector<16x280xf32>
    %87 = arith.addf %82, %86 : vector<16x280xf32>
    %c14 = arith.constant 14 : index
    %c0_51 = arith.constant 0 : index
    %c0_52 = arith.constant 0 : index
    %88 = vector.load %arg4[%c14, %c0_51, %c0_52] : memref<25x16x8xbf16, #tpu.memory_space<vmem>>, vector<1x16x8xbf16>
    %89 = vector.shape_cast %88 : vector<1x16x8xbf16> to vector<16x8xbf16>
    %90 = vector.extract_strided_slice %16 {offsets = [0, 64], sizes = [8, 280], strides = [1, 1]} : vector<8x512xbf16> to vector<8x280xbf16>
    %cst_53 = arith.constant dense<0.000000e+00> : vector<16x280xf32>
    %91 = tpu.matmul %89, %90, %cst_53 {dimension_numbers = #tpu.dot_dimension_numbers<[1], [0], [0], [1], [0, 0, 1, 1], [], []>} : vector<16x8xbf16>, vector<8x280xbf16>, vector<16x280xf32> -> vector<16x280xf32>
    %92 = arith.addf %87, %91 : vector<16x280xf32>
    %c15 = arith.constant 15 : index
    %c0_54 = arith.constant 0 : index
    %c0_55 = arith.constant 0 : index
    %93 = vector.load %arg4[%c15, %c0_54, %c0_55] : memref<25x16x8xbf16, #tpu.memory_space<vmem>>, vector<1x16x8xbf16>
    %94 = vector.shape_cast %93 : vector<1x16x8xbf16> to vector<16x8xbf16>
    %95 = vector.extract_strided_slice %16 {offsets = [0, 84], sizes = [8, 280], strides = [1, 1]} : vector<8x512xbf16> to vector<8x280xbf16>
    %cst_56 = arith.constant dense<0.000000e+00> : vector<16x280xf32>
    %96 = tpu.matmul %94, %95, %cst_56 {dimension_numbers = #tpu.dot_dimension_numbers<[1], [0], [0], [1], [0, 0, 1, 1], [], []>} : vector<16x8xbf16>, vector<8x280xbf16>, vector<16x280xf32> -> vector<16x280xf32>
    %97 = arith.addf %92, %96 : vector<16x280xf32>
    %c16 = arith.constant 16 : index
    %c0_57 = arith.constant 0 : index
    %c0_58 = arith.constant 0 : index
    %98 = vector.load %arg4[%c16, %c0_57, %c0_58] : memref<25x16x8xbf16, #tpu.memory_space<vmem>>, vector<1x16x8xbf16>
    %99 = vector.shape_cast %98 : vector<1x16x8xbf16> to vector<16x8xbf16>
    %100 = vector.extract_strided_slice %16 {offsets = [0, 86], sizes = [8, 280], strides = [1, 1]} : vector<8x512xbf16> to vector<8x280xbf16>
    %cst_59 = arith.constant dense<0.000000e+00> : vector<16x280xf32>
    %101 = tpu.matmul %99, %100, %cst_59 {dimension_numbers = #tpu.dot_dimension_numbers<[1], [0], [0], [1], [0, 0, 1, 1], [], []>} : vector<16x8xbf16>, vector<8x280xbf16>, vector<16x280xf32> -> vector<16x280xf32>
    %102 = arith.addf %97, %101 : vector<16x280xf32>
    %c17 = arith.constant 17 : index
    %c0_60 = arith.constant 0 : index
    %c0_61 = arith.constant 0 : index
    %103 = vector.load %arg4[%c17, %c0_60, %c0_61] : memref<25x16x8xbf16, #tpu.memory_space<vmem>>, vector<1x16x8xbf16>
    %104 = vector.shape_cast %103 : vector<1x16x8xbf16> to vector<16x8xbf16>
    %105 = vector.extract_strided_slice %16 {offsets = [0, 88], sizes = [8, 280], strides = [1, 1]} : vector<8x512xbf16> to vector<8x280xbf16>
    %cst_62 = arith.constant dense<0.000000e+00> : vector<16x280xf32>
    %106 = tpu.matmul %104, %105, %cst_62 {dimension_numbers = #tpu.dot_dimension_numbers<[1], [0], [0], [1], [0, 0, 1, 1], [], []>} : vector<16x8xbf16>, vector<8x280xbf16>, vector<16x280xf32> -> vector<16x280xf32>
    %107 = arith.addf %102, %106 : vector<16x280xf32>
    %c18 = arith.constant 18 : index
    %c0_63 = arith.constant 0 : index
    %c0_64 = arith.constant 0 : index
    %108 = vector.load %arg4[%c18, %c0_63, %c0_64] : memref<25x16x8xbf16, #tpu.memory_space<vmem>>, vector<1x16x8xbf16>
    %109 = vector.shape_cast %108 : vector<1x16x8xbf16> to vector<16x8xbf16>
    %110 = vector.extract_strided_slice %16 {offsets = [0, 90], sizes = [8, 280], strides = [1, 1]} : vector<8x512xbf16> to vector<8x280xbf16>
    %cst_65 = arith.constant dense<0.000000e+00> : vector<16x280xf32>
    %111 = tpu.matmul %109, %110, %cst_65 {dimension_numbers = #tpu.dot_dimension_numbers<[1], [0], [0], [1], [0, 0, 1, 1], [], []>} : vector<16x8xbf16>, vector<8x280xbf16>, vector<16x280xf32> -> vector<16x280xf32>
    %112 = arith.addf %107, %111 : vector<16x280xf32>
    %c19 = arith.constant 19 : index
    %c0_66 = arith.constant 0 : index
    %c0_67 = arith.constant 0 : index
    %113 = vector.load %arg4[%c19, %c0_66, %c0_67] : memref<25x16x8xbf16, #tpu.memory_space<vmem>>, vector<1x16x8xbf16>
    %114 = vector.shape_cast %113 : vector<1x16x8xbf16> to vector<16x8xbf16>
    %115 = vector.extract_strided_slice %16 {offsets = [0, 92], sizes = [8, 280], strides = [1, 1]} : vector<8x512xbf16> to vector<8x280xbf16>
    %cst_68 = arith.constant dense<0.000000e+00> : vector<16x280xf32>
    %116 = tpu.matmul %114, %115, %cst_68 {dimension_numbers = #tpu.dot_dimension_numbers<[1], [0], [0], [1], [0, 0, 1, 1], [], []>} : vector<16x8xbf16>, vector<8x280xbf16>, vector<16x280xf32> -> vector<16x280xf32>
    %117 = arith.addf %112, %116 : vector<16x280xf32>
    %c20 = arith.constant 20 : index
    %c0_69 = arith.constant 0 : index
    %c0_70 = arith.constant 0 : index
    %118 = vector.load %arg4[%c20, %c0_69, %c0_70] : memref<25x16x8xbf16, #tpu.memory_space<vmem>>, vector<1x16x8xbf16>
    %119 = vector.shape_cast %118 : vector<1x16x8xbf16> to vector<16x8xbf16>
    %120 = vector.extract_strided_slice %16 {offsets = [0, 112], sizes = [8, 280], strides = [1, 1]} : vector<8x512xbf16> to vector<8x280xbf16>
    %cst_71 = arith.constant dense<0.000000e+00> : vector<16x280xf32>
    %121 = tpu.matmul %119, %120, %cst_71 {dimension_numbers = #tpu.dot_dimension_numbers<[1], [0], [0], [1], [0, 0, 1, 1], [], []>} : vector<16x8xbf16>, vector<8x280xbf16>, vector<16x280xf32> -> vector<16x280xf32>
    %122 = arith.addf %117, %121 : vector<16x280xf32>
    %c21 = arith.constant 21 : index
    %c0_72 = arith.constant 0 : index
    %c0_73 = arith.constant 0 : index
    %123 = vector.load %arg4[%c21, %c0_72, %c0_73] : memref<25x16x8xbf16, #tpu.memory_space<vmem>>, vector<1x16x8xbf16>
    %124 = vector.shape_cast %123 : vector<1x16x8xbf16> to vector<16x8xbf16>
    %125 = vector.extract_strided_slice %16 {offsets = [0, 114], sizes = [8, 280], strides = [1, 1]} : vector<8x512xbf16> to vector<8x280xbf16>
    %cst_74 = arith.constant dense<0.000000e+00> : vector<16x280xf32>
    %126 = tpu.matmul %124, %125, %cst_74 {dimension_numbers = #tpu.dot_dimension_numbers<[1], [0], [0], [1], [0, 0, 1, 1], [], []>} : vector<16x8xbf16>, vector<8x280xbf16>, vector<16x280xf32> -> vector<16x280xf32>
    %127 = arith.addf %122, %126 : vector<16x280xf32>
    %c22 = arith.constant 22 : index
    %c0_75 = arith.constant 0 : index
    %c0_76 = arith.constant 0 : index
    %128 = vector.load %arg4[%c22, %c0_75, %c0_76] : memref<25x16x8xbf16, #tpu.memory_space<vmem>>, vector<1x16x8xbf16>
    %129 = vector.shape_cast %128 : vector<1x16x8xbf16> to vector<16x8xbf16>
    %130 = vector.extract_strided_slice %16 {offsets = [0, 116], sizes = [8, 280], strides = [1, 1]} : vector<8x512xbf16> to vector<8x280xbf16>
    %cst_77 = arith.constant dense<0.000000e+00> : vector<16x280xf32>
    %131 = tpu.matmul %129, %130, %cst_77 {dimension_numbers = #tpu.dot_dimension_numbers<[1], [0], [0], [1], [0, 0, 1, 1], [], []>} : vector<16x8xbf16>, vector<8x280xbf16>, vector<16x280xf32> -> vector<16x280xf32>
    %132 = arith.addf %127, %131 : vector<16x280xf32>
    %c23 = arith.constant 23 : index
    %c0_78 = arith.constant 0 : index
    %c0_79 = arith.constant 0 : index
    %133 = vector.load %arg4[%c23, %c0_78, %c0_79] : memref<25x16x8xbf16, #tpu.memory_space<vmem>>, vector<1x16x8xbf16>
    %134 = vector.shape_cast %133 : vector<1x16x8xbf16> to vector<16x8xbf16>
    %135 = vector.extract_strided_slice %16 {offsets = [0, 118], sizes = [8, 280], strides = [1, 1]} : vector<8x512xbf16> to vector<8x280xbf16>
    %cst_80 = arith.constant dense<0.000000e+00> : vector<16x280xf32>
    %136 = tpu.matmul %134, %135, %cst_80 {dimension_numbers = #tpu.dot_dimension_numbers<[1], [0], [0], [1], [0, 0, 1, 1], [], []>} : vector<16x8xbf16>, vector<8x280xbf16>, vector<16x280xf32> -> vector<16x280xf32>
    %137 = arith.addf %132, %136 : vector<16x280xf32>
    %c24 = arith.constant 24 : index
    %c0_81 = arith.constant 0 : index
    %c0_82 = arith.constant 0 : index
    %138 = vector.load %arg4[%c24, %c0_81, %c0_82] : memref<25x16x8xbf16, #tpu.memory_space<vmem>>, vector<1x16x8xbf16>
    %139 = vector.shape_cast %138 : vector<1x16x8xbf16> to vector<16x8xbf16>
    %140 = vector.extract_strided_slice %16 {offsets = [0, 120], sizes = [8, 280], strides = [1, 1]} : vector<8x512xbf16> to vector<8x280xbf16>
    %cst_83 = arith.constant dense<0.000000e+00> : vector<16x280xf32>
    %141 = tpu.matmul %139, %140, %cst_83 {dimension_numbers = #tpu.dot_dimension_numbers<[1], [0], [0], [1], [0, 0, 1, 1], [], []>} : vector<16x8xbf16>, vector<8x280xbf16>, vector<16x280xf32> -> vector<16x280xf32>
    %142 = arith.addf %137, %141 : vector<16x280xf32>
    %143 = vector.extract_strided_slice %142 {offsets = [0, 0], sizes = [16, 242], strides = [1, 1]} : vector<16x280xf32> to vector<16x242xf32>
    %144 = vector.extract_strided_slice %142 {offsets = [0, 2], sizes = [16, 242], strides = [1, 1]} : vector<16x280xf32> to vector<16x242xf32>
    %145 = arith.maximumf %143, %144 : vector<16x242xf32>
    %146 = vector.extract_strided_slice %142 {offsets = [0, 28], sizes = [16, 242], strides = [1, 1]} : vector<16x280xf32> to vector<16x242xf32>
    %147 = vector.extract_strided_slice %142 {offsets = [0, 30], sizes = [16, 242], strides = [1, 1]} : vector<16x280xf32> to vector<16x242xf32>
    %148 = arith.maximumf %146, %147 : vector<16x242xf32>
    %149 = arith.maximumf %145, %148 : vector<16x242xf32>
    %c0_84 = arith.constant 0 : index
    %c0_85 = arith.constant 0 : index
    %150 = vector.load %arg5[%c0_84, %c0_85] : memref<16x1xf32, #tpu.memory_space<vmem>>, vector<16x1xf32>
    %151 = vector.broadcast %150 : vector<16x1xf32> to vector<16x242xf32>
    %152 = arith.addf %149, %151 : vector<16x242xf32>
    %cst_86 = arith.constant 0.000000e+00 : f32
    %153 = vector.broadcast %cst_86 : f32 to vector<16x242xf32>
    %154 = arith.maximumf %152, %153 : vector<16x242xf32>
    %155 = arith.truncf %154 : vector<16x242xf32> to vector<16x242xbf16>
    %cst_87 = arith.constant 0.000000e+00 : f32
    %156 = vector.broadcast %cst_87 : f32 to vector<120x2xf32>
    %c0_88 = arith.constant 0 : index
    %c0_89 = arith.constant 0 : index
    %c0_90 = arith.constant 0 : index
    %157 = vector.load %arg6[%c0_88, %c0_89, %c0_90] : memref<25x120x16xbf16, #tpu.memory_space<vmem>>, vector<1x120x16xbf16>
    %158 = vector.shape_cast %157 : vector<1x120x16xbf16> to vector<120x16xbf16>
    %159 = vector.extract_strided_slice %155 {offsets = [0, 0], sizes = [16, 2], strides = [1, 1]} : vector<16x242xbf16> to vector<16x2xbf16>
    %cst_91 = arith.constant dense<0.000000e+00> : vector<120x2xf32>
    %160 = tpu.matmul %158, %159, %cst_91 {dimension_numbers = #tpu.dot_dimension_numbers<[1], [0], [0], [1], [0, 0, 1, 1], [], []>} : vector<120x16xbf16>, vector<16x2xbf16>, vector<120x2xf32> -> vector<120x2xf32>
    %161 = arith.addf %156, %160 : vector<120x2xf32>
    %c1_92 = arith.constant 1 : index
    %c0_93 = arith.constant 0 : index
    %c0_94 = arith.constant 0 : index
    %162 = vector.load %arg6[%c1_92, %c0_93, %c0_94] : memref<25x120x16xbf16, #tpu.memory_space<vmem>>, vector<1x120x16xbf16>
    %163 = vector.shape_cast %162 : vector<1x120x16xbf16> to vector<120x16xbf16>
    %164 = vector.extract_strided_slice %155 {offsets = [0, 4], sizes = [16, 2], strides = [1, 1]} : vector<16x242xbf16> to vector<16x2xbf16>
    %cst_95 = arith.constant dense<0.000000e+00> : vector<120x2xf32>
    %165 = tpu.matmul %163, %164, %cst_95 {dimension_numbers = #tpu.dot_dimension_numbers<[1], [0], [0], [1], [0, 0, 1, 1], [], []>} : vector<120x16xbf16>, vector<16x2xbf16>, vector<120x2xf32> -> vector<120x2xf32>
    %166 = arith.addf %161, %165 : vector<120x2xf32>
    %c2_96 = arith.constant 2 : index
    %c0_97 = arith.constant 0 : index
    %c0_98 = arith.constant 0 : index
    %167 = vector.load %arg6[%c2_96, %c0_97, %c0_98] : memref<25x120x16xbf16, #tpu.memory_space<vmem>>, vector<1x120x16xbf16>
    %168 = vector.shape_cast %167 : vector<1x120x16xbf16> to vector<120x16xbf16>
    %169 = vector.extract_strided_slice %155 {offsets = [0, 8], sizes = [16, 2], strides = [1, 1]} : vector<16x242xbf16> to vector<16x2xbf16>
    %cst_99 = arith.constant dense<0.000000e+00> : vector<120x2xf32>
    %170 = tpu.matmul %168, %169, %cst_99 {dimension_numbers = #tpu.dot_dimension_numbers<[1], [0], [0], [1], [0, 0, 1, 1], [], []>} : vector<120x16xbf16>, vector<16x2xbf16>, vector<120x2xf32> -> vector<120x2xf32>
    %171 = arith.addf %166, %170 : vector<120x2xf32>
    %c3_100 = arith.constant 3 : index
    %c0_101 = arith.constant 0 : index
    %c0_102 = arith.constant 0 : index
    %172 = vector.load %arg6[%c3_100, %c0_101, %c0_102] : memref<25x120x16xbf16, #tpu.memory_space<vmem>>, vector<1x120x16xbf16>
    %173 = vector.shape_cast %172 : vector<1x120x16xbf16> to vector<120x16xbf16>
    %174 = vector.extract_strided_slice %155 {offsets = [0, 12], sizes = [16, 2], strides = [1, 1]} : vector<16x242xbf16> to vector<16x2xbf16>
    %cst_103 = arith.constant dense<0.000000e+00> : vector<120x2xf32>
    %175 = tpu.matmul %173, %174, %cst_103 {dimension_numbers = #tpu.dot_dimension_numbers<[1], [0], [0], [1], [0, 0, 1, 1], [], []>} : vector<120x16xbf16>, vector<16x2xbf16>, vector<120x2xf32> -> vector<120x2xf32>
    %176 = arith.addf %171, %175 : vector<120x2xf32>
    %c4_104 = arith.constant 4 : index
    %c0_105 = arith.constant 0 : index
    %c0_106 = arith.constant 0 : index
    %177 = vector.load %arg6[%c4_104, %c0_105, %c0_106] : memref<25x120x16xbf16, #tpu.memory_space<vmem>>, vector<1x120x16xbf16>
    %178 = vector.shape_cast %177 : vector<1x120x16xbf16> to vector<120x16xbf16>
    %179 = vector.extract_strided_slice %155 {offsets = [0, 16], sizes = [16, 2], strides = [1, 1]} : vector<16x242xbf16> to vector<16x2xbf16>
    %cst_107 = arith.constant dense<0.000000e+00> : vector<120x2xf32>
    %180 = tpu.matmul %178, %179, %cst_107 {dimension_numbers = #tpu.dot_dimension_numbers<[1], [0], [0], [1], [0, 0, 1, 1], [], []>} : vector<120x16xbf16>, vector<16x2xbf16>, vector<120x2xf32> -> vector<120x2xf32>
    %181 = arith.addf %176, %180 : vector<120x2xf32>
    %c5_108 = arith.constant 5 : index
    %c0_109 = arith.constant 0 : index
    %c0_110 = arith.constant 0 : index
    %182 = vector.load %arg6[%c5_108, %c0_109, %c0_110] : memref<25x120x16xbf16, #tpu.memory_space<vmem>>, vector<1x120x16xbf16>
    %183 = vector.shape_cast %182 : vector<1x120x16xbf16> to vector<120x16xbf16>
    %184 = vector.extract_strided_slice %155 {offsets = [0, 56], sizes = [16, 2], strides = [1, 1]} : vector<16x242xbf16> to vector<16x2xbf16>
    %cst_111 = arith.constant dense<0.000000e+00> : vector<120x2xf32>
    %185 = tpu.matmul %183, %184, %cst_111 {dimension_numbers = #tpu.dot_dimension_numbers<[1], [0], [0], [1], [0, 0, 1, 1], [], []>} : vector<120x16xbf16>, vector<16x2xbf16>, vector<120x2xf32> -> vector<120x2xf32>
    %186 = arith.addf %181, %185 : vector<120x2xf32>
    %c6_112 = arith.constant 6 : index
    %c0_113 = arith.constant 0 : index
    %c0_114 = arith.constant 0 : index
    %187 = vector.load %arg6[%c6_112, %c0_113, %c0_114] : memref<25x120x16xbf16, #tpu.memory_space<vmem>>, vector<1x120x16xbf16>
    %188 = vector.shape_cast %187 : vector<1x120x16xbf16> to vector<120x16xbf16>
    %189 = vector.extract_strided_slice %155 {offsets = [0, 60], sizes = [16, 2], strides = [1, 1]} : vector<16x242xbf16> to vector<16x2xbf16>
    %cst_115 = arith.constant dense<0.000000e+00> : vector<120x2xf32>
    %190 = tpu.matmul %188, %189, %cst_115 {dimension_numbers = #tpu.dot_dimension_numbers<[1], [0], [0], [1], [0, 0, 1, 1], [], []>} : vector<120x16xbf16>, vector<16x2xbf16>, vector<120x2xf32> -> vector<120x2xf32>
    %191 = arith.addf %186, %190 : vector<120x2xf32>
    %c7_116 = arith.constant 7 : index
    %c0_117 = arith.constant 0 : index
    %c0_118 = arith.constant 0 : index
    %192 = vector.load %arg6[%c7_116, %c0_117, %c0_118] : memref<25x120x16xbf16, #tpu.memory_space<vmem>>, vector<1x120x16xbf16>
    %193 = vector.shape_cast %192 : vector<1x120x16xbf16> to vector<120x16xbf16>
    %194 = vector.extract_strided_slice %155 {offsets = [0, 64], sizes = [16, 2], strides = [1, 1]} : vector<16x242xbf16> to vector<16x2xbf16>
    %cst_119 = arith.constant dense<0.000000e+00> : vector<120x2xf32>
    %195 = tpu.matmul %193, %194, %cst_119 {dimension_numbers = #tpu.dot_dimension_numbers<[1], [0], [0], [1], [0, 0, 1, 1], [], []>} : vector<120x16xbf16>, vector<16x2xbf16>, vector<120x2xf32> -> vector<120x2xf32>
    %196 = arith.addf %191, %195 : vector<120x2xf32>
    %c8_120 = arith.constant 8 : index
    %c0_121 = arith.constant 0 : index
    %c0_122 = arith.constant 0 : index
    %197 = vector.load %arg6[%c8_120, %c0_121, %c0_122] : memref<25x120x16xbf16, #tpu.memory_space<vmem>>, vector<1x120x16xbf16>
    %198 = vector.shape_cast %197 : vector<1x120x16xbf16> to vector<120x16xbf16>
    %199 = vector.extract_strided_slice %155 {offsets = [0, 68], sizes = [16, 2], strides = [1, 1]} : vector<16x242xbf16> to vector<16x2xbf16>
    %cst_123 = arith.constant dense<0.000000e+00> : vector<120x2xf32>
    %200 = tpu.matmul %198, %199, %cst_123 {dimension_numbers = #tpu.dot_dimension_numbers<[1], [0], [0], [1], [0, 0, 1, 1], [], []>} : vector<120x16xbf16>, vector<16x2xbf16>, vector<120x2xf32> -> vector<120x2xf32>
    %201 = arith.addf %196, %200 : vector<120x2xf32>
    %c9_124 = arith.constant 9 : index
    %c0_125 = arith.constant 0 : index
    %c0_126 = arith.constant 0 : index
    %202 = vector.load %arg6[%c9_124, %c0_125, %c0_126] : memref<25x120x16xbf16, #tpu.memory_space<vmem>>, vector<1x120x16xbf16>
    %203 = vector.shape_cast %202 : vector<1x120x16xbf16> to vector<120x16xbf16>
    %204 = vector.extract_strided_slice %155 {offsets = [0, 72], sizes = [16, 2], strides = [1, 1]} : vector<16x242xbf16> to vector<16x2xbf16>
    %cst_127 = arith.constant dense<0.000000e+00> : vector<120x2xf32>
    %205 = tpu.matmul %203, %204, %cst_127 {dimension_numbers = #tpu.dot_dimension_numbers<[1], [0], [0], [1], [0, 0, 1, 1], [], []>} : vector<120x16xbf16>, vector<16x2xbf16>, vector<120x2xf32> -> vector<120x2xf32>
    %206 = arith.addf %201, %205 : vector<120x2xf32>
    %c10_128 = arith.constant 10 : index
    %c0_129 = arith.constant 0 : index
    %c0_130 = arith.constant 0 : index
    %207 = vector.load %arg6[%c10_128, %c0_129, %c0_130] : memref<25x120x16xbf16, #tpu.memory_space<vmem>>, vector<1x120x16xbf16>
    %208 = vector.shape_cast %207 : vector<1x120x16xbf16> to vector<120x16xbf16>
    %209 = vector.extract_strided_slice %155 {offsets = [0, 112], sizes = [16, 2], strides = [1, 1]} : vector<16x242xbf16> to vector<16x2xbf16>
    %cst_131 = arith.constant dense<0.000000e+00> : vector<120x2xf32>
    %210 = tpu.matmul %208, %209, %cst_131 {dimension_numbers = #tpu.dot_dimension_numbers<[1], [0], [0], [1], [0, 0, 1, 1], [], []>} : vector<120x16xbf16>, vector<16x2xbf16>, vector<120x2xf32> -> vector<120x2xf32>
    %211 = arith.addf %206, %210 : vector<120x2xf32>
    %c11_132 = arith.constant 11 : index
    %c0_133 = arith.constant 0 : index
    %c0_134 = arith.constant 0 : index
    %212 = vector.load %arg6[%c11_132, %c0_133, %c0_134] : memref<25x120x16xbf16, #tpu.memory_space<vmem>>, vector<1x120x16xbf16>
    %213 = vector.shape_cast %212 : vector<1x120x16xbf16> to vector<120x16xbf16>
    %214 = vector.extract_strided_slice %155 {offsets = [0, 116], sizes = [16, 2], strides = [1, 1]} : vector<16x242xbf16> to vector<16x2xbf16>
    %cst_135 = arith.constant dense<0.000000e+00> : vector<120x2xf32>
    %215 = tpu.matmul %213, %214, %cst_135 {dimension_numbers = #tpu.dot_dimension_numbers<[1], [0], [0], [1], [0, 0, 1, 1], [], []>} : vector<120x16xbf16>, vector<16x2xbf16>, vector<120x2xf32> -> vector<120x2xf32>
    %216 = arith.addf %211, %215 : vector<120x2xf32>
    %c12_136 = arith.constant 12 : index
    %c0_137 = arith.constant 0 : index
    %c0_138 = arith.constant 0 : index
    %217 = vector.load %arg6[%c12_136, %c0_137, %c0_138] : memref<25x120x16xbf16, #tpu.memory_space<vmem>>, vector<1x120x16xbf16>
    %218 = vector.shape_cast %217 : vector<1x120x16xbf16> to vector<120x16xbf16>
    %219 = vector.extract_strided_slice %155 {offsets = [0, 120], sizes = [16, 2], strides = [1, 1]} : vector<16x242xbf16> to vector<16x2xbf16>
    %cst_139 = arith.constant dense<0.000000e+00> : vector<120x2xf32>
    %220 = tpu.matmul %218, %219, %cst_139 {dimension_numbers = #tpu.dot_dimension_numbers<[1], [0], [0], [1], [0, 0, 1, 1], [], []>} : vector<120x16xbf16>, vector<16x2xbf16>, vector<120x2xf32> -> vector<120x2xf32>
    %221 = arith.addf %216, %220 : vector<120x2xf32>
    %c13_140 = arith.constant 13 : index
    %c0_141 = arith.constant 0 : index
    %c0_142 = arith.constant 0 : index
    %222 = vector.load %arg6[%c13_140, %c0_141, %c0_142] : memref<25x120x16xbf16, #tpu.memory_space<vmem>>, vector<1x120x16xbf16>
    %223 = vector.shape_cast %222 : vector<1x120x16xbf16> to vector<120x16xbf16>
    %224 = vector.extract_strided_slice %155 {offsets = [0, 124], sizes = [16, 2], strides = [1, 1]} : vector<16x242xbf16> to vector<16x2xbf16>
    %cst_143 = arith.constant dense<0.000000e+00> : vector<120x2xf32>
    %225 = tpu.matmul %223, %224, %cst_143 {dimension_numbers = #tpu.dot_dimension_numbers<[1], [0], [0], [1], [0, 0, 1, 1], [], []>} : vector<120x16xbf16>, vector<16x2xbf16>, vector<120x2xf32> -> vector<120x2xf32>
    %226 = arith.addf %221, %225 : vector<120x2xf32>
    %c14_144 = arith.constant 14 : index
    %c0_145 = arith.constant 0 : index
    %c0_146 = arith.constant 0 : index
    %227 = vector.load %arg6[%c14_144, %c0_145, %c0_146] : memref<25x120x16xbf16, #tpu.memory_space<vmem>>, vector<1x120x16xbf16>
    %228 = vector.shape_cast %227 : vector<1x120x16xbf16> to vector<120x16xbf16>
    %229 = vector.extract_strided_slice %155 {offsets = [0, 128], sizes = [16, 2], strides = [1, 1]} : vector<16x242xbf16> to vector<16x2xbf16>
    %cst_147 = arith.constant dense<0.000000e+00> : vector<120x2xf32>
    %230 = tpu.matmul %228, %229, %cst_147 {dimension_numbers = #tpu.dot_dimension_numbers<[1], [0], [0], [1], [0, 0, 1, 1], [], []>} : vector<120x16xbf16>, vector<16x2xbf16>, vector<120x2xf32> -> vector<120x2xf32>
    %231 = arith.addf %226, %230 : vector<120x2xf32>
    %c15_148 = arith.constant 15 : index
    %c0_149 = arith.constant 0 : index
    %c0_150 = arith.constant 0 : index
    %232 = vector.load %arg6[%c15_148, %c0_149, %c0_150] : memref<25x120x16xbf16, #tpu.memory_space<vmem>>, vector<1x120x16xbf16>
    %233 = vector.shape_cast %232 : vector<1x120x16xbf16> to vector<120x16xbf16>
    %234 = vector.extract_strided_slice %155 {offsets = [0, 168], sizes = [16, 2], strides = [1, 1]} : vector<16x242xbf16> to vector<16x2xbf16>
    %cst_151 = arith.constant dense<0.000000e+00> : vector<120x2xf32>
    %235 = tpu.matmul %233, %234, %cst_151 {dimension_numbers = #tpu.dot_dimension_numbers<[1], [0], [0], [1], [0, 0, 1, 1], [], []>} : vector<120x16xbf16>, vector<16x2xbf16>, vector<120x2xf32> -> vector<120x2xf32>
    %236 = arith.addf %231, %235 : vector<120x2xf32>
    %c16_152 = arith.constant 16 : index
    %c0_153 = arith.constant 0 : index
    %c0_154 = arith.constant 0 : index
    %237 = vector.load %arg6[%c16_152, %c0_153, %c0_154] : memref<25x120x16xbf16, #tpu.memory_space<vmem>>, vector<1x120x16xbf16>
    %238 = vector.shape_cast %237 : vector<1x120x16xbf16> to vector<120x16xbf16>
    %239 = vector.extract_strided_slice %155 {offsets = [0, 172], sizes = [16, 2], strides = [1, 1]} : vector<16x242xbf16> to vector<16x2xbf16>
    %cst_155 = arith.constant dense<0.000000e+00> : vector<120x2xf32>
    %240 = tpu.matmul %238, %239, %cst_155 {dimension_numbers = #tpu.dot_dimension_numbers<[1], [0], [0], [1], [0, 0, 1, 1], [], []>} : vector<120x16xbf16>, vector<16x2xbf16>, vector<120x2xf32> -> vector<120x2xf32>
    %241 = arith.addf %236, %240 : vector<120x2xf32>
    %c17_156 = arith.constant 17 : index
    %c0_157 = arith.constant 0 : index
    %c0_158 = arith.constant 0 : index
    %242 = vector.load %arg6[%c17_156, %c0_157, %c0_158] : memref<25x120x16xbf16, #tpu.memory_space<vmem>>, vector<1x120x16xbf16>
    %243 = vector.shape_cast %242 : vector<1x120x16xbf16> to vector<120x16xbf16>
    %244 = vector.extract_strided_slice %155 {offsets = [0, 176], sizes = [16, 2], strides = [1, 1]} : vector<16x242xbf16> to vector<16x2xbf16>
    %cst_159 = arith.constant dense<0.000000e+00> : vector<120x2xf32>
    %245 = tpu.matmul %243, %244, %cst_159 {dimension_numbers = #tpu.dot_dimension_numbers<[1], [0], [0], [1], [0, 0, 1, 1], [], []>} : vector<120x16xbf16>, vector<16x2xbf16>, vector<120x2xf32> -> vector<120x2xf32>
    %246 = arith.addf %241, %245 : vector<120x2xf32>
    %c18_160 = arith.constant 18 : index
    %c0_161 = arith.constant 0 : index
    %c0_162 = arith.constant 0 : index
    %247 = vector.load %arg6[%c18_160, %c0_161, %c0_162] : memref<25x120x16xbf16, #tpu.memory_space<vmem>>, vector<1x120x16xbf16>
    %248 = vector.shape_cast %247 : vector<1x120x16xbf16> to vector<120x16xbf16>
    %249 = vector.extract_strided_slice %155 {offsets = [0, 180], sizes = [16, 2], strides = [1, 1]} : vector<16x242xbf16> to vector<16x2xbf16>
    %cst_163 = arith.constant dense<0.000000e+00> : vector<120x2xf32>
    %250 = tpu.matmul %248, %249, %cst_163 {dimension_numbers = #tpu.dot_dimension_numbers<[1], [0], [0], [1], [0, 0, 1, 1], [], []>} : vector<120x16xbf16>, vector<16x2xbf16>, vector<120x2xf32> -> vector<120x2xf32>
    %251 = arith.addf %246, %250 : vector<120x2xf32>
    %c19_164 = arith.constant 19 : index
    %c0_165 = arith.constant 0 : index
    %c0_166 = arith.constant 0 : index
    %252 = vector.load %arg6[%c19_164, %c0_165, %c0_166] : memref<25x120x16xbf16, #tpu.memory_space<vmem>>, vector<1x120x16xbf16>
    %253 = vector.shape_cast %252 : vector<1x120x16xbf16> to vector<120x16xbf16>
    %254 = vector.extract_strided_slice %155 {offsets = [0, 184], sizes = [16, 2], strides = [1, 1]} : vector<16x242xbf16> to vector<16x2xbf16>
    %cst_167 = arith.constant dense<0.000000e+00> : vector<120x2xf32>
    %255 = tpu.matmul %253, %254, %cst_167 {dimension_numbers = #tpu.dot_dimension_numbers<[1], [0], [0], [1], [0, 0, 1, 1], [], []>} : vector<120x16xbf16>, vector<16x2xbf16>, vector<120x2xf32> -> vector<120x2xf32>
    %256 = arith.addf %251, %255 : vector<120x2xf32>
    %c20_168 = arith.constant 20 : index
    %c0_169 = arith.constant 0 : index
    %c0_170 = arith.constant 0 : index
    %257 = vector.load %arg6[%c20_168, %c0_169, %c0_170] : memref<25x120x16xbf16, #tpu.memory_space<vmem>>, vector<1x120x16xbf16>
    %258 = vector.shape_cast %257 : vector<1x120x16xbf16> to vector<120x16xbf16>
    %259 = vector.extract_strided_slice %155 {offsets = [0, 224], sizes = [16, 2], strides = [1, 1]} : vector<16x242xbf16> to vector<16x2xbf16>
    %cst_171 = arith.constant dense<0.000000e+00> : vector<120x2xf32>
    %260 = tpu.matmul %258, %259, %cst_171 {dimension_numbers = #tpu.dot_dimension_numbers<[1], [0], [0], [1], [0, 0, 1, 1], [], []>} : vector<120x16xbf16>, vector<16x2xbf16>, vector<120x2xf32> -> vector<120x2xf32>
    %261 = arith.addf %256, %260 : vector<120x2xf32>
    %c21_172 = arith.constant 21 : index
    %c0_173 = arith.constant 0 : index
    %c0_174 = arith.constant 0 : index
    %262 = vector.load %arg6[%c21_172, %c0_173, %c0_174] : memref<25x120x16xbf16, #tpu.memory_space<vmem>>, vector<1x120x16xbf16>
    %263 = vector.shape_cast %262 : vector<1x120x16xbf16> to vector<120x16xbf16>
    %264 = vector.extract_strided_slice %155 {offsets = [0, 228], sizes = [16, 2], strides = [1, 1]} : vector<16x242xbf16> to vector<16x2xbf16>
    %cst_175 = arith.constant dense<0.000000e+00> : vector<120x2xf32>
    %265 = tpu.matmul %263, %264, %cst_175 {dimension_numbers = #tpu.dot_dimension_numbers<[1], [0], [0], [1], [0, 0, 1, 1], [], []>} : vector<120x16xbf16>, vector<16x2xbf16>, vector<120x2xf32> -> vector<120x2xf32>
    %266 = arith.addf %261, %265 : vector<120x2xf32>
    %c22_176 = arith.constant 22 : index
    %c0_177 = arith.constant 0 : index
    %c0_178 = arith.constant 0 : index
    %267 = vector.load %arg6[%c22_176, %c0_177, %c0_178] : memref<25x120x16xbf16, #tpu.memory_space<vmem>>, vector<1x120x16xbf16>
    %268 = vector.shape_cast %267 : vector<1x120x16xbf16> to vector<120x16xbf16>
    %269 = vector.extract_strided_slice %155 {offsets = [0, 232], sizes = [16, 2], strides = [1, 1]} : vector<16x242xbf16> to vector<16x2xbf16>
    %cst_179 = arith.constant dense<0.000000e+00> : vector<120x2xf32>
    %270 = tpu.matmul %268, %269, %cst_179 {dimension_numbers = #tpu.dot_dimension_numbers<[1], [0], [0], [1], [0, 0, 1, 1], [], []>} : vector<120x16xbf16>, vector<16x2xbf16>, vector<120x2xf32> -> vector<120x2xf32>
    %271 = arith.addf %266, %270 : vector<120x2xf32>
    %c23_180 = arith.constant 23 : index
    %c0_181 = arith.constant 0 : index
    %c0_182 = arith.constant 0 : index
    %272 = vector.load %arg6[%c23_180, %c0_181, %c0_182] : memref<25x120x16xbf16, #tpu.memory_space<vmem>>, vector<1x120x16xbf16>
    %273 = vector.shape_cast %272 : vector<1x120x16xbf16> to vector<120x16xbf16>
    %274 = vector.extract_strided_slice %155 {offsets = [0, 236], sizes = [16, 2], strides = [1, 1]} : vector<16x242xbf16> to vector<16x2xbf16>
    %cst_183 = arith.constant dense<0.000000e+00> : vector<120x2xf32>
    %275 = tpu.matmul %273, %274, %cst_183 {dimension_numbers = #tpu.dot_dimension_numbers<[1], [0], [0], [1], [0, 0, 1, 1], [], []>} : vector<120x16xbf16>, vector<16x2xbf16>, vector<120x2xf32> -> vector<120x2xf32>
    %276 = arith.addf %271, %275 : vector<120x2xf32>
    %c24_184 = arith.constant 24 : index
    %c0_185 = arith.constant 0 : index
    %c0_186 = arith.constant 0 : index
    %277 = vector.load %arg6[%c24_184, %c0_185, %c0_186] : memref<25x120x16xbf16, #tpu.memory_space<vmem>>, vector<1x120x16xbf16>
    %278 = vector.shape_cast %277 : vector<1x120x16xbf16> to vector<120x16xbf16>
    %279 = vector.extract_strided_slice %155 {offsets = [0, 240], sizes = [16, 2], strides = [1, 1]} : vector<16x242xbf16> to vector<16x2xbf16>
    %cst_187 = arith.constant dense<0.000000e+00> : vector<120x2xf32>
    %280 = tpu.matmul %278, %279, %cst_187 {dimension_numbers = #tpu.dot_dimension_numbers<[1], [0], [0], [1], [0, 0, 1, 1], [], []>} : vector<120x16xbf16>, vector<16x2xbf16>, vector<120x2xf32> -> vector<120x2xf32>
    %281 = arith.addf %276, %280 : vector<120x2xf32>
    %c0_188 = arith.constant 0 : index
    %c0_189 = arith.constant 0 : index
    %282 = vector.load %arg7[%c0_188, %c0_189] : memref<120x1xf32, #tpu.memory_space<vmem>>, vector<120x1xf32>
    %283 = vector.broadcast %282 : vector<120x1xf32> to vector<120x2xf32>
    %284 = arith.addf %281, %283 : vector<120x2xf32>
    %cst_190 = arith.constant 0.000000e+00 : f32
    %285 = vector.broadcast %cst_190 : f32 to vector<120x2xf32>
    %286 = arith.maximumf %284, %285 : vector<120x2xf32>
    %287 = arith.truncf %286 : vector<120x2xf32> to vector<120x2xbf16>
    %c0_191 = arith.constant 0 : index
    %c0_192 = arith.constant 0 : index
    %288 = vector.load %arg8[%c0_191, %c0_192] : memref<84x120xbf16, #tpu.memory_space<vmem>>, vector<84x120xbf16>
    %cst_193 = arith.constant dense<0.000000e+00> : vector<84x2xf32>
    %289 = tpu.matmul %288, %287, %cst_193 {dimension_numbers = #tpu.dot_dimension_numbers<[1], [0], [0], [1], [0, 0, 1, 1], [], []>} : vector<84x120xbf16>, vector<120x2xbf16>, vector<84x2xf32> -> vector<84x2xf32>
    %c0_194 = arith.constant 0 : index
    %c0_195 = arith.constant 0 : index
    %290 = vector.load %arg9[%c0_194, %c0_195] : memref<84x1xf32, #tpu.memory_space<vmem>>, vector<84x1xf32>
    %291 = vector.broadcast %290 : vector<84x1xf32> to vector<84x2xf32>
    %292 = arith.addf %289, %291 : vector<84x2xf32>
    %cst_196 = arith.constant 0.000000e+00 : f32
    %293 = vector.broadcast %cst_196 : f32 to vector<84x2xf32>
    %294 = arith.maximumf %292, %293 : vector<84x2xf32>
    %295 = arith.truncf %294 : vector<84x2xf32> to vector<84x2xbf16>
    %c0_197 = arith.constant 0 : index
    %c0_198 = arith.constant 0 : index
    %296 = vector.load %arg10[%c0_197, %c0_198] : memref<10x84xbf16, #tpu.memory_space<vmem>>, vector<10x84xbf16>
    %cst_199 = arith.constant dense<0.000000e+00> : vector<10x2xf32>
    %297 = tpu.matmul %296, %295, %cst_199 {dimension_numbers = #tpu.dot_dimension_numbers<[1], [0], [0], [1], [0, 0, 1, 1], [], []>} : vector<10x84xbf16>, vector<84x2xbf16>, vector<10x2xf32> -> vector<10x2xf32>
    %c0_200 = arith.constant 0 : index
    %c0_201 = arith.constant 0 : index
    %298 = vector.load %arg11[%c0_200, %c0_201] : memref<10x1xf32, #tpu.memory_space<vmem>>, vector<10x1xf32>
    %299 = vector.broadcast %298 : vector<10x1xf32> to vector<10x2xf32>
    %300 = arith.addf %297, %299 : vector<10x2xf32>
    %c0_202 = arith.constant 0 : index
    %c0_203 = arith.constant 0 : index
    %c0_204 = arith.constant 0 : index
    %301 = vector.load %arg12[%c0_202, %c0_203, %c0_204] : memref<1x10x2xf32, #tpu.memory_space<vmem>>, vector<1x10x2xf32>
    %302 = vector.shape_cast %301 : vector<1x10x2xf32> to vector<10x2xf32>
    %303 = vector.shape_cast %300 : vector<10x2xf32> to vector<1x10x2xf32>
    tpu.vector_store %arg12[%c0_202, %c0_203, %c0_204], %303 {strides = array<i32>} : memref<1x10x2xf32, #tpu.memory_space<vmem>>, vector<1x10x2xf32>,
    return
  }
  func.func @transform_0(%arg0: i32) -> (i32, i32, i32) {
    %c0_i32 = arith.constant 0 : i32
    %c0_i32_0 = arith.constant 0 : i32
    %c0_i32_1 = arith.constant 0 : i32
    return %arg0, %c0_i32, %c0_i32_0 : i32, i32, i32
  }
  func.func @transform_1(%arg0: i32) -> (i32, i32) {
    %c0_i32 = arith.constant 0 : i32
    %c0_i32_0 = arith.constant 0 : i32
    %c0_i32_1 = arith.constant 0 : i32
    return %c0_i32, %c0_i32_0 : i32, i32
  }
  func.func @transform_2(%arg0: i32) -> (i32, i32) {
    %c0_i32 = arith.constant 0 : i32
    %c0_i32_0 = arith.constant 0 : i32
    %c0_i32_1 = arith.constant 0 : i32
    return %c0_i32, %c0_i32_0 : i32, i32
  }
  func.func @transform_3(%arg0: i32) -> (i32, i32, i32) {
    %c0_i32 = arith.constant 0 : i32
    %c0_i32_0 = arith.constant 0 : i32
    %c0_i32_1 = arith.constant 0 : i32
    %c0_i32_2 = arith.constant 0 : i32
    return %c0_i32, %c0_i32_0, %c0_i32_1 : i32, i32, i32
  }
  func.func @transform_4(%arg0: i32) -> (i32, i32) {
    %c0_i32 = arith.constant 0 : i32
    %c0_i32_0 = arith.constant 0 : i32
    %c0_i32_1 = arith.constant 0 : i32
    return %c0_i32, %c0_i32_0 : i32, i32
  }
  func.func @transform_5(%arg0: i32) -> (i32, i32, i32) {
    %c0_i32 = arith.constant 0 : i32
    %c0_i32_0 = arith.constant 0 : i32
    %c0_i32_1 = arith.constant 0 : i32
    %c0_i32_2 = arith.constant 0 : i32
    return %c0_i32, %c0_i32_0, %c0_i32_1 : i32, i32, i32
  }
  func.func @transform_6(%arg0: i32) -> (i32, i32) {
    %c0_i32 = arith.constant 0 : i32
    %c0_i32_0 = arith.constant 0 : i32
    %c0_i32_1 = arith.constant 0 : i32
    return %c0_i32, %c0_i32_0 : i32, i32
  }
  func.func @transform_7(%arg0: i32) -> (i32, i32) {
    %c0_i32 = arith.constant 0 : i32
    %c0_i32_0 = arith.constant 0 : i32
    %c0_i32_1 = arith.constant 0 : i32
    return %c0_i32, %c0_i32_0 : i32, i32
  }
  func.func @transform_8(%arg0: i32) -> (i32, i32) {
    %c0_i32 = arith.constant 0 : i32
    %c0_i32_0 = arith.constant 0 : i32
    %c0_i32_1 = arith.constant 0 : i32
    return %c0_i32, %c0_i32_0 : i32, i32
  }
  func.func @transform_9(%arg0: i32) -> (i32, i32) {
    %c0_i32 = arith.constant 0 : i32
    %c0_i32_0 = arith.constant 0 : i32
    %c0_i32_1 = arith.constant 0 : i32
    return %c0_i32, %c0_i32_0 : i32, i32
  }
  func.func @transform_10(%arg0: i32) -> (i32, i32) {
    %c0_i32 = arith.constant 0 : i32
    %c0_i32_0 = arith.constant 0 : i32
    %c0_i32_1 = arith.constant 0 : i32
    return %c0_i32, %c0_i32_0 : i32, i32
  }
  func.func @transform_11(%arg0: i32) -> (i32, i32, i32) {
    %c0_i32 = arith.constant 0 : i32
    %c0_i32_0 = arith.constant 0 : i32
    %c0_i32_1 = arith.constant 0 : i32
    return %arg0, %c0_i32, %c0_i32_0 : i32, i32, i32
  }
}

</mosaic_0001>

<bundles_post_ra>
// kernel: lenet2_forward.1
= control target key start
LH: loop header
LB: loop body
LE: loop exit
PB: predicated region body
PF: predicated region fallthrough
CT: control target
= control target key end

     0   :  { %vm508_vm0 = vcmask 1044480   ;;  %vm509_vm1 = vcmask 1045504   ;;  %v8931_v2 = vmov 65535   ;;  %vm504_vm2 = vcmask 613376   ;;  %s8934_s23 = smov 126   ;;  %s8935_s24 = smov 122   ;;  %s11662_s0 = inlined_call_operand.vmem [shape: bf16[1,75,2048], index: 0, kind: input, shape index: {}]   ;;  %s11663_s1 = inlined_call_operand.vmem [shape: bf16[8,75], index: 1, kind: input, shape index: {}]   ;;  %s11664_s2 = inlined_call_operand.vmem [shape: f32[8,1], index: 2, kind: input, shape index: {}]   ;;  %s11665_s3 = inlined_call_operand.vmem [shape: bf16[25,16,8], index: 3, kind: input, shape index: {}]   ;;  %s11666_s4 = inlined_call_operand.vmem [shape: f32[16,1], index: 4, kind: input, shape index: {}]   ;;  %s11667_s5 = inlined_call_operand.vmem [shape: bf16[25,120,16], index: 5, kind: input, shape index: {}]   ;;  %s11668_s6 = inlined_call_operand.vmem [shape: f32[120,1], index: 6, kind: input, shape index: {}]   ;;  %s11669_s8 = inlined_call_operand.vmem [shape: f32[84,1], index: 8, kind: input, shape index: {}]   ;;  %s11670_s10 = inlined_call_operand.vmem [shape: f32[10,1], index: 10, kind: input, shape index: {}]   ;;  %s11671_s7 = inlined_call_operand.vmem [shape: bf16[84,120], index: 7, kind: input, shape index: {}]   ;;  %s11672_s9 = inlined_call_operand.vmem [shape: bf16[10,84], index: 9, kind: input, shape index: {}]   ;;  %s11673_s11 = inlined_call_operand.vmem [shape: f32[1,10,2], index: 11, kind: output, shape index: {}]  }
   0x1   :  { %v7009_v0 = vld [vmem:[%s11662_s0 + $0x200] sm:$0xf]  ;;  %v510_v3 = vsel %vm508_vm0, 4294967295, %v8931_v2  ;;  %v8665_v6 = vld [vmem:[%s11662_s0 + $0x204] sm:$0xf]  ;;  %vm827_vm3 = vcmask 1043456  }
   0x2   :  { %v8673_v1 = vld [vmem:[%s11662_s0 + $0x23c] sm:$0x30]  ;;  %v9036_v5 = vsel %vm509_vm1, %v510_v3, 0  ;;  %v7011_v7 = vld [vmem:[%s11662_s0 + $0x240] sm:$0x30]  ;;  %s8936_s25 = smov 120  }
   0x3   :  { %v7010_v4 = vor.u32 %v8673_v1, %v7009_v0  ;;  %v7014_v8 = vor.u32 %v8665_v6, %v7011_v7  ;;  %v7017_v9 = vld [vmem:[%s11662_s0 + $0x208] sm:$0xf]  ;;  %v8666_v11 = vld [vmem:[%s11662_s0 + $0x20c] sm:$0xf]  ;;  %v6945_v15 = vld [vmem:[%s11662_s0 + $0x180] sm:$0xf] }
   0x4   :  { %v8674_v10 = vld [vmem:[%s11662_s0 + $0x244] sm:$0x30]  ;;  %v7019_v14 = vld [vmem:[%s11662_s0 + $0x248] sm:$0x30]  ;;  %v8657_v16 = vld [vmem:[%s11662_s0 + $0x1bc] sm:$0xf0] }
   0x5   :  { %v513_v12 = vand.u32 %v7010_v4, %v9036_v5  ;;  %v7018_v13 = vor.u32 %v8674_v10, %v7017_v9  ;;  %v516_v17 = vand.u32 %v7014_v8, %v9036_v5  ;;  %v7022_v18 = vor.u32 %v8666_v11, %v7019_v14  ;;  %v8649_v19 = vld [vmem:[%s11662_s0 + $0x184] sm:$0xf]  ;;  %v6953_v21 = vld [vmem:[%s11662_s0 + $0x188] sm:$0xf]  ;;  %v8650_v25 = vld [vmem:[%s11662_s0 + $0x18c] sm:$0xf] }
   0x6   :  { %v6947_v20 = vld [vmem:[%s11662_s0 + $0x1c0] sm:$0xf0]  ;;  %v6946_v23 = vor.u32 %v8657_v16, %v6945_v15  ;;  %v8658_v24 = vld [vmem:[%s11662_s0 + $0x1c4] sm:$0xf0]  ;;  %v6955_v26 = vld [vmem:[%s11662_s0 + $0x1c8] sm:$0xf0] }
   0x7   :  { %563 = vmatpush.bf16.msra.mxu0 %v513_v12  ;;  %v519_v22 = vand.u32 %v7018_v13, %v9036_v5  ;;  %576 = vmatpush.bf16.msra.mxu1 %v516_v17  ;;  %v522_v27 = vand.u32 %v7022_v18, %v9036_v5  ;;  %v6950_v28 = vor.u32 %v8649_v19, %v6947_v20  ;;  %v6881_v29 = vld [vmem:[%s11662_s0 + $0x100] sm:$0xf]  ;;  %v8633_v32 = vld [vmem:[%s11662_s0 + $0x104] sm:$0xf]  ;;  %v6889_v35 = vld [vmem:[%s11662_s0 + $0x108] sm:$0xf] }
   0x8   :  { %v8641_v30 = vld [vmem:[%s11662_s0 + $0x13c] sm:$0xf0]  ;;  %v6954_v31 = vor.u32 %v8658_v24, %v6953_v21  ;;  %v6883_v33 = vld [vmem:[%s11662_s0 + $0x140] sm:$0xf0]  ;;  %v6958_v34 = vor.u32 %v8650_v25, %v6955_v26  ;;  %v8642_v36 = vld [vmem:[%s11662_s0 + $0x144] sm:$0xf0] }
   0x9   :  { %589 = vmatpush.bf16.msra.mxu2 %v519_v22  ;;  %602 = vmatpush.bf16.msra.mxu3 %v522_v27  ;;  %v6882_v37 = vor.u32 %v8641_v30, %v6881_v29  ;;  %v8634_v38 = vld [vmem:[%s11662_s0 + $0x10c] sm:$0xf]  ;;  %v6886_v40 = vor.u32 %v8633_v32, %v6883_v33  ;;  %v6817_v41 = vld [vmem:[%s11662_s0 + $0x80] sm:$0xf]  ;;  %v8617_v43 = vld [vmem:[%s11662_s0 + $0x84] sm:$0xf]  ;;  %v6890_v44 = vor.u32 %v8642_v36, %v6889_v35 }
   0xa   :  { %v6891_v39 = vld [vmem:[%s11662_s0 + $0x148] sm:$0xf0]  ;;  %v8625_v42 = vld [vmem:[%s11662_s0 + $0xbc] sm:$0xf0]  ;;  %v6819_v45 = vld [vmem:[%s11662_s0 + $0xc0] sm:$0xf0] }
   0xb   :  { %564 = vmatpush.bf16.msra.mxu0 %v6946_v23  ;;  %577 = vmatpush.bf16.msra.mxu1 %v6950_v28  ;;  %v6825_v46 = vld [vmem:[%s11662_s0 + $0x88] sm:$0xf]  ;;  %v6894_v48 = vor.u32 %v8634_v38, %v6891_v39  ;;  %v8618_v49 = vld [vmem:[%s11662_s0 + $0x8c] sm:$0xf]  ;;  %v6753_v51 = vld [vmem:[%s11662_s0] sm:$0xf]  ;;  %v6818_v52 = vor.u32 %v8625_v42, %v6817_v41  ;;  %v6822_v56 = vor.u32 %v8617_v43, %v6819_v45 }
   0xc   :  { %v8626_v47 = vld [vmem:[%s11662_s0 + $0xc4] sm:$0xf0]  ;;  %v6827_v50 = vld [vmem:[%s11662_s0 + $0xc8] sm:$0xf0]  ;;  %v8609_v53 = vld [vmem:[%s11662_s0 + $0x3c] sm:$0xf0] }
   0xd   :  { %590 = vmatpush.bf16.msra.mxu2 %v6954_v31  ;;  %603 = vmatpush.bf16.msra.mxu3 %v6958_v34  ;;  %v8601_v54 = vld [vmem:[%s11662_s0 + $0x4] sm:$0xf]  ;;  %v6761_v57 = vld [vmem:[%s11662_s0 + $0x8] sm:$0xf]  ;;  %v7025_v58 = vld [vmem:[%s11662_s0 + $0x210] sm:$0xf]  ;;  %v6826_v61 = vor.u32 %v8626_v47, %v6825_v46  ;;  %v6830_v2 = vor.u32 %v8618_v49, %v6827_v50  ;;  %v6754_v9 = vor.u32 %v8609_v53, %v6753_v51 }
   0xe   :  { %v6755_v55 = vld [vmem:[%s11662_s0 + $0x40] sm:$0xf0]  ;;  %v8675_v59 = vld [vmem:[%s11662_s0 + $0x24c] sm:$0x30]  ;;  %v8667_v60 = vld [vmem:[%s11662_s0 + $0x214] sm:$0xf] }
   0xf   :  { %565 = vmatpush.bf16.msra.mxu0 %v6882_v37  ;;  %578 = vmatpush.bf16.msra.mxu1 %v6886_v40  ;;  %v7026_v62 = vor.u32 %v8675_v59, %v7025_v58  ;;  %v7027_v63 = vld [vmem:[%s11662_s0 + $0x250] sm:$0x30]  ;;  %v7033_v0 = vld [vmem:[%s11662_s0 + $0x218] sm:$0xf]  ;;  %v8610_v3 = vld [vmem:[%s11662_s0 + $0x44] sm:$0xf0]  ;;  %v6758_v13 = vor.u32 %v8601_v54, %v6755_v55 }
  0x10   :  { %v8676_v1 = vld [vmem:[%s11662_s0 + $0x254] sm:$0x30]  ;;  %v7030_v4 = vor.u32 %v8667_v60, %v7027_v63  ;;  %v8668_v7 = vld [vmem:[%s11662_s0 + $0x21c] sm:$0xf]  ;;  %v8602_v10 = vld [vmem:[%s11662_s0 + $0xc] sm:$0xf]  ;;  %v6762_v15 = vor.u32 %v8610_v3, %v6761_v57 }
  0x11   :  { %591 = vmatpush.bf16.msra.mxu2 %v6890_v44  ;;  %604 = vmatpush.bf16.msra.mxu3 %v6894_v48  ;;  %v7034_v6 = vor.u32 %v8676_v1, %v7033_v0  ;;  %v7035_v8 = vld [vmem:[%s11662_s0 + $0x258] sm:$0x30]  ;;  %v6763_v11 = vld [vmem:[%s11662_s0 + $0x48] sm:$0xf0]  ;;  %v525_v14 = vand.u32 %v7026_v62, %v9036_v5  ;;  %v6961_v19 = vld [vmem:[%s11662_s0 + $0x190] sm:$0xf] }
  0x12   :  { %v7038_v12 = vor.u32 %v8668_v7, %v7035_v8  ;;  %v528_v16 = vand.u32 %v7030_v4, %v9036_v5  ;;  %v6766_v17 = vor.u32 %v8602_v10, %v6763_v11  ;;  %v8659_v20 = vld [vmem:[%s11662_s0 + $0x1cc] sm:$0xf0]  ;;  %v8651_v21 = vld [vmem:[%s11662_s0 + $0x194] sm:$0xf]  ;;  %v6969_v24 = vld [vmem:[%s11662_s0 + $0x198] sm:$0xf] }
  0x13   :  { %566 = vmatpush.bf16.msra.mxu0 %v6818_v52  ;;  %579 = vmatpush.bf16.msra.mxu1 %v6822_v56  ;;  %v531_v18 = vand.u32 %v7034_v6, %v9036_v5  ;;  %v6963_v23 = vld [vmem:[%s11662_s0 + $0x1d0] sm:$0xf0]  ;;  %v8660_v25 = vld [vmem:[%s11662_s0 + $0x1d4] sm:$0xf0]  ;;  %v9205_v26 = vld [vmem:[%s11663_s1] sm:$0xf]  ;;  %v6962_v29 = vor.u32 %v8659_v20, %v6961_v19 }
  0x14   :  { %v534_v22 = vand.u32 %v7038_v12, %v9036_v5  ;;  %v8652_v27 = vld [vmem:[%s11662_s0 + $0x19c] sm:$0xf]  ;;  %v6966_v30 = vor.u32 %v8651_v21, %v6963_v23  ;;  %v6970_v31 = vor.u32 %v8660_v25, %v6969_v24  ;;  %v6897_v32 = vld [vmem:[%s11662_s0 + $0x110] sm:$0xf]  ;;  %v8635_v34 = vld [vmem:[%s11662_s0 + $0x114] sm:$0xf] }
  0x15   :  { %592 = vmatpush.bf16.msra.mxu2 %v6826_v61  ;;  %605 = vmatpush.bf16.msra.mxu3 %v6830_v2  ;;  %v6971_v28 = vld [vmem:[%s11662_s0 + $0x1d8] sm:$0xf0]  ;;  %v8643_v33 = vld [vmem:[%s11662_s0 + $0x14c] sm:$0xf0]  ;;  %v6899_v36 = vld [vmem:[%s11662_s0 + $0x150] sm:$0xf0] }
  0x16   :  { %v6974_v35 = vor.u32 %v8652_v27, %v6971_v28  ;;  %v6905_v37 = vld [vmem:[%s11662_s0 + $0x118] sm:$0xf]  ;;  %v8636_v39 = vld [vmem:[%s11662_s0 + $0x11c] sm:$0xf]  ;;  %v6898_v41 = vor.u32 %v8643_v33, %v6897_v32  ;;  %v6833_v42 = vld [vmem:[%s11662_s0 + $0x90] sm:$0xf]  ;;  %v6902_v44 = vor.u32 %v8635_v34, %v6899_v36 }
  0x17   :  { %567 = vmatpush.bf16.msra.mxu0 %v6754_v9  ;;  %580 = vmatpush.bf16.msra.mxu1 %v6758_v13  ;;  %v8644_v38 = vld [vmem:[%s11662_s0 + $0x154] sm:$0xf0]  ;;  %v6907_v40 = vld [vmem:[%s11662_s0 + $0x158] sm:$0xf0]  ;;  %v8627_v43 = vld [vmem:[%s11662_s0 + $0xcc] sm:$0xf0] }
  0x18   :  { %v6906_v45 = vor.u32 %v8644_v38, %v6905_v37  ;;  %v8619_v46 = vld [vmem:[%s11662_s0 + $0x94] sm:$0xf]  ;;  %v6841_v48 = vld [vmem:[%s11662_s0 + $0x98] sm:$0xf]  ;;  %v6910_v49 = vor.u32 %v8636_v39, %v6907_v40  ;;  %v8620_v51 = vld [vmem:[%s11662_s0 + $0x9c] sm:$0xf]  ;;  %v6834_v58 = vor.u32 %v8627_v43, %v6833_v42 }
  0x19   :  { %593 = vmatpush.bf16.msra.mxu2 %v6762_v15  ;;  %606 = vmatpush.bf16.msra.mxu3 %v6766_v17  ;;  %v6835_v47 = vld [vmem:[%s11662_s0 + $0xd0] sm:$0xf0]  ;;  %v8628_v50 = vld [vmem:[%s11662_s0 + $0xd4] sm:$0xf0]  ;;  %v6843_v52 = vld [vmem:[%s11662_s0 + $0xd8] sm:$0xf0] }
  0x1a   :  { %7071 = vmatmul.msk.bf16.vlgmr.msra.gmra.mxu0 %vm504_vm2, %v9205_v26  ;;  %7072 = vmatmul.msk.bf16.vlgmr.msra.gmra.mxu1 %vm504_vm2, %v9205_v26  ;;  %v6769_v53 = vld [vmem:[%s11662_s0 + $0x10] sm:$0xf]  ;;  %v7041_v55 = vld [vmem:[%s11662_s0 + $0x220] sm:$0xf]  ;;  %v8669_v57 = vld [vmem:[%s11662_s0 + $0x224] sm:$0xf]  ;;  %v6838_v62 = vor.u32 %v8619_v46, %v6835_v47  ;;  %v6842_v63 = vor.u32 %v8628_v50, %v6841_v48  ;;  %v6846_v3 = vor.u32 %v8620_v51, %v6843_v52 }
  0x1b   :  { %615 = vmatpush.bf16.msrb.mxu0 %v525_v14  ;;  %628 = vmatpush.bf16.msrb.mxu1 %v528_v16  ;;  %v8611_v54 = vld [vmem:[%s11662_s0 + $0x4c] sm:$0xf0]  ;;  %v8677_v56 = vld [vmem:[%s11662_s0 + $0x25c] sm:$0x30]  ;;  %v7043_v59 = vld [vmem:[%s11662_s0 + $0x260] sm:$0x30] }
  0x1c   :  { %7073 = vmatmul.msk.bf16.vlgmr.msra.gmra.mxu2 %vm504_vm2, %v9205_v26  ;;  %7074 = vmatmul.msk.bf16.vlgmr.msra.gmra.mxu3 %vm504_vm2, %v9205_v26  ;;  %v7049_v60 = vld [vmem:[%s11662_s0 + $0x228] sm:$0xf]  ;;  %v8603_v0 = vld [vmem:[%s11662_s0 + $0x14] sm:$0xf]  ;;  %v8670_v1 = vld [vmem:[%s11662_s0 + $0x22c] sm:$0xf]  ;;  %v7042_v8 = vor.u32 %v8677_v56, %v7041_v55  ;;  %v7046_v11 = vor.u32 %v8669_v57, %v7043_v59  ;;  %v6770_v13 = vor.u32 %v8611_v54, %v6769_v53 }
  0x1d   :  { %641 = vmatpush.bf16.msrb.mxu2 %v531_v18  ;;  %654 = vmatpush.bf16.msrb.mxu3 %v534_v22  ;;  %v8678_v61 = vld [vmem:[%s11662_s0 + $0x264] sm:$0x30]  ;;  %v7051_v2 = vld [vmem:[%s11662_s0 + $0x268] sm:$0x30]  ;;  %v6771_v4 = vld [vmem:[%s11662_s0 + $0x50] sm:$0xf0] }
  0x1e   :  { %v6777_v6 = vld [vmem:[%s11662_s0 + $0x18] sm:$0xf]  ;;  %v8604_v9 = vld [vmem:[%s11662_s0 + $0x1c] sm:$0xf]  ;;  %v7050_v12 = vor.u32 %v8678_v61, %v7049_v60  ;;  %v7054_v14 = vor.u32 %v8670_v1, %v7051_v2  ;;  %v6774_v15 = vor.u32 %v8603_v0, %v6771_v4  ;;  %v537_v18 = vand.u32 %v7042_v8, %v9036_v5  ;;  %v6977_v21 = vld [vmem:[%s11662_s0 + $0x1a0] sm:$0xf] }
  0x1f   :  { %616 = vmatpush.bf16.msrb.mxu0 %v6962_v29  ;;  %629 = vmatpush.bf16.msrb.mxu1 %v6966_v30  ;;  %v8612_v7 = vld [vmem:[%s11662_s0 + $0x54] sm:$0xf0]  ;;  %v6779_v10 = vld [vmem:[%s11662_s0 + $0x58] sm:$0xf0]  ;;  %v540_v19 = vand.u32 %v7046_v11, %v9036_v5  ;;  %v8661_v22 = vld [vmem:[%s11662_s0 + $0x1dc] sm:$0xf0] }
  0x20   :  { %v6778_v16 = vor.u32 %v8612_v7, %v6777_v6  ;;  %v6782_v17 = vor.u32 %v8604_v9, %v6779_v10  ;;  %v543_v20 = vand.u32 %v7050_v12, %v9036_v5  ;;  %v8653_v23 = vld [vmem:[%s11662_s0 + $0x1a4] sm:$0xf]  ;;  %v546_v24 = vand.u32 %v7054_v14, %v9036_v5  ;;  %v6985_v27 = vld [vmem:[%s11662_s0 + $0x1a8] sm:$0xf]  ;;  %v8654_v29 = vld [vmem:[%s11662_s0 + $0x1ac] sm:$0xf] }
  0x21   :  { %642 = vmatpush.bf16.msrb.mxu2 %v6970_v31  ;;  %655 = vmatpush.bf16.msrb.mxu3 %v6974_v35  ;;  %v6979_v25 = vld [vmem:[%s11662_s0 + $0x1e0] sm:$0xf0]  ;;  %v8662_v28 = vld [vmem:[%s11662_s0 + $0x1e4] sm:$0xf0]  ;;  %v6987_v30 = vld [vmem:[%s11662_s0 + $0x1e8] sm:$0xf0]  ;;  %v6978_v31 = vor.u32 %v8661_v22, %v6977_v21 }
  0x22   :  { %v6982_v32 = vor.u32 %v8653_v23, %v6979_v25  ;;  %v6986_v33 = vor.u32 %v8662_v28, %v6985_v27  ;;  %v6913_v34 = vld [vmem:[%s11662_s0 + $0x120] sm:$0xf]  ;;  %v8637_v36 = vld [vmem:[%s11662_s0 + $0x124] sm:$0xf]  ;;  %v6990_v37 = vor.u32 %v8654_v29, %v6987_v30  ;;  %v6921_v39 = vld [vmem:[%s11662_s0 + $0x128] sm:$0xf] }
  0x23   :  { %617 = vmatpush.bf16.msrb.mxu0 %v6898_v41  ;;  %630 = vmatpush.bf16.msrb.mxu1 %v6902_v44  ;;  %v8645_v35 = vld [vmem:[%s11662_s0 + $0x15c] sm:$0xf0]  ;;  %v6915_v38 = vld [vmem:[%s11662_s0 + $0x160] sm:$0xf0]  ;;  %v8646_v40 = vld [vmem:[%s11662_s0 + $0x164] sm:$0xf0] }
  0x24   :  { %v8638_v41 = vld [vmem:[%s11662_s0 + $0x12c] sm:$0xf]  ;;  %v6914_v43 = vor.u32 %v8645_v35, %v6913_v34  ;;  %v6849_v44 = vld [vmem:[%s11662_s0 + $0xa0] sm:$0xf]  ;;  %v6918_v46 = vor.u32 %v8637_v36, %v6915_v38  ;;  %v6922_v47 = vor.u32 %v8646_v40, %v6921_v39  ;;  %v8621_v48 = vld [vmem:[%s11662_s0 + $0xa4] sm:$0xf] }
  0x25   :  { %643 = vmatpush.bf16.msrb.mxu2 %v6906_v45  ;;  %656 = vmatpush.bf16.msrb.mxu3 %v6910_v49  ;;  %v6923_v42 = vld [vmem:[%s11662_s0 + $0x168] sm:$0xf0]  ;;  %v8629_v45 = vld [vmem:[%s11662_s0 + $0xdc] sm:$0xf0]  ;;  %v6851_v49 = vld [vmem:[%s11662_s0 + $0xe0] sm:$0xf0] }
  0x26   :  { %v6857_v50 = vld [vmem:[%s11662_s0 + $0xa8] sm:$0xf]  ;;  %v6926_v51 = vor.u32 %v8638_v41, %v6923_v42  ;;  %v8622_v53 = vld [vmem:[%s11662_s0 + $0xac] sm:$0xf]  ;;  %v6785_v55 = vld [vmem:[%s11662_s0 + $0x20] sm:$0xf]  ;;  %v6850_v60 = vor.u32 %v8629_v45, %v6849_v44  ;;  %v6854_v0 = vor.u32 %v8621_v48, %v6851_v49 }
  0x27   :  { %618 = vmatpush.bf16.msrb.mxu0 %v6834_v58  ;;  %631 = vmatpush.bf16.msrb.mxu1 %v6838_v62  ;;  %v8630_v52 = vld [vmem:[%s11662_s0 + $0xe4] sm:$0xf0]  ;;  %v6859_v54 = vld [vmem:[%s11662_s0 + $0xe8] sm:$0xf0]  ;;  %v8613_v56 = vld [vmem:[%s11662_s0 + $0x5c] sm:$0xf0] }
  0x28   :  { %v7057_v57 = vld [vmem:[%s11662_s0 + $0x230] sm:$0xf]  ;;  %v8671_v59 = vld [vmem:[%s11662_s0 + $0x234] sm:$0xf]  ;;  %v7065_v62 = vld [vmem:[%s11662_s0 + $0x238] sm:$0xf]  ;;  %v6858_v1 = vor.u32 %v8630_v52, %v6857_v50  ;;  %v6862_v6 = vor.u32 %v8622_v53, %v6859_v54 }
  0x29   :  { %644 = vmatpush.bf16.msrb.mxu2 %v6842_v63  ;;  %657 = vmatpush.bf16.msrb.mxu3 %v6846_v3  ;;  %v8679_v58 = vld [vmem:[%s11662_s0 + $0x26c] sm:$0x30]  ;;  %v7059_v61 = vld [vmem:[%s11662_s0 + $0x270] sm:$0x30]  ;;  %v8680_v63 = vld [vmem:[%s11662_s0 + $0x274] sm:$0x30] }
  0x2a   :  { %v8605_v2 = vld [vmem:[%s11662_s0 + $0x24] sm:$0xf]  ;;  %v8672_v3 = vld [vmem:[%s11662_s0 + $0x23c] sm:$0xf]  ;;  %v6793_v8 = vld [vmem:[%s11662_s0 + $0x28] sm:$0xf]  ;;  %v7058_v10 = vor.u32 %v8679_v58, %v7057_v57  ;;  %v7066_v14 = vor.u32 %v8680_v63, %v7065_v62 }
  0x2b   :  { %619 = vmatpush.bf16.msrb.mxu0 %v6770_v13  ;;  %632 = vmatpush.bf16.msrb.mxu1 %v6774_v15  ;;  %v7067_v4 = vld [vmem:[%s11662_s0 + $0x278] sm:$0x30]  ;;  %v6787_v7 = vld [vmem:[%s11662_s0 + $0x60] sm:$0xf0]  ;;  %v8614_v9 = vld [vmem:[%s11662_s0 + $0x64] sm:$0xf0]  ;;  %v7062_v13 = vor.u32 %v8671_v59, %v7059_v61  ;;  %v6786_v15 = vor.u32 %v8613_v56, %v6785_v55 }
  0x2c   :  { %v8606_v11 = vld [vmem:[%s11662_s0 + $0x2c] sm:$0xf]  ;;  %v549_v21 = vand.u32 %v7058_v10, %v9036_v5  ;;  %v8932_v22 = vmov 0   ;;  %v6993_v25 = vld [vmem:[%s11662_s0 + $0x1b0] sm:$0xf]  ;;  %s8937_s26 = smov 100  }
  0x2d   :  { %645 = vmatpush.bf16.msrb.mxu2 %v6778_v16  ;;  %658 = vmatpush.bf16.msrb.mxu3 %v6782_v17  ;;  %v6795_v12 = vld [vmem:[%s11662_s0 + $0x68] sm:$0xf0]  ;;  %v7070_v16 = vor.u32 %v8672_v3, %v7067_v4  ;;  %v6790_v17 = vor.u32 %v8605_v2, %v6787_v7  ;;  %v552_v23 = vand.u32 %v7062_v13, %v9036_v5  ;;  %v8663_v27 = vld [vmem:[%s11662_s0 + $0x1ec] sm:$0xf0]  ;;  %v8655_v28 = vld [vmem:[%s11662_s0 + $0x1b4] sm:$0xf] }
  0x2e   :  { %7075 = vmatmul.msk.bf16.vlgmr.msrb.gmra.mxu0 %vm504_vm2, %v9205_v26  ;;  %7076 = vmatmul.msk.bf16.vlgmr.msrb.gmra.mxu1 %vm504_vm2, %v9205_v26  ;;  %v6995_v30 = vld [vmem:[%s11662_s0 + $0x1f0] sm:$0xf0]  ;;  %v6994_v34 = vor.u32 %v8663_v27, %v6993_v25  ;;  %v8647_v38 = vld [vmem:[%s11662_s0 + $0x16c] sm:$0xf0]  ;;  %v6937_v42 = vld [vmem:[%s11662_s0 + $0x138] sm:$0xf] }
  0x2f   :  { %667 = vmatpush.bf16.msra.mxu0 %v537_v18  ;;  %680 = vmatpush.bf16.msra.mxu1 %v540_v19  ;;  %v6794_v18 = vor.u32 %v8614_v9, %v6793_v8  ;;  %v780_v19 = vld [vmem:[%s11664_s2] sm:$0xff]  ;;  %v558_v29 = vand.u32 %v7070_v16, %v9036_v5  ;;  %v6998_v35 = vor.u32 %v8655_v28, %v6995_v30  ;;  %v8639_v39 = vld [vmem:[%s11662_s0 + $0x134] sm:$0xf]  ;;  %v8640_v44 = vld [vmem:[%s11662_s0 + $0x13c] sm:$0xf]  ;;  %s8938_s2 = smov 98  }
  0x30   :  { %7077 = vmatmul.msk.bf16.vlgmr.msrb.gmra.mxu2 %vm504_vm2, %v9205_v26  ;;  %7078 = vmatmul.msk.bf16.vlgmr.msrb.gmra.mxu3 %vm504_vm2, %v9205_v26  ;;  %v6931_v41 = vld [vmem:[%s11662_s0 + $0x170] sm:$0xf0]  ;;  %v6939_v45 = vld [vmem:[%s11662_s0 + $0x178] sm:$0xf0]  ;;  %v6865_v49 = vld [vmem:[%s11662_s0 + $0xb0] sm:$0xf] }
  0x31   :  { %693 = vmatpush.bf16.msra.mxu2 %v543_v20  ;;  %706 = vmatpush.bf16.msra.mxu3 %v546_v24  ;;  %v6798_v20 = vor.u32 %v8606_v11, %v6795_v12  ;;  %v555_v24 = vand.u32 %v7066_v14, %v9036_v5  ;;  %v7003_v5 = vld [vmem:[%s11662_s0 + $0x1f8] sm:$0xf0]  ;;  %v8631_v50 = vld [vmem:[%s11662_s0 + $0xec] sm:$0xf0]  ;;  %v6942_v52 = vor.u32 %v8640_v44, %v6939_v45  ;;  %v6867_v53 = vld [vmem:[%s11662_s0 + $0xf0] sm:$0xf0] }
  0x32   :  { %8928 = vset.pattern.permute.xlu0 %v8932_v22  ;;  %8929 = vset.pattern.permute.xlu1 %v8932_v22  ;;  %v6873_v54 = vld [vmem:[%s11662_s0 + $0xb8] sm:$0xf]  ;;  %v8624_v56 = vld [vmem:[%s11662_s0 + $0xbc] sm:$0xf]  ;;  %v6866_v58 = vor.u32 %v8631_v50, %v6865_v49  ;;  %v6801_v61 = vld [vmem:[%s11662_s0 + $0x30] sm:$0xf] }
  0x33   :  { %668 = vmatpush.bf16.msra.mxu0 %v6978_v31  ;;  %681 = vmatpush.bf16.msra.mxu1 %v6982_v32  ;;  %v7001_v31 = vld [vmem:[%s11662_s0 + $0x1b8] sm:$0xf]  ;;  %v6875_v57 = vld [vmem:[%s11662_s0 + $0xf8] sm:$0xf0]  ;;  %v8615_v62 = vld [vmem:[%s11662_s0 + $0x6c] sm:$0xf0] }
  0x34   :  { %783 = vperm.xlu0 %8928, %v780_v19   ;;  %v8664_v32 = vld [vmem:[%s11662_s0 + $0x1f4] sm:$0xf0]  ;;  %8930 = vset.pattern.permute.xlu2 %v8932_v22  ;;  %v8607_v63 = vld [vmem:[%s11662_s0 + $0x34] sm:$0xf]  ;;  %v8608_v4 = vld [vmem:[%s11662_s0 + $0x3c] sm:$0xf]  ;;  %v6802_v7 = vor.u32 %v8615_v62, %v6801_v61 }
  0x35   :  { %694 = vmatpush.bf16.msra.mxu2 %v6986_v33  ;;  %707 = vmatpush.bf16.msra.mxu3 %v6990_v37  ;;  %v8656_v33 = vld [vmem:[%s11662_s0 + $0x1bc] sm:$0xf]  ;;  %v7002_v36 = vor.u32 %v8664_v32, %v7001_v31  ;;  %v6929_v37 = vld [vmem:[%s11662_s0 + $0x130] sm:$0xf]  ;;  %v8632_v55 = vld [vmem:[%s11662_s0 + $0xf4] sm:$0xf0] }
  0x36   :  { %v7006_v40 = vor.u32 %v8656_v33, %v7003_v5  ;;  %v6809_v2 = vld [vmem:[%s11662_s0 + $0x38] sm:$0xf]  ;;  %s8939_s27 = smov 96   ;;  %s8940_s28 = smov 94   ;;  %vm823_vm4 = vcmask 64512   ;;  %vm952_vm5 = vcmask 1014784  }
  0x37   :  { %669 = vmatpush.bf16.msra.mxu0 %v6914_v43  ;;  %682 = vmatpush.bf16.msra.mxu1 %v6918_v46  ;;  %v8648_v43 = vld [vmem:[%s11662_s0 + $0x174] sm:$0xf0]  ;;  %v6930_v46 = vor.u32 %v8647_v38, %v6929_v37  ;;  %s8941_s29 = smov 92   ;;  %s8942_s30 = smov 72   ;;  %vm820_vm6 = vcmask 1031168   ;;  %vm1029_vm7 = vcmask 998400  }
  0x38   :  { %v6938_v48 = vor.u32 %v8648_v43, %v6937_v42  ;;  %v8616_v3 = vld [vmem:[%s11662_s0 + $0x74] sm:$0xf0]  ;;  %s8943_s12 = smov 70   ;;  %s8944_s15 = smov 68   ;;  %vm1106_vm8 = vcmask 982016   ;;  %vm1183_vm9 = vcmask 818176  }
  0x39   :  { %695 = vmatpush.bf16.msra.mxu2 %v6922_v47  ;;  %708 = vmatpush.bf16.msra.mxu3 %v6926_v51  ;;  %v6934_v47 = vor.u32 %v8639_v39, %v6931_v41  ;;  %v8623_v51 = vld [vmem:[%s11662_s0 + $0xb4] sm:$0xf]  ;;  %v6810_v9 = vor.u32 %v8616_v3, %v6809_v2  ;;  %s8945_s16 = smov 66   ;;  %s8946_s17 = smov 64   ;;  %vm1260_vm10 = vcmask 801792   ;;  %vm1337_vm11 = vcmask 785408  }
  0x3a   :  { %v6870_v59 = vor.u32 %v8623_v51, %v6867_v53  ;;  %s8947_s18 = smov 44   ;;  %s8948_s1 = smov 42   ;;  %vm1491_vm12 = vcmask 752640   ;;  %vm1414_vm13 = vcmask 769024   ;;  %vm1568_vm14 = vcmask 588800  }
  0x3b   :  { %670 = vmatpush.bf16.msra.mxu0 %v6850_v60  ;;  %683 = vmatpush.bf16.msra.mxu1 %v6854_v0  ;;  %v6874_v60 = vor.u32 %v8632_v55, %v6873_v54  ;;  %v6878_v0 = vor.u32 %v8624_v56, %v6875_v57  ;;  %s8949_s21 = smov 40   ;;  %s8953_s13 = smov 14   ;;  %vm1645_vm15 = vcmask 572416   ;;  %vm1799_vm0 = vcmask 539648  }
  0x3c   :  { %s8955_s22 = smov 10   ;;  %vm1722_vm1 = vcmask 556032   ;;  %s8964_s20 = smov 32  }
  0x3d   :  { %696 = vmatpush.bf16.msra.mxu2 %v6858_v1  ;;  %709 = vmatpush.bf16.msra.mxu3 %v6862_v6  ;;  %v6803_v1 = vld [vmem:[%s11662_s0 + $0x70] sm:$0xf0]  ;;  %v6811_v6 = vld [vmem:[%s11662_s0 + $0x78] sm:$0xf0]  ;;  %s8933_s0 = smov 124  }
  0x3e   :  { %v6806_v8 = vor.u32 %v8607_v63, %v6803_v1  ;;  %v6814_v10 = vor.u32 %v8608_v4, %v6811_v6 }
  0x3f   :  { %671 = vmatpush.bf16.msra.mxu0 %v6786_v15  ;;  %684 = vmatpush.bf16.msra.mxu1 %v6790_v17 }
  0x41   :  { %697 = vmatpush.bf16.msra.mxu2 %v6794_v18  ;;  %710 = vmatpush.bf16.msra.mxu3 %v6798_v20 }
  0x42   :  { %7079 = vmatmul.msk.bf16.vlgmr.msra.gmra.mxu0 %vm504_vm2, %v9205_v26  ;;  %7080 = vmatmul.msk.bf16.vlgmr.msra.gmra.mxu1 %vm504_vm2, %v9205_v26 }
  0x43   :  { %719 = vmatpush.bf16.msrb.mxu0 %v549_v21  ;;  %732 = vmatpush.bf16.msrb.mxu1 %v552_v23 }
  0x44   :  { %7081 = vmatmul.msk.bf16.vlgmr.msra.gmra.mxu2 %vm504_vm2, %v9205_v26  ;;  %7082 = vmatmul.msk.bf16.vlgmr.msra.gmra.mxu3 %vm504_vm2, %v9205_v26 }
  0x45   :  { %745 = vmatpush.bf16.msrb.mxu2 %v555_v24  ;;  %758 = vmatpush.bf16.msrb.mxu3 %v558_v29 }
  0x47   :  { %720 = vmatpush.bf16.msrb.mxu0 %v6994_v34  ;;  %733 = vmatpush.bf16.msrb.mxu1 %v6998_v35 }
  0x49   :  { %746 = vmatpush.bf16.msrb.mxu2 %v7002_v36  ;;  %759 = vmatpush.bf16.msrb.mxu3 %v7006_v40 }
  0x4b   :  { %721 = vmatpush.bf16.msrb.mxu0 %v6930_v46  ;;  %734 = vmatpush.bf16.msrb.mxu1 %v6934_v47 }
  0x4d   :  { %747 = vmatpush.bf16.msrb.mxu2 %v6938_v48  ;;  %760 = vmatpush.bf16.msrb.mxu3 %v6942_v52 }
  0x4f   :  { %722 = vmatpush.bf16.msrb.mxu0 %v6866_v58  ;;  %735 = vmatpush.bf16.msrb.mxu1 %v6870_v59 }
  0x51   :  { %748 = vmatpush.bf16.msrb.mxu2 %v6874_v60  ;;  %761 = vmatpush.bf16.msrb.mxu3 %v6878_v0 }
  0x53   :  { %723 = vmatpush.bf16.msrb.mxu0 %v6802_v7  ;;  %736 = vmatpush.bf16.msrb.mxu1 %v6806_v8 }
  0x55   :  { %749 = vmatpush.bf16.msrb.mxu2 %v6810_v9  ;;  %762 = vmatpush.bf16.msrb.mxu3 %v6814_v10  ;;  %v9629_v9 = vld [vmem:[%s11665_s3] sm:$0xff] }
  0x56   :  { %7083 = vmatmul.msk.bf16.vlgmr.msrb.gmra.mxu0 %vm504_vm2, %v9205_v26  ;;  %7084 = vmatmul.msk.bf16.vlgmr.msrb.gmra.mxu1 %vm504_vm2, %v9205_v26 }
  0x58   :  { %7085 = vmatmul.msk.bf16.vlgmr.msrb.gmra.mxu2 %vm504_vm2, %v9205_v26  ;;  %7086 = vmatmul.msk.bf16.vlgmr.msrb.gmra.mxu3 %vm504_vm2, %v9205_v26  ;;  %vm1876_vm2 = vcmask 523264  }
  0x97   :  { %v569_v11 = vpop.f32.mrf.mxu0  ;;  %v582_v12 = vpop.f32.mrf.mxu1 }
  0x9f   :  { %v595_v13 = vpop.f32.mrf.mxu2  ;;  %v608_v14 = vpop.f32.mrf.mxu3 }
  0xa0   :  { %v571_v15 = vpop.f32.mrf.mxu0  ;;  %v584_v16 = vpop.f32.mrf.mxu1 }
  0xa6   :  { %v784_v40 = vpop.permute.xlu0 %783 }
  0xa7   :  { %v597_v17 = vpop.f32.mrf.mxu2  ;;  %v610_v18 = vpop.f32.mrf.mxu3 }
  0xa8   :  { %v8682_v18 = vld [vmem:[%s11665_s3 + $0x8] sm:$0xff] }
  0xab   :  { %v621_v19 = vpop.f32.mrf.mxu0  ;;  %v634_v20 = vpop.f32.mrf.mxu1 }
  0xac   :  { %v768_v35 = vmax.f32 %v569_v11, %v621_v19  ;;  %v769_v38 = vmax.f32 %v582_v12, %v634_v20 }
  0xb3   :  { %v647_v21 = vpop.f32.mrf.mxu2  ;;  %v660_v22 = vpop.f32.mrf.mxu3 }
  0xb4   :  { %v623_v23 = vpop.f32.mrf.mxu0  ;;  %v636_v24 = vpop.f32.mrf.mxu1  ;;  %v770_v47 = vmax.f32 %v595_v13, %v647_v21  ;;  %v771_v52 = vmax.f32 %v608_v14, %v660_v22 }
  0xbb   :  { %v649_v25 = vpop.f32.mrf.mxu2  ;;  %v662_v27 = vpop.f32.mrf.mxu3 }
  0xbf   :  { %v673_v28 = vpop.f32.mrf.mxu0  ;;  %v686_v29 = vpop.f32.mrf.mxu1 }
  0xc7   :  { %v699_v30 = vpop.f32.mrf.mxu2  ;;  %v712_v26 = vpop.f32.mrf.mxu3 }
  0xc8   :  { %v675_v31 = vpop.f32.mrf.mxu0  ;;  %v688_v32 = vpop.f32.mrf.mxu1 }
  0xcf   :  { %v701_v33 = vpop.f32.mrf.mxu2  ;;  %v714_v5 = vpop.f32.mrf.mxu3 }
  0xd0   :  { %v9681_v33 = vld [vmem:[%s11665_s3 + $0x10] sm:$0xff] }
  0xd3   :  { %v725_v34 = vpop.f32.mrf.mxu0  ;;  %v738_v37 = vpop.f32.mrf.mxu1 }
  0xd4   :  { %v772_v36 = vmax.f32 %v673_v28, %v725_v34  ;;  %v773_v39 = vmax.f32 %v686_v29, %v738_v37 }
  0xd6   :  { %v776_v41 = vmax.f32 %v768_v35, %v772_v36  ;;  %v777_v42 = vmax.f32 %v769_v38, %v773_v39 }
  0xd8   :  { %v786_v43 = vadd.f32 %v784_v40, %v776_v41  ;;  %v787_v44 = vadd.f32 %v784_v40, %v777_v42 }
  0xda   :  { %v790_v45 = vmax.f32 %v786_v43, 0.0  ;;  %v791_v48 = vmax.f32 %v787_v44, 0.0 }
  0xdb   :  { %v751_v46 = vpop.f32.mrf.mxu2  ;;  %v764_v50 = vpop.f32.mrf.mxu3 }
  0xdc   :  { %v774_v49 = vmax.f32 %v699_v30, %v751_v46  ;;  %v727_v51 = vpop.f32.mrf.mxu0  ;;  %v775_v53 = vmax.f32 %v712_v26, %v764_v50  ;;  %v740_v54 = vpop.f32.mrf.mxu1  ;;  %v794_v55 = vpack.c.bf16 %v791_v48, %v790_v45 }
  0xde   :  { %v778_v56 = vmax.f32 %v770_v47, %v774_v49  ;;  %v779_v57 = vmax.f32 %v771_v52, %v775_v53  ;;  %v808_v58 = vunpack.c.l.b16 %v794_v55  ;;  %v809_v4 = vunpack.c.h.b16 %v794_v55  ;;  %v8684_v49 = vld [vmem:[%s11665_s3 + $0x18] sm:$0xff] }
  0xe0   :  { %v788_v59 = vadd.f32 %v784_v40, %v778_v56  ;;  %v789_v60 = vadd.f32 %v784_v40, %v779_v57  ;;  %v9568_v61 = vpack.c.b16 %v808_v58, %v808_v58  ;;  %v9581_v8 = vpack.c.b16 %v809_v4, %v809_v4 }
  0xe2   :  { %v792_v62 = vmax.f32 %v788_v59, 0.0  ;;  %v793_v63 = vmax.f32 %v789_v60, 0.0  ;;  %946 = vrot.lane.b32.xlu2 %v9568_v61, %s8933_s0  ;;  %814 = vrot.lane.b32.xlu1 %v9568_v61, %s8934_s23  ;;  %v888_v2 = vsel %vm827_vm3, %v9568_v61, 0  ;;  %v891_v24 = vsel %vm827_vm3, %v9581_v8, 0 }
  0xe3   :  { %v753_v0 = vpop.f32.mrf.mxu2  ;;  %v766_v1 = vpop.f32.mrf.mxu3  ;;  %903 = vmatpush.bf16.msra.mxu3 %v888_v2  ;;  %v8686_v2 = vld [vmem:[%s11665_s3 + $0x28] sm:$0xff] }
  0xe4   :  { %v9576_v3 = vpack.c.bf16 %v793_v63, %v792_v62 }
  0xe6   :  { %v810_v6 = vunpack.c.l.b16 %v9576_v3  ;;  %7100 = vmatmul.msk.bf16.vlgmr.msra.gmra.mxu3 %vm823_vm4, %v9629_v9  ;;  %v2332_v42 = vunpack.c.h.b16 %v9576_v3 }
  0xe8   :  { %v9579_v7 = vpack.c.b16 %v810_v6, %v810_v6  ;;  %v9712_v52 = vpack.c.b16 %v2332_v42, %v2332_v42  ;;  %v8689_v42 = vld [vmem:[%s11665_s3 + $0x40] sm:$0xff] }
  0xea   :  { %818 = vrot.lane.b32.xlu0 %v9579_v7, %s8934_s23  ;;  %948 = vrot.lane.b32.xlu2 %v9581_v8, %s8933_s0  ;;  %v894_v25 = vsel %vm827_vm3, %v9579_v7, 0 }
  0xeb   :  { %816 = vrot.lane.b32.xlu1 %v9581_v8, %s8934_s23 }
  0xf2   :  { %950 = vrot.lane.b32.xlu0 %v9579_v7, %s8933_s0  ;;  %1027 = vrot.lane.b32.xlu2 %v9579_v7, %s8935_s24 }
  0xf3   :  { %1025 = vrot.lane.b32.xlu1 %v9581_v8, %s8935_s24 }
  0xfa   :  { %1023 = vrot.lane.b32.xlu0 %v9568_v61, %s8935_s24  ;;  %1100 = vrot.lane.b32.xlu2 %v9568_v61, %s8936_s25  ;;  %s8956_s24 = smov 8  }
  0xfb   :  { %1104 = vrot.lane.b32.xlu1 %v9579_v7, %s8936_s25 }
 0x102   :  { %1102 = vrot.lane.b32.xlu0 %v9581_v8, %s8936_s25  ;;  %1179 = vrot.lane.b32.xlu2 %v9581_v8, %s8937_s26 }
 0x103   :  { %1177 = vrot.lane.b32.xlu1 %v9568_v61, %s8937_s26 }
 0x10a   :  { %1254 = vrot.lane.b32.xlu0 %v9568_v61, %s8938_s2  ;;  %1181 = vrot.lane.b32.xlu2 %v9579_v7, %s8937_s26 }
 0x10b   :  { %1256 = vrot.lane.b32.xlu1 %v9581_v8, %s8938_s2 }
 0x112   :  { %1258 = vrot.lane.b32.xlu0 %v9579_v7, %s8938_s2  ;;  %1335 = vrot.lane.b32.xlu2 %v9579_v7, %s8939_s27  ;;  %s8950_s2 = smov 38  }
 0x113   :  { %1333 = vrot.lane.b32.xlu1 %v9581_v8, %s8939_s27 }
 0x11a   :  { %1331 = vrot.lane.b32.xlu0 %v9568_v61, %s8939_s27  ;;  %1408 = vrot.lane.b32.xlu2 %v9568_v61, %s8940_s28  ;;  %s8951_s27 = smov 36  }
 0x11b   :  { %1412 = vrot.lane.b32.xlu1 %v9579_v7, %s8940_s28 }
 0x122   :  { %1410 = vrot.lane.b32.xlu0 %v9581_v8, %s8940_s28  ;;  %1487 = vrot.lane.b32.xlu2 %v9581_v8, %s8941_s29 }
 0x123   :  { %1485 = vrot.lane.b32.xlu1 %v9568_v61, %s8941_s29 }
 0x12a   :  { %1562 = vrot.lane.b32.xlu0 %v9568_v61, %s8942_s30  ;;  %1489 = vrot.lane.b32.xlu2 %v9579_v7, %s8941_s29  ;;  %s8969_s29 = smov 24  }
 0x12b   :  { %1564 = vrot.lane.b32.xlu1 %v9581_v8, %s8942_s30 }
 0x132   :  { %1566 = vrot.lane.b32.xlu0 %v9579_v7, %s8942_s30  ;;  %1643 = vrot.lane.b32.xlu2 %v9579_v7, %s8943_s12 }
 0x133   :  { %1641 = vrot.lane.b32.xlu1 %v9581_v8, %s8943_s12 }
 0x13a   :  { %1639 = vrot.lane.b32.xlu0 %v9568_v61, %s8943_s12  ;;  %1716 = vrot.lane.b32.xlu2 %v9568_v61, %s8944_s15  ;;  %s8952_s12 = smov 16  }
 0x13b   :  { %1720 = vrot.lane.b32.xlu1 %v9579_v7, %s8944_s15 }
 0x13c   :  { %v947_v10 = vpop.permute.xlu2 %946 }
 0x142   :  { %1718 = vrot.lane.b32.xlu0 %v9581_v8, %s8944_s15  ;;  %1795 = vrot.lane.b32.xlu2 %v9581_v8, %s8945_s16 }
 0x143   :  { %1793 = vrot.lane.b32.xlu1 %v9568_v61, %s8945_s16 }
 0x144   :  { %v949_v11 = vpop.permute.xlu2 %948 }
 0x145   :  { %v953_v14 = vsel %vm952_vm5, %v947_v10, %v949_v11  ;;  %v8685_v10 = vld [vmem:[%s11665_s3 + $0x20] sm:$0xff] }
 0x146   :  { %v959_v19 = vsel %vm827_vm3, %v953_v14, 0 }
 0x14a   :  { %1870 = vrot.lane.b32.xlu0 %v9568_v61, %s8946_s17  ;;  %1797 = vrot.lane.b32.xlu2 %v9579_v7, %s8945_s16  ;;  %s8959_s16 = smov 60  }
 0x14b   :  { %1872 = vrot.lane.b32.xlu1 %v9581_v8, %s8946_s17 }
 0x14c   :  { %v1028_v13 = vpop.permute.xlu2 %1027 }
 0x14d   :  { %v1042_v5 = vsel %vm827_vm3, %v1028_v13, 0 }
 0x152   :  { %1874 = vrot.lane.b32.xlu0 %v9579_v7, %s8946_s17  ;;  %1951 = vrot.lane.b32.xlu2 %v9579_v7, %s8947_s18 }
 0x153   :  { %1949 = vrot.lane.b32.xlu1 %v9581_v8, %s8947_s18 }
 0x154   :  { %v815_v12 = vpop.permute.xlu1 %814  ;;  %v1101_v27 = vpop.permute.xlu2 %1100 }
 0x15a   :  { %1947 = vrot.lane.b32.xlu0 %v9568_v61, %s8947_s18  ;;  %2024 = vrot.lane.b32.xlu2 %v9568_v61, %s8948_s1  ;;  %s8954_s18 = smov 12  }
 0x15b   :  { %2028 = vrot.lane.b32.xlu1 %v9579_v7, %s8948_s1 }
 0x15c   :  { %v819_v15 = vpop.permute.xlu0 %818  ;;  %v1180_v36 = vpop.permute.xlu2 %1179 }
 0x15d   :  { %v835_v16 = vsel %vm827_vm3, %v819_v15, 0  ;;  %v817_v17 = vpop.permute.xlu1 %816 }
 0x15e   :  { %872 = vmatpush.bf16.msra.mxu2 %v835_v16  ;;  %v821_v20 = vsel %vm820_vm6, %v815_v12, %v817_v17  ;;  %v822_v21 = vsel %vm820_vm6, %v817_v17, %v819_v15 }
 0x15f   :  { %v829_v22 = vsel %vm827_vm3, %v821_v20, 0  ;;  %v832_v23 = vsel %vm827_vm3, %v822_v21, 0  ;;  %v8687_v20 = vld [vmem:[%s11665_s3 + $0x30] sm:$0xff] }
 0x160   :  { %844 = vmatpush.bf16.msra.mxu0 %v829_v22  ;;  %858 = vmatpush.bf16.msra.mxu1 %v832_v23 }
 0x161   :  { %7095 = vmatmul.msk.bf16.vlgmr.msra.gmra.mxu2 %vm823_vm4, %v8682_v18 }
 0x162   :  { %974 = vmatpush.bf16.msrb.mxu2 %v959_v19  ;;  %2026 = vrot.lane.b32.xlu0 %v9581_v8, %s8948_s1 }
 0x163   :  { %2103 = vrot.lane.b32.xlu2 %v9581_v8, %s8949_s21  ;;  %2101 = vrot.lane.b32.xlu1 %v9568_v61, %s8949_s21 }
 0x164   :  { %917 = vmatpush.bf16.msrb.mxu0 %v891_v24  ;;  %931 = vmatpush.bf16.msrb.mxu1 %v894_v25  ;;  %v951_v28 = vpop.permute.xlu0 %950  ;;  %v1182_v50 = vpop.permute.xlu2 %1181 }
 0x165   :  { %7093 = vmatmul.msk.bf16.vlgmr.msra.gmra.mxu0 %vm823_vm4, %v8682_v18  ;;  %7094 = vmatmul.msk.bf16.vlgmr.msra.gmra.mxu1 %vm823_vm4, %v8682_v18  ;;  %v954_v29 = vsel %vm952_vm5, %v949_v11, %v951_v28  ;;  %v965_v30 = vsel %vm827_vm3, %v951_v28, 0  ;;  %v1026_v26 = vpop.permute.xlu1 %1025  ;;  %v1185_v57 = vsel %vm1183_vm9, %v1180_v36, %v1182_v50  ;;  %v1196_v60 = vsel %vm827_vm3, %v1182_v50, 0 }
 0x166   :  { %v962_v31 = vsel %vm827_vm3, %v954_v29, 0  ;;  %v1031_v32 = vsel %vm1029_vm7, %v1026_v26, %v1028_v13  ;;  %v1193_v59 = vsel %vm827_vm3, %v1185_v57, 0  ;;  %vm1953_vm5 = vcmask 359424  }
 0x167   :  { %v1039_v34 = vsel %vm827_vm3, %v1031_v32, 0  ;;  %988 = vmatpush.bf16.msrb.mxu3 %v962_v31 }
 0x168   :  { %1002 = vmatpush.bf16.msra.mxu0 %v965_v30  ;;  %1065 = vmatpush.bf16.msra.mxu2 %v1039_v34 }
 0x16a   :  { %2178 = vrot.lane.b32.xlu0 %v9568_v61, %s8950_s2  ;;  %7110 = vmatmul.msk.bf16.vlgmr.msrb.gmra.mxu3 %vm823_vm4, %v9681_v33 }
 0x16b   :  { %1079 = vmatpush.bf16.msra.mxu3 %v1042_v5  ;;  %2105 = vrot.lane.b32.xlu2 %v9579_v7, %s8949_s21  ;;  %s8965_s21 = smov 80  }
 0x16c   :  { %2180 = vrot.lane.b32.xlu1 %v9581_v8, %s8950_s2  ;;  %v1024_v35 = vpop.permute.xlu0 %1023  ;;  %v1336_v58 = vpop.permute.xlu2 %1335 }
 0x16d   :  { %v1030_v37 = vsel %vm1029_vm7, %v1024_v35, %v1026_v26  ;;  %v1105_v38 = vpop.permute.xlu1 %1104  ;;  %v1350_v3 = vsel %vm827_vm3, %v1336_v58, 0  ;;  %v8688_v26 = vld [vmem:[%s11665_s3 + $0x38] sm:$0xff]  ;;  %vm2107_vm7 = vcmask 326656  }
 0x16e   :  { %v1036_v39 = vsel %vm827_vm3, %v1030_v37, 0  ;;  %v1119_v40 = vsel %vm827_vm3, %v1105_v38, 0 }
 0x16f   :  { %1051 = vmatpush.bf16.msra.mxu1 %v1036_v39 }
 0x171   :  { %7109 = vmatmul.msk.bf16.vlgmr.msrb.gmra.mxu2 %vm823_vm4, %v9681_v33 }
 0x172   :  { %1156 = vmatpush.bf16.msrb.mxu2 %v1119_v40  ;;  %2182 = vrot.lane.b32.xlu0 %v9579_v7, %s8950_s2 }
 0x173   :  { %2259 = vrot.lane.b32.xlu2 %v9579_v7, %s8951_s27 }
 0x174   :  { %2257 = vrot.lane.b32.xlu1 %v9581_v8, %s8951_s27  ;;  %v1103_v41 = vpop.permute.xlu0 %1102  ;;  %v1409_v4 = vpop.permute.xlu2 %1408 }
 0x175   :  { %7101 = vmatmul.msk.bf16.vlgmr.msrb.gmra.mxu0 %vm823_vm4, %v9629_v9  ;;  %7102 = vmatmul.msk.bf16.vlgmr.msrb.gmra.mxu1 %vm823_vm4, %v9629_v9  ;;  %v1107_v43 = vsel %vm1106_vm8, %v1101_v27, %v1103_v41  ;;  %v1108_v44 = vsel %vm1106_vm8, %v1103_v41, %v1105_v38  ;;  %v1178_v45 = vpop.permute.xlu1 %1177 }
 0x176   :  { %v1113_v46 = vsel %vm827_vm3, %v1107_v43, 0  ;;  %v1116_v47 = vsel %vm827_vm3, %v1108_v44, 0  ;;  %v1184_v48 = vsel %vm1183_vm9, %v1178_v45, %v1180_v36 }
 0x177   :  { %v1190_v51 = vsel %vm827_vm3, %v1184_v48, 0  ;;  %1128 = vmatpush.bf16.msrb.mxu0 %v1113_v46  ;;  %1142 = vmatpush.bf16.msrb.mxu1 %v1116_v47 }
 0x178   :  { %1205 = vmatpush.bf16.msrb.mxu3 %v1190_v51  ;;  %v8691_v51 = vld [vmem:[%s11665_s3 + $0x50] sm:$0xff] }
 0x17a   :  { %2255 = vrot.lane.b32.xlu0 %v9568_v61, %s8951_s27  ;;  %7120 = vmatmul.msk.bf16.vlgmr.msra.gmra.mxu3 %vm823_vm4, %v8684_v49 }
 0x17b   :  { %2340 = vrot.lane.b32.xlu2 %v9712_v52, %s8952_s12 }
 0x17c   :  { %2338 = vrot.lane.b32.xlu1 %v9579_v7, %s8952_s12  ;;  %v1255_v53 = vpop.permute.xlu0 %1254  ;;  %v1488_v16 = vpop.permute.xlu2 %1487 }
 0x17d   :  { %v1257_v54 = vpop.permute.xlu1 %1256 }
 0x17e   :  { %v1261_v55 = vsel %vm1260_vm10, %v1255_v53, %v1257_v54 }
 0x17f   :  { %v1267_v56 = vsel %vm827_vm3, %v1261_v55, 0 }
 0x181   :  { %7119 = vmatmul.msk.bf16.vlgmr.msra.gmra.mxu2 %vm823_vm4, %v8684_v49 }
 0x182   :  { %1282 = vmatpush.bf16.msra.mxu2 %v1267_v56  ;;  %2334 = vrot.lane.b32.xlu0 %v9568_v61, %s8952_s12 }
 0x183   :  { %2414 = vrot.lane.b32.xlu2 %v9568_v61, %s8953_s13 }
 0x184   :  { %2336 = vrot.lane.b32.xlu1 %v9581_v8, %s8952_s12  ;;  %v1259_v62 = vpop.permute.xlu0 %1258  ;;  %v1490_v31 = vpop.permute.xlu2 %1489 }
 0x185   :  { %7111 = vmatmul.msk.bf16.vlgmr.msra.gmra.mxu0 %vm823_vm4, %v9681_v33  ;;  %7118 = vmatmul.msk.bf16.vlgmr.msra.gmra.mxu1 %vm823_vm4, %v8684_v49  ;;  %v1262_v63 = vsel %vm1260_vm10, %v1257_v54, %v1259_v62  ;;  %v1334_v0 = vpop.permute.xlu1 %1333  ;;  %v1273_v14 = vsel %vm827_vm3, %v1259_v62, 0  ;;  %v1493_v34 = vsel %vm1491_vm12, %v1488_v16, %v1490_v31  ;;  %v1504_v38 = vsel %vm827_vm3, %v1490_v31, 0 }
 0x186   :  { %1219 = vmatpush.bf16.msra.mxu0 %v1193_v59  ;;  %1233 = vmatpush.bf16.msra.mxu1 %v1196_v60  ;;  %v1270_v1 = vsel %vm827_vm3, %v1262_v63, 0  ;;  %v1339_v11 = vsel %vm1337_vm11, %v1334_v0, %v1336_v58  ;;  %v1501_v37 = vsel %vm827_vm3, %v1493_v34, 0  ;;  %v8692_v63 = vld [vmem:[%s11665_s3 + $0x58] sm:$0xff]  ;;  %vm2030_vm10 = vcmask 343040  }
 0x187   :  { %1296 = vmatpush.bf16.msra.mxu3 %v1270_v1  ;;  %v1347_v12 = vsel %vm827_vm3, %v1339_v11, 0 }
 0x18a   :  { %2416 = vrot.lane.b32.xlu0 %v9581_v8, %s8953_s13  ;;  %7136 = vmatmul.msk.bf16.vlgmr.msrb.gmra.mxu3 %vm823_vm4, %v8686_v2 }
 0x18b   :  { %1387 = vmatpush.bf16.msrb.mxu3 %v1350_v3  ;;  %2496 = vrot.lane.b32.xlu2 %v9581_v8, %s8954_s18  ;;  %v905_v3 = vpop.f32.mrf.mxu3 }
 0x18c   :  { %v1332_v6 = vpop.permute.xlu0 %1331  ;;  %2494 = vrot.lane.b32.xlu1 %v9568_v61, %s8954_s18  ;;  %v1644_v36 = vpop.permute.xlu2 %1643 }
 0x18d   :  { %v1413_v9 = vpop.permute.xlu1 %1412  ;;  %v1338_v13 = vsel %vm1337_vm11, %v1332_v6, %v1334_v0  ;;  %v1658_v39 = vsel %vm827_vm3, %v1644_v36, 0  ;;  %vm2184_vm11 = vcmask 310272  }
 0x18e   :  { %v1344_v17 = vsel %vm827_vm3, %v1338_v13, 0  ;;  %v1427_v23 = vsel %vm827_vm3, %v1413_v9, 0 }
 0x191   :  { %7129 = vmatmul.msk.bf16.vlgmr.msrb.gmra.mxu2 %vm823_vm4, %v8685_v10 }
 0x192   :  { %1373 = vmatpush.bf16.msrb.mxu2 %v1347_v12  ;;  %2418 = vrot.lane.b32.xlu0 %v9579_v7, %s8953_s13 }
 0x193   :  { %2498 = vrot.lane.b32.xlu2 %v9579_v7, %s8954_s18 }
 0x194   :  { %v1411_v15 = vpop.permute.xlu0 %1410  ;;  %2420 = vrot.lane.b32.xlu1 %v9712_v52, %s8953_s13  ;;  %v1717_v41 = vpop.permute.xlu2 %1716 }
 0x195   :  { %7127 = vmatmul.msk.bf16.vlgmr.msrb.gmra.mxu0 %vm823_vm4, %v8685_v10  ;;  %7128 = vmatmul.msk.bf16.vlgmr.msrb.gmra.mxu1 %vm823_vm4, %v8685_v10  ;;  %v1486_v18 = vpop.permute.xlu1 %1485  ;;  %v1415_v24 = vsel %vm1414_vm13, %v1409_v4, %v1411_v15  ;;  %v1416_v25 = vsel %vm1414_vm13, %v1411_v15, %v1413_v9  ;;  %vm2422_vm13 = vcmask 113664  }
 0x196   :  { %1310 = vmatpush.bf16.msrb.mxu0 %v1273_v14  ;;  %1359 = vmatpush.bf16.msrb.mxu1 %v1344_v17  ;;  %v1492_v19 = vsel %vm1491_vm12, %v1486_v18, %v1488_v16  ;;  %v1421_v27 = vsel %vm827_vm3, %v1415_v24, 0  ;;  %v1424_v29 = vsel %vm827_vm3, %v1416_v25, 0  ;;  %vm2261_vm12 = vcmask 293888  }
 0x197   :  { %v1498_v21 = vsel %vm827_vm3, %v1492_v19, 0  ;;  %v907_v19 = vpop.f32.mrf.mxu3 }
 0x19a   :  { %2576 = vrot.lane.b32.xlu0 %v9581_v8, %s8955_s22  ;;  %7146 = vmatmul.msk.bf16.vlgmr.msra.gmra.mxu3 %vm823_vm4, %v8687_v20 }
 0x19b   :  { %1513 = vmatpush.bf16.msra.mxu3 %v1498_v21  ;;  %2500 = vrot.lane.b32.xlu2 %v9712_v52, %s8954_s18 }
 0x19c   :  { %v1563_v22 = vpop.permute.xlu0 %1562  ;;  %2578 = vrot.lane.b32.xlu1 %v9579_v7, %s8955_s22  ;;  %v1796_v50 = vpop.permute.xlu2 %1795 }
 0x19d   :  { %v1565_v30 = vpop.permute.xlu1 %1564 }
 0x19e   :  { %v1569_v33 = vsel %vm1568_vm14, %v1563_v22, %v1565_v30 }
 0x19f   :  { %v1575_v35 = vsel %vm827_vm3, %v1569_v33, 0 }
 0x1a1   :  { %7145 = vmatmul.msk.bf16.vlgmr.msra.gmra.mxu2 %vm823_vm4, %v8687_v20 }
 0x1a2   :  { %1464 = vmatpush.bf16.msra.mxu2 %v1427_v23  ;;  %2574 = vrot.lane.b32.xlu0 %v9568_v61, %s8955_s22 }
 0x1a3   :  { %2658 = vrot.lane.b32.xlu2 %v9579_v7, %s8956_s24 }
 0x1a4   :  { %v1567_v28 = vpop.permute.xlu0 %1566  ;;  %2580 = vrot.lane.b32.xlu1 %v9712_v52, %s8955_s22  ;;  %v1798_v1 = vpop.permute.xlu2 %1797  ;;  %s8966_s22 = smov 28  }
 0x1a5   :  { %7137 = vmatmul.msk.bf16.vlgmr.msra.gmra.mxu0 %vm823_vm4, %v8686_v2  ;;  %7138 = vmatmul.msk.bf16.vlgmr.msra.gmra.mxu1 %vm823_vm4, %v8686_v2  ;;  %v1570_v7 = vsel %vm1568_vm14, %v1565_v30, %v1567_v28  ;;  %v1642_v5 = vpop.permute.xlu1 %1641  ;;  %v1581_v47 = vsel %vm827_vm3, %v1567_v28, 0  ;;  %v1801_v9 = vsel %vm1799_vm0, %v1796_v50, %v1798_v1  ;;  %v1812_v17 = vsel %vm827_vm3, %v1798_v1, 0 }
 0x1a6   :  { %1436 = vmatpush.bf16.msra.mxu0 %v1421_v27  ;;  %1450 = vmatpush.bf16.msra.mxu1 %v1424_v29  ;;  %v1578_v32 = vsel %vm827_vm3, %v1570_v7, 0  ;;  %v1647_v43 = vsel %vm1645_vm15, %v1642_v5, %v1644_v36  ;;  %v1809_v15 = vsel %vm827_vm3, %v1801_v9, 0  ;;  %v8693_v29 = vld [vmem:[%s11665_s3 + $0x60] sm:$0xff]  ;;  %v8696_v9 = vld [vmem:[%s11665_s3 + $0x78] sm:$0xff]  ;;  %vm2342_vm14 = vcmask 130048  }
 0x1a7   :  { %v1655_v45 = vsel %vm827_vm3, %v1647_v43, 0 }
 0x1aa   :  { %2660 = vrot.lane.b32.xlu0 %v9712_v52, %s8956_s24  ;;  %7156 = vmatmul.msk.bf16.vlgmr.msrb.gmra.mxu3 %vm823_vm4, %v8688_v26 }
 0x1ab   :  { %1604 = vmatpush.bf16.msrb.mxu3 %v1578_v32  ;;  %2656 = vrot.lane.b32.xlu2 %v9581_v8, %s8956_s24  ;;  %v8690_v8 = vld [vmem:[%s11665_s3 + $0x48] sm:$0xff] }
 0x1ac   :  { %2654 = vrot.lane.b32.xlu1 %v9568_v61, %s8956_s24  ;;  %v1640_v61 = vpop.permute.xlu0 %1639  ;;  %v1952_v13 = vpop.permute.xlu2 %1951 }
 0x1ad   :  { %v1721_v40 = vpop.permute.xlu1 %1720  ;;  %v1646_v46 = vsel %vm1645_vm15, %v1640_v61, %v1642_v5  ;;  %v1966_v23 = vsel %vm827_vm3, %v1952_v13, 0  ;;  %vm2502_vm15 = vcmask 97280  }
 0x1ae   :  { %v1652_v49 = vsel %vm827_vm3, %v1646_v46, 0  ;;  %v1735_v55 = vsel %vm827_vm3, %v1721_v40, 0 }
 0x1b1   :  { %7155 = vmatmul.msk.bf16.vlgmr.msrb.gmra.mxu2 %vm823_vm4, %v8688_v26 }
 0x1b2   :  { %1590 = vmatpush.bf16.msrb.mxu2 %v1575_v35 }
 0x1b4   :  { %v1719_v44 = vpop.permute.xlu0 %1718  ;;  %v2025_v27 = vpop.permute.xlu2 %2024 }
 0x1b5   :  { %7147 = vmatmul.msk.bf16.vlgmr.msrb.gmra.mxu0 %vm823_vm4, %v8687_v20  ;;  %7154 = vmatmul.msk.bf16.vlgmr.msrb.gmra.mxu1 %vm823_vm4, %v8688_v26  ;;  %v1794_v48 = vpop.permute.xlu1 %1793  ;;  %v1723_v56 = vsel %vm1722_vm1, %v1717_v41, %v1719_v44  ;;  %v1724_v57 = vsel %vm1722_vm1, %v1719_v44, %v1721_v40  ;;  %v9842_v20 = vld [vmem:[%s11665_s3 + $0x68] sm:$0xff]  ;;  %v9859_v41 = vld [vmem:[%s11665_s3 + $0x70] sm:$0xff] }
 0x1b6   :  { %1527 = vmatpush.bf16.msrb.mxu0 %v1501_v37  ;;  %1541 = vmatpush.bf16.msrb.mxu1 %v1504_v38  ;;  %v1800_v52 = vsel %vm1799_vm0, %v1794_v48, %v1796_v50  ;;  %v1729_v58 = vsel %vm827_vm3, %v1723_v56, 0  ;;  %v1732_v60 = vsel %vm827_vm3, %v1724_v57, 0  ;;  %vm2582_vm0 = vcmask 80896  }
 0x1b7   :  { %v1806_v53 = vsel %vm827_vm3, %v1800_v52, 0 }
 0x1ba   :  { %7172 = vmatmul.msk.bf16.vlgmr.msra.gmra.mxu3 %vm823_vm4, %v8690_v8 }
 0x1bb   :  { %1695 = vmatpush.bf16.msra.mxu3 %v1658_v39 }
 0x1bc   :  { %v1871_v54 = vpop.permute.xlu0 %1870 }
 0x1bd   :  { %v1873_v62 = vpop.permute.xlu1 %1872  ;;  %v2104_v40 = vpop.permute.xlu2 %2103 }
 0x1be   :  { %v1877_v4 = vsel %vm1876_vm2, %v1871_v54, %v1873_v62 }
 0x1bf   :  { %v1883_v10 = vsel %vm827_vm3, %v1877_v4, 0 }
 0x1c1   :  { %7165 = vmatmul.msk.bf16.vlgmr.msra.gmra.mxu2 %vm823_vm4, %v8689_v42 }
 0x1c2   :  { %1681 = vmatpush.bf16.msra.mxu2 %v1655_v45 }
 0x1c4   :  { %v1875_v59 = vpop.permute.xlu0 %1874 }
 0x1c5   :  { %7163 = vmatmul.msk.bf16.vlgmr.msra.gmra.mxu0 %vm823_vm4, %v8689_v42  ;;  %7164 = vmatmul.msk.bf16.vlgmr.msra.gmra.mxu1 %vm823_vm4, %v8689_v42  ;;  %v1878_v0 = vsel %vm1876_vm2, %v1873_v62, %v1875_v59  ;;  %v1950_v6 = vpop.permute.xlu1 %1949  ;;  %v1889_v36 = vsel %vm827_vm3, %v1875_v59, 0  ;;  %v2106_v59 = vpop.permute.xlu2 %2105 }
 0x1c6   :  { %1618 = vmatpush.bf16.msra.mxu0 %v1581_v47  ;;  %1667 = vmatpush.bf16.msra.mxu1 %v1652_v49  ;;  %v1886_v2 = vsel %vm827_vm3, %v1878_v0, 0  ;;  %v1955_v30 = vsel %vm1953_vm5, %v1950_v6, %v1952_v13 }
 0x1c7   :  { %v1963_v31 = vsel %vm827_vm3, %v1955_v30, 0 }
 0x1ca   :  { %7182 = vmatmul.msk.bf16.vlgmr.msrb.gmra.mxu3 %vm823_vm4, %v8691_v51 }
 0x1cb   :  { %1821 = vmatpush.bf16.msrb.mxu3 %v1806_v53 }
 0x1cc   :  { %v1948_v18 = vpop.permute.xlu0 %1947 }
 0x1cd   :  { %v2029_v24 = vpop.permute.xlu1 %2028  ;;  %v1954_v5 = vsel %vm1953_vm5, %v1948_v18, %v1950_v6  ;;  %v2260_v18 = vpop.permute.xlu2 %2259 }
 0x1d1   :  { %7181 = vmatmul.msk.bf16.vlgmr.msrb.gmra.mxu2 %vm823_vm4, %v8691_v51 }
 0x1d2   :  { %1772 = vmatpush.bf16.msrb.mxu2 %v1735_v55  ;;  %v2043_v55 = vsel %vm827_vm3, %v2029_v24, 0 }
 0x1d4   :  { %v2027_v7 = vpop.permute.xlu0 %2026 }
 0x1d5   :  { %7173 = vmatmul.msk.bf16.vlgmr.msrb.gmra.mxu0 %vm823_vm4, %v8690_v8  ;;  %7174 = vmatmul.msk.bf16.vlgmr.msrb.gmra.mxu1 %vm823_vm4, %v8690_v8  ;;  %v2102_v37 = vpop.permute.xlu1 %2101  ;;  %v1960_v8 = vsel %vm827_vm3, %v1954_v5, 0  ;;  %v2031_v56 = vsel %vm2030_vm10, %v2025_v27, %v2027_v7  ;;  %v2120_v5 = vsel %vm827_vm3, %v2106_v59, 0 }
 0x1d6   :  { %1744 = vmatpush.bf16.msrb.mxu0 %v1729_v58  ;;  %1758 = vmatpush.bf16.msrb.mxu1 %v1732_v60  ;;  %v2108_v43 = vsel %vm2107_vm7, %v2102_v37, %v2104_v40  ;;  %v2032_v60 = vsel %vm2030_vm10, %v2027_v7, %v2029_v24  ;;  %v2037_v0 = vsel %vm827_vm3, %v2031_v56, 0 }
 0x1d7   :  { %v2114_v46 = vsel %vm827_vm3, %v2108_v43, 0  ;;  %v2040_v4 = vsel %vm827_vm3, %v2032_v60, 0 }
 0x1da   :  { %7192 = vmatmul.msk.bf16.vlgmr.msra.gmra.mxu3 %vm823_vm4, %v8692_v63 }
 0x1db   :  { %1912 = vmatpush.bf16.msra.mxu3 %v1886_v2 }
 0x1dc   :  { %v2179_v47 = vpop.permute.xlu0 %2178 }
 0x1de   :  { %v2181_v53 = vpop.permute.xlu1 %2180 }
 0x1e1   :  { %7191 = vmatmul.msk.bf16.vlgmr.msra.gmra.mxu2 %vm823_vm4, %v8692_v63 }
 0x1e2   :  { %v846_v11 = vpop.f32.mrf.mxu0  ;;  %v860_v12 = vpop.f32.mrf.mxu1  ;;  %1898 = vmatpush.bf16.msra.mxu2 %v1883_v10 }
 0x1e3   :  { %v906_v14 = vadd.f32 %v905_v3, %v846_v11 }
 0x1e4   :  { %v874_v16 = vpop.f32.mrf.mxu2  ;;  %v9869_v1 = vpop.permute.xlu0 %2182 }
 0x1e5   :  { %7183 = vmatmul.msk.bf16.vlgmr.msra.gmra.mxu0 %vm823_vm4, %v8691_v51  ;;  %7190 = vmatmul.msk.bf16.vlgmr.msra.gmra.mxu1 %vm823_vm4, %v8692_v63  ;;  %v2186_v11 = vsel %vm2184_vm11, %v2181_v53, %v9869_v1  ;;  %v2197_v56 = vsel %vm827_vm3, %v9869_v1, 0 }
 0x1e6   :  { %1835 = vmatpush.bf16.msra.mxu0 %v1809_v15  ;;  %1849 = vmatpush.bf16.msra.mxu1 %v1812_v17  ;;  %v2194_v15 = vsel %vm827_vm3, %v2186_v11, 0 }
 0x1ea   :  { %v848_v21 = vpop.f32.mrf.mxu0  ;;  %v862_v22 = vpop.f32.mrf.mxu1  ;;  %7208 = vmatmul.msk.bf16.vlgmr.msrb.gmra.mxu3 %vm823_vm4, %v9842_v20 }
 0x1eb   :  { %v908_v25 = vadd.f32 %v907_v19, %v848_v21  ;;  %2003 = vmatpush.bf16.msrb.mxu3 %v1966_v23 }
 0x1ec   :  { %v876_v28 = vpop.f32.mrf.mxu2  ;;  %v2256_v24 = vpop.permute.xlu0 %2255 }
 0x1ed   :  { %v990_v26 = vpop.f32.mrf.mxu3 }
 0x1f1   :  { %7201 = vmatmul.msk.bf16.vlgmr.msrb.gmra.mxu2 %vm823_vm4, %v8693_v29 }
 0x1f2   :  { %v919_v32 = vpop.f32.mrf.mxu0  ;;  %v933_v33 = vpop.f32.mrf.mxu1  ;;  %1989 = vmatpush.bf16.msrb.mxu2 %v1963_v31 }
 0x1f3   :  { %v920_v34 = vadd.f32 %v919_v32, %v860_v12  ;;  %v934_v35 = vadd.f32 %v933_v33, %v874_v16  ;;  %v2258_v12 = vpop.permute.xlu1 %2257 }
 0x1f4   :  { %v976_v61 = vpop.f32.mrf.mxu2 }
 0x1f5   :  { %v1010_v38 = vadd.f32 %v990_v26, %v920_v34  ;;  %7199 = vmatmul.msk.bf16.vlgmr.msrb.gmra.mxu0 %vm823_vm4, %v8693_v29  ;;  %v1009_v39 = vadd.f32 %v976_v61, %v906_v14  ;;  %7200 = vmatmul.msk.bf16.vlgmr.msrb.gmra.mxu1 %vm823_vm4, %v8693_v29  ;;  %v992_v42 = vpop.f32.mrf.mxu3  ;;  %v2274_v61 = vsel %vm827_vm3, %v2260_v18, 0 }
 0x1f6   :  { %1926 = vmatpush.bf16.msrb.mxu0 %v1889_v36  ;;  %1975 = vmatpush.bf16.msrb.mxu1 %v1960_v8  ;;  %v9897_v36 = vld [vmem:[%s11665_s3 + $0x88] sm:$0xff]  ;;  %v2335_v8 = vpop.permute.xlu0 %2334 }
 0x1fa   :  { %v921_v44 = vpop.f32.mrf.mxu0  ;;  %v935_v45 = vpop.f32.mrf.mxu1  ;;  %7218 = vmatmul.msk.bf16.vlgmr.msra.gmra.mxu3 %vm823_vm4, %v9859_v41 }
 0x1fb   :  { %v922_v48 = vadd.f32 %v921_v44, %v862_v22  ;;  %v936_v49 = vadd.f32 %v935_v45, %v876_v28  ;;  %2129 = vmatpush.bf16.msra.mxu3 %v2114_v46  ;;  %v2185_v22 = vsel %vm2184_vm11, %v2179_v47, %v2181_v53  ;;  %v9887_v29 = vpop.permute.xlu1 %2338  ;;  %v8697_v46 = vld [vmem:[%s11665_s3 + $0x80] sm:$0xff]  ;;  %v2263_v47 = vsel %vm2261_vm12, %v2258_v12, %v2260_v18 }
 0x1fc   :  { %v978_v51 = vpop.f32.mrf.mxu2  ;;  %v2191_v27 = vsel %vm827_vm3, %v2185_v22, 0 }
 0x1fd   :  { %v1013_v50 = vadd.f32 %v992_v42, %v922_v48  ;;  %v1012_v52 = vadd.f32 %v978_v51, %v908_v25  ;;  %v1081_v54 = vpop.f32.mrf.mxu3  ;;  %v2109_v25 = vsel %vm2107_vm7, %v2104_v40, %v2106_v59 }
 0x1fe   :  { %v2117_v31 = vsel %vm827_vm3, %v2109_v25, 0 }
 0x201   :  { %7217 = vmatmul.msk.bf16.vlgmr.msra.gmra.mxu2 %vm823_vm4, %v9859_v41 }
 0x202   :  { %v1004_v57 = vpop.f32.mrf.mxu0  ;;  %v1053_v58 = vpop.f32.mrf.mxu1  ;;  %2080 = vmatpush.bf16.msra.mxu2 %v2043_v55 }
 0x203   :  { %v1011_v62 = vadd.f32 %v1004_v57, %v934_v35  ;;  %v1086_v63 = vadd.f32 %v1053_v58, %v1009_v39  ;;  %v2341_v35 = vpop.permute.xlu2 %2340  ;;  %v2337_v42 = vpop.permute.xlu1 %2336 }
 0x204   :  { %v1067_v3 = vpop.f32.mrf.mxu2  ;;  %v9909_v57 = vpop.permute.xlu0 %2416 }
 0x205   :  { %v1088_v2 = vadd.f32 %v1081_v54, %v1011_v62  ;;  %7209 = vmatmul.msk.bf16.vlgmr.msra.gmra.mxu0 %vm823_vm4, %v9842_v20  ;;  %v1087_v6 = vadd.f32 %v1067_v3, %v1010_v38  ;;  %7210 = vmatmul.msk.bf16.vlgmr.msra.gmra.mxu1 %vm823_vm4, %v9842_v20  ;;  %v1083_v10 = vpop.f32.mrf.mxu3 }
 0x206   :  { %2052 = vmatpush.bf16.msra.mxu0 %v2037_v0  ;;  %2066 = vmatpush.bf16.msra.mxu1 %v2040_v4  ;;  %v9917_v0 = vld [vmem:[%s11665_s3 + $0x90] sm:$0xff] }
 0x20a   :  { %v1006_v13 = vpop.f32.mrf.mxu0  ;;  %v1055_v14 = vpop.f32.mrf.mxu1  ;;  %7228 = vmatmul.msk.bf16.vlgmr.msrb.gmra.mxu3 %vm823_vm4, %v8696_v9 }
 0x20b   :  { %v1014_v16 = vadd.f32 %v1006_v13, %v936_v49  ;;  %v1089_v17 = vadd.f32 %v1055_v14, %v1012_v52  ;;  %2220 = vmatpush.bf16.msrb.mxu3 %v2194_v15  ;;  %v2415_v49 = vpop.permute.xlu2 %2414  ;;  %v2262_v52 = vsel %vm2261_vm12, %v2256_v24, %v2258_v12  ;;  %v2345_v15 = vsel %vm2342_vm14, %v9887_v29, %v2341_v35 }
 0x20c   :  { %v1069_v20 = vpop.f32.mrf.mxu2  ;;  %v2268_v60 = vsel %vm827_vm3, %v2262_v52, 0  ;;  %v2356_v18 = vsel %vm827_vm3, %v2345_v15, 0 }
 0x20d   :  { %v1091_v19 = vadd.f32 %v1083_v10, %v1014_v16  ;;  %v1090_v21 = vadd.f32 %v1069_v20, %v1013_v50  ;;  %v1207_v23 = vpop.f32.mrf.mxu3  ;;  %v2271_v50 = vsel %vm827_vm3, %v2263_v47, 0 }
 0x211   :  { %7227 = vmatmul.msk.bf16.vlgmr.msrb.gmra.mxu2 %vm823_vm4, %v8696_v9 }
 0x212   :  { %v1130_v28 = vpop.f32.mrf.mxu0  ;;  %v1144_v26 = vpop.f32.mrf.mxu1  ;;  %2206 = vmatpush.bf16.msrb.mxu2 %v2191_v27 }
 0x213   :  { %v1163_v30 = vadd.f32 %v1130_v28, %v1086_v63  ;;  %v1164_v7 = vadd.f32 %v1144_v26, %v1087_v6  ;;  %v2495_v63 = vpop.permute.xlu1 %2494  ;;  %v2497_v4 = vpop.permute.xlu2 %2496 }
 0x214   :  { %v1158_v33 = vpop.f32.mrf.mxu2 }
 0x215   :  { %v1240_v32 = vadd.f32 %v1207_v23, %v1163_v30  ;;  %7219 = vmatmul.msk.bf16.vlgmr.msrb.gmra.mxu0 %vm823_vm4, %v9859_v41  ;;  %v1165_v34 = vadd.f32 %v1158_v33, %v1088_v2  ;;  %7226 = vmatmul.msk.bf16.vlgmr.msrb.gmra.mxu1 %vm823_vm4, %v8696_v9  ;;  %v1209_v37 = vpop.f32.mrf.mxu3  ;;  %v2423_v2 = vsel %vm2422_vm13, %v2415_v49, %v9909_v57 }
 0x216   :  { %2143 = vmatpush.bf16.msrb.mxu0 %v2117_v31  ;;  %2157 = vmatpush.bf16.msrb.mxu1 %v2120_v5  ;;  %v2430_v6 = vsel %vm827_vm3, %v2423_v2, 0 }
 0x21a   :  { %v1132_v38 = vpop.f32.mrf.mxu0  ;;  %v1146_v40 = vpop.f32.mrf.mxu1  ;;  %7244 = vmatmul.msk.bf16.vlgmr.msra.gmra.mxu3 %vm823_vm4, %v9897_v36 }
 0x21b   :  { %v1166_v39 = vadd.f32 %v1132_v38, %v1089_v17  ;;  %v1167_v41 = vadd.f32 %v1146_v40, %v1090_v21  ;;  %2311 = vmatpush.bf16.msra.mxu3 %v2274_v61  ;;  %v2421_v17 = vpop.permute.xlu1 %2420  ;;  %v2344_v21 = vsel %vm2342_vm14, %v2337_v42, %v9887_v29  ;;  %v9932_v25 = vpop.permute.xlu2 %2498  ;;  %v8700_v29 = vld [vmem:[%s11665_s3 + $0x98] sm:$0xff]  ;;  %v2503_v40 = vsel %vm2502_vm15, %v2495_v63, %v2497_v4 }
 0x21c   :  { %v1160_v44 = vpop.f32.mrf.mxu2  ;;  %v2353_v26 = vsel %vm827_vm3, %v2344_v21, 0  ;;  %v2419_v38 = vpop.permute.xlu0 %2418 }
 0x21d   :  { %v1243_v43 = vadd.f32 %v1209_v37, %v1166_v39  ;;  %v1168_v45 = vadd.f32 %v1160_v44, %v1091_v19  ;;  %v1298_v48 = vpop.f32.mrf.mxu3  ;;  %v2343_v19 = vsel %vm2342_vm14, %v2335_v8, %v2337_v42  ;;  %v2510_v42 = vsel %vm827_vm3, %v2503_v40, 0 }
 0x21e   :  { %v2350_v27 = vsel %vm827_vm3, %v2343_v19, 0 }
 0x221   :  { %7237 = vmatmul.msk.bf16.vlgmr.msra.gmra.mxu2 %vm823_vm4, %v8697_v46 }
 0x222   :  { %v1221_v51 = vpop.f32.mrf.mxu0  ;;  %v1235_v54 = vpop.f32.mrf.mxu1  ;;  %2297 = vmatpush.bf16.msra.mxu2 %v2271_v50 }
 0x223   :  { %v1241_v53 = vadd.f32 %v1221_v51, %v1164_v7  ;;  %v1242_v55 = vadd.f32 %v1235_v54, %v1165_v34  ;;  %v2579_v34 = vpop.permute.xlu1 %2578 }
 0x224   :  { %v1284_v59 = vpop.f32.mrf.mxu2  ;;  %v2577_v54 = vpop.permute.xlu0 %2576 }
 0x225   :  { %v1318_v58 = vadd.f32 %v1298_v48, %v1241_v53  ;;  %7235 = vmatmul.msk.bf16.vlgmr.msra.gmra.mxu0 %vm823_vm4, %v8697_v46  ;;  %v1317_v62 = vadd.f32 %v1284_v59, %v1240_v32  ;;  %7236 = vmatmul.msk.bf16.vlgmr.msra.gmra.mxu1 %vm823_vm4, %v8697_v46  ;;  %v1300_v1 = vpop.f32.mrf.mxu3  ;;  %v2504_v32 = vsel %vm2502_vm15, %v2497_v4, %v9932_v25  ;;  %v8701_v4 = vld [vmem:[%s11665_s3 + $0xa0] sm:$0xff] }
 0x226   :  { %2234 = vmatpush.bf16.msra.mxu0 %v2197_v56  ;;  %2283 = vmatpush.bf16.msra.mxu1 %v2268_v60  ;;  %v2513_v5 = vsel %vm827_vm3, %v2504_v32, 0  ;;  %v8702_v56 = vld [vmem:[%s11665_s3 + $0xa8] sm:$0xff] }
 0x22a   :  { %v1223_v3 = vpop.f32.mrf.mxu0  ;;  %v1237_v10 = vpop.f32.mrf.mxu1  ;;  %7254 = vmatmul.msk.bf16.vlgmr.msrb.gmra.mxu3 %vm823_vm4, %v9917_v0 }
 0x22b   :  { %v1244_v9 = vadd.f32 %v1223_v3, %v1167_v41  ;;  %v1245_v11 = vadd.f32 %v1237_v10, %v1168_v45  ;;  %2445 = vmatpush.bf16.msrb.mxu3 %v2430_v6  ;;  %v2425_v45 = vsel %vm2422_vm13, %v2419_v38, %v2421_v17  ;;  %v2581_v50 = vpop.permute.xlu1 %2580  ;;  %v2584_v6 = vsel %vm2582_vm0, %v2577_v54, %v2579_v34 }
 0x22c   :  { %v1286_v13 = vpop.f32.mrf.mxu2  ;;  %v2436_v53 = vsel %vm827_vm3, %v2425_v45, 0  ;;  %v2575_v10 = vpop.permute.xlu0 %2574 }
 0x22d   :  { %v1321_v12 = vadd.f32 %v1300_v1, %v1244_v9  ;;  %v1320_v14 = vadd.f32 %v1286_v13, %v1243_v43  ;;  %v1389_v16 = vpop.f32.mrf.mxu3  ;;  %v2424_v43 = vsel %vm2422_vm13, %v9909_v57, %v2419_v38 }
 0x22e   :  { %v2433_v49 = vsel %vm827_vm3, %v2424_v43, 0  ;;  %v8704_v43 = vld [vmem:[%s11665_s3 + $0xb8] sm:$0xff] }
 0x231   :  { %7253 = vmatmul.msk.bf16.vlgmr.msrb.gmra.mxu2 %vm823_vm4, %v9917_v0 }
 0x232   :  { %v1312_v20 = vpop.f32.mrf.mxu0  ;;  %v1361_v23 = vpop.f32.mrf.mxu1  ;;  %2393 = vmatpush.bf16.msrb.mxu2 %v2356_v18 }
 0x233   :  { %v1319_v22 = vadd.f32 %v1312_v20, %v1242_v55  ;;  %v1394_v24 = vadd.f32 %v1361_v23, %v1317_v62 }
 0x234   :  { %v1375_v30 = vpop.f32.mrf.mxu2 }
 0x235   :  { %v1396_v28 = vadd.f32 %v1389_v16, %v1319_v22  ;;  %7245 = vmatmul.msk.bf16.vlgmr.msrb.gmra.mxu0 %vm823_vm4, %v9897_v36  ;;  %v1395_v7 = vadd.f32 %v1375_v30, %v1318_v58  ;;  %7246 = vmatmul.msk.bf16.vlgmr.msrb.gmra.mxu1 %vm823_vm4, %v9897_v36  ;;  %v1391_v31 = vpop.f32.mrf.mxu3  ;;  %v2585_v58 = vsel %vm2582_vm0, %v2579_v34, %v2581_v50  ;;  %v2661_v30 = vpop.permute.xlu0 %2660 }
 0x236   :  { %2365 = vmatpush.bf16.msrb.mxu0 %v2350_v27  ;;  %2379 = vmatpush.bf16.msrb.mxu1 %v2353_v26  ;;  %v2596_v60 = vsel %vm827_vm3, %v2585_v58, 0 }
 0x23a   :  { %v1314_v33 = vpop.f32.mrf.mxu0  ;;  %v1363_v37 = vpop.f32.mrf.mxu1  ;;  %7264 = vmatmul.msk.bf16.vlgmr.msra.gmra.mxu3 %vm823_vm4, %v8700_v29 }
 0x23b   :  { %v1322_v35 = vadd.f32 %v1314_v33, %v1245_v11  ;;  %v1397_v36 = vadd.f32 %v1363_v37, %v1320_v14  ;;  %2539 = vmatpush.bf16.msra.mxu3 %v2513_v5  ;;  %v2583_v14 = vsel %vm2582_vm0, %v2575_v10, %v2577_v54 }
 0x23c   :  { %v1377_v8 = vpop.f32.mrf.mxu2  ;;  %v2590_v22 = vsel %vm827_vm3, %v2583_v14, 0 }
 0x23d   :  { %v1399_v61 = vadd.f32 %v1391_v31, %v1322_v35  ;;  %v1398_v39 = vadd.f32 %v1377_v8, %v1321_v12  ;;  %v1515_v41 = vpop.f32.mrf.mxu3  ;;  %v2593_v12 = vsel %vm827_vm3, %v2584_v6, 0 }
 0x241   :  { %7263 = vmatmul.msk.bf16.vlgmr.msra.gmra.mxu2 %vm823_vm4, %v8700_v29 }
 0x242   :  { %v1438_v44 = vpop.f32.mrf.mxu0  ;;  %v1452_v47 = vpop.f32.mrf.mxu1  ;;  %2525 = vmatpush.bf16.msra.mxu2 %v2510_v42 }
 0x243   :  { %v1471_v46 = vadd.f32 %v1438_v44, %v1394_v24  ;;  %v1472_v48 = vadd.f32 %v1452_v47, %v1395_v7 }
 0x244   :  { %v1466_v52 = vpop.f32.mrf.mxu2 }
 0x245   :  { %v1548_v51 = vadd.f32 %v1515_v41, %v1471_v46  ;;  %7255 = vmatmul.msk.bf16.vlgmr.msra.gmra.mxu0 %vm823_vm4, %v9917_v0  ;;  %v1473_v55 = vadd.f32 %v1466_v52, %v1396_v28  ;;  %7262 = vmatmul.msk.bf16.vlgmr.msra.gmra.mxu1 %vm823_vm4, %v8700_v29  ;;  %v9961_v57 = vpop.f32.mrf.mxu3  ;;  %v2501_v0 = vpop.permute.xlu2 %2500 }
 0x246   :  { %2459 = vmatpush.bf16.msra.mxu0 %v2433_v49  ;;  %2473 = vmatpush.bf16.msra.mxu1 %v2436_v53  ;;  %v2505_v11 = vsel %vm2502_vm15, %v9932_v25, %v2501_v0  ;;  %v8703_v25 = vld [vmem:[%s11665_s3 + $0xb0] sm:$0xff]  ;;  %v2655_v29 = vpop.permute.xlu1 %2654 }
 0x247   :  { %v2516_v18 = vsel %vm827_vm3, %v2505_v11, 0 }
 0x24a   :  { %v1440_v59 = vpop.f32.mrf.mxu0  ;;  %v1454_v63 = vpop.f32.mrf.mxu1  ;;  %7280 = vmatmul.msk.bf16.vlgmr.msrb.gmra.mxu3 %vm823_vm4, %v8702_v56 }
 0x24b   :  { %v9965_v62 = vadd.f32 %v1440_v59, %v1397_v36  ;;  %v9968_v1 = vadd.f32 %v1454_v63, %v1398_v39  ;;  %2633 = vmatpush.bf16.msrb.mxu3 %v2596_v60  ;;  %v8705_v60 = vld [vmem:[%s11665_s3 + $0xc0] sm:$0xff]  ;;  %s8967_s3 = smov 20  }
 0x24c   :  { %v1468_v2 = vpop.f32.mrf.mxu2 }
 0x24d   :  { %v9970_v3 = vadd.f32 %v1468_v2, %v1399_v61  ;;  %v1606_v9 = vpop.f32.mrf.mxu3  ;;  %v2659_v21 = vpop.permute.xlu2 %2658 }
 0x24e   :  { %v2665_v7 = vsel %vm823_vm4, %v2659_v21, %v2661_v30 }
 0x24f   :  { %v2676_v33 = vsel %vm827_vm3, %v2665_v7, 0 }
 0x251   :  { %7273 = vmatmul.msk.bf16.vlgmr.msrb.gmra.mxu2 %vm823_vm4, %v8701_v4 }
 0x252   :  { %v1529_v13 = vpop.f32.mrf.mxu0  ;;  %v1543_v16 = vpop.f32.mrf.mxu1  ;;  %2619 = vmatpush.bf16.msrb.mxu2 %v2593_v12 }
 0x253   :  { %v1549_v15 = vadd.f32 %v1529_v13, %v1472_v48  ;;  %v1550_v17 = vadd.f32 %v1543_v16, %v1473_v55 }
 0x254   :  { %v1592_v20 = vpop.f32.mrf.mxu2 }
 0x255   :  { %v1626_v19 = vadd.f32 %v1606_v9, %v1549_v15  ;;  %7271 = vmatmul.msk.bf16.vlgmr.msrb.gmra.mxu0 %vm823_vm4, %v8701_v4  ;;  %v1625_v23 = vadd.f32 %v1592_v20, %v1548_v51  ;;  %7272 = vmatmul.msk.bf16.vlgmr.msrb.gmra.mxu1 %vm823_vm4, %v8701_v4  ;;  %v9985_v24 = vpop.f32.mrf.mxu3  ;;  %v2657_v32 = vpop.permute.xlu2 %2656 }
 0x256   :  { %2553 = vmatpush.bf16.msrb.mxu0 %v2516_v18  ;;  %2605 = vmatpush.bf16.msrb.mxu1 %v2590_v22  ;;  %v2663_v5 = vsel %vm823_vm4, %v2655_v29, %v2657_v32  ;;  %v2664_v35 = vsel %vm823_vm4, %v2657_v32, %v2659_v21 }
 0x257   :  { %v2670_v61 = vsel %vm827_vm3, %v2663_v5, 0  ;;  %v2673_v40 = vsel %vm827_vm3, %v2664_v35, 0 }
 0x25a   :  { %v9990_v27 = vpop.f32.mrf.mxu0  ;;  %v9992_v28 = vpop.f32.mrf.mxu1  ;;  %7290 = vmatmul.msk.bf16.vlgmr.msra.gmra.mxu3 %vm823_vm4, %v8703_v25 }
 0x25c   :  { %v9995_v26 = vpop.f32.mrf.mxu2 }
 0x25d   :  { %v1697_v31 = vpop.f32.mrf.mxu3 }
 0x261   :  { %7289 = vmatmul.msk.bf16.vlgmr.msra.gmra.mxu2 %vm823_vm4, %v8703_v25 }
 0x262   :  { %v1620_v34 = vpop.f32.mrf.mxu0  ;;  %v1669_v38 = vpop.f32.mrf.mxu1  ;;  %2713 = vmatpush.bf16.msra.mxu2 %v2676_v33 }
 0x263   :  { %v1627_v37 = vadd.f32 %v1620_v34, %v1550_v17  ;;  %v1702_v36 = vadd.f32 %v1669_v38, %v1625_v23 }
 0x264   :  { %v1683_v39 = vpop.f32.mrf.mxu2 }
 0x265   :  { %v1704_v8 = vadd.f32 %v1697_v31, %v1627_v37  ;;  %7281 = vmatmul.msk.bf16.vlgmr.msra.gmra.mxu0 %vm823_vm4, %v8702_v56  ;;  %v1703_v41 = vadd.f32 %v1683_v39, %v1626_v19  ;;  %7282 = vmatmul.msk.bf16.vlgmr.msra.gmra.mxu1 %vm823_vm4, %v8702_v56  ;;  %v10006_v42 = vpop.f32.mrf.mxu3 }
 0x266   :  { %2685 = vmatpush.bf16.msra.mxu0 %v2670_v61  ;;  %2699 = vmatpush.bf16.msra.mxu1 %v2673_v40 }
 0x26a   :  { %v10011_v44 = vpop.f32.mrf.mxu0  ;;  %v10013_v45 = vpop.f32.mrf.mxu1  ;;  %7300 = vmatmul.msk.bf16.vlgmr.msrb.gmra.mxu3 %vm823_vm4, %v8704_v43 }
 0x26c   :  { %v10016_v46 = vpop.f32.mrf.mxu2 }
 0x26d   :  { %v1823_v47 = vpop.f32.mrf.mxu3 }
 0x271   :  { %7299 = vmatmul.msk.bf16.vlgmr.msrb.gmra.mxu2 %vm823_vm4, %v8704_v43 }
 0x272   :  { %v1746_v48 = vpop.f32.mrf.mxu0  ;;  %v1760_v50 = vpop.f32.mrf.mxu1 }
 0x273   :  { %v1779_v49 = vadd.f32 %v1746_v48, %v1702_v36  ;;  %v1780_v51 = vadd.f32 %v1760_v50, %v1703_v41 }
 0x274   :  { %v1774_v53 = vpop.f32.mrf.mxu2 }
 0x275   :  { %v1856_v52 = vadd.f32 %v1823_v47, %v1779_v49  ;;  %7291 = vmatmul.msk.bf16.vlgmr.msrb.gmra.mxu0 %vm823_vm4, %v8703_v25  ;;  %v1781_v54 = vadd.f32 %v1774_v53, %v1704_v8  ;;  %7298 = vmatmul.msk.bf16.vlgmr.msrb.gmra.mxu1 %vm823_vm4, %v8704_v43  ;;  %v10021_v55 = vpop.f32.mrf.mxu3 }
 0x27a   :  { %v10023_v56 = vpop.f32.mrf.mxu0  ;;  %v10025_v58 = vpop.f32.mrf.mxu1 }
 0x27c   :  { %v10027_v59 = vpop.f32.mrf.mxu2 }
 0x27d   :  { %v1914_v63 = vpop.f32.mrf.mxu3 }
 0x281   :  { %7309 = vmatmul.msk.bf16.vlgmr.msra.gmra.mxu2 %vm823_vm4, %v8705_v60 }
 0x282   :  { %v1837_v0 = vpop.f32.mrf.mxu0  ;;  %v1851_v4 = vpop.f32.mrf.mxu1 }
 0x283   :  { %v1857_v2 = vadd.f32 %v1837_v0, %v1780_v51  ;;  %v1858_v6 = vadd.f32 %v1851_v4, %v1781_v54 }
 0x284   :  { %v1900_v10 = vpop.f32.mrf.mxu2 }
 0x285   :  { %v1934_v9 = vadd.f32 %v1914_v63, %v1857_v2  ;;  %7307 = vmatmul.msk.bf16.vlgmr.msra.gmra.mxu0 %vm823_vm4, %v8705_v60  ;;  %v1933_v11 = vadd.f32 %v1900_v10, %v1856_v52  ;;  %7308 = vmatmul.msk.bf16.vlgmr.msra.gmra.mxu1 %vm823_vm4, %v8705_v60  ;;  %v10035_v12 = vpop.f32.mrf.mxu3  ;;  %vm6721_vm4 = vcmask 687104  }
 0x28a   :  { %v10037_v13 = vpop.f32.mrf.mxu0  ;;  %v10039_v14 = vpop.f32.mrf.mxu1 }
 0x28c   :  { %v10041_v15 = vpop.f32.mrf.mxu2 }
 0x28d   :  { %v2005_v16 = vpop.f32.mrf.mxu3 }
 0x292   :  { %v1928_v17 = vpop.f32.mrf.mxu0  ;;  %v1977_v19 = vpop.f32.mrf.mxu1 }
 0x293   :  { %v1935_v18 = vadd.f32 %v1928_v17, %v1858_v6  ;;  %v2010_v20 = vadd.f32 %v1977_v19, %v1933_v11 }
 0x294   :  { %v1991_v22 = vpop.f32.mrf.mxu2 }
 0x295   :  { %v2012_v21 = vadd.f32 %v2005_v16, %v1935_v18  ;;  %v2011_v23 = vadd.f32 %v1991_v22, %v1934_v9  ;;  %v10043_v25 = vpop.f32.mrf.mxu3 }
 0x29a   :  { %v10045_v30 = vpop.f32.mrf.mxu0  ;;  %v10047_v7 = vpop.f32.mrf.mxu1 }
 0x29c   :  { %v10049_v29 = vpop.f32.mrf.mxu2 }
 0x29d   :  { %v2131_v31 = vpop.f32.mrf.mxu3 }
 0x2a2   :  { %v2054_v32 = vpop.f32.mrf.mxu0  ;;  %v2068_v5 = vpop.f32.mrf.mxu1 }
 0x2a3   :  { %v2087_v33 = vadd.f32 %v2054_v32, %v2010_v20  ;;  %v2088_v34 = vadd.f32 %v2068_v5, %v2011_v23  ;;  %v1552_v23 = vadd.f32 %v9990_v27, %v9968_v1  ;;  %v1551_v5 = vadd.f32 %v9961_v57, %v9965_v62 }
 0x2a4   :  { %v2082_v35 = vpop.f32.mrf.mxu2 }
 0x2a5   :  { %v2089_v37 = vadd.f32 %v2082_v35, %v2012_v21  ;;  %v10051_v36 = vpop.f32.mrf.mxu3  ;;  %v1629_v35 = vadd.f32 %v9985_v24, %v1552_v23 }
 0x2aa   :  { %v2056_v38 = vpop.f32.mrf.mxu0  ;;  %v2070_v61 = vpop.f32.mrf.mxu1 }
 0x2ac   :  { %v10053_v8 = vpop.f32.mrf.mxu2 }
 0x2ad   :  { %v2222_v47 = vpop.f32.mrf.mxu3 }
 0x2b2   :  { %v2145_v39 = vpop.f32.mrf.mxu0  ;;  %v2159_v41 = vpop.f32.mrf.mxu1 }
 0x2b3   :  { %v2165_v40 = vadd.f32 %v2145_v39, %v2088_v34  ;;  %v10055_v43 = vadd.f32 %v2159_v41, %v2089_v37  ;;  %v1628_v34 = vadd.f32 %v9995_v26, %v1551_v5 }
 0x2b4   :  { %v2208_v48 = vpop.f32.mrf.mxu2 }
 0x2b5   :  { %v10061_v52 = vpop.f32.mrf.mxu3  ;;  %v1705_v39 = vadd.f32 %v10013_v45, %v1628_v34  ;;  %v2164_v34 = vadd.f32 %v2131_v31, %v2087_v33 }
 0x2b7   :  { %v1782_v1 = vadd.f32 %v10023_v56, %v1705_v39 }
 0x2b9   :  { %v1859_v45 = vadd.f32 %v10021_v55, %v1782_v1 }
 0x2ba   :  { %v2147_v49 = vpop.f32.mrf.mxu0  ;;  %v10057_v50 = vpop.f32.mrf.mxu1 }
 0x2bc   :  { %v10059_v51 = vpop.f32.mrf.mxu2 }
 0x2bd   :  { %v10063_v63 = vpop.f32.mrf.mxu3 }
 0x2c2   :  { %v2236_v53 = vpop.f32.mrf.mxu0  ;;  %v2285_v54 = vpop.f32.mrf.mxu1 }
 0x2c4   :  { %v2299_v60 = vpop.f32.mrf.mxu2 }
 0x2c5   :  { %v10071_v6 = vpop.f32.mrf.mxu3 }
 0x2c6   :  { %11674 = vst [vmem:[#allocation2_spill] sm:$0xff] %v10071_v6  ;;  %v1553_v6 = vadd.f32 %v9992_v28, %v9970_v3 }
 0x2c8   :  { %v1630_v62 = vadd.f32 %v10011_v44, %v1553_v6  ;;  %v2242_v6 = vadd.f32 %v2222_v47, %v2165_v40 }
 0x2ca   :  { %v10065_v0 = vpop.f32.mrf.mxu0  ;;  %v10067_v2 = vpop.f32.mrf.mxu1  ;;  %v1707_v5 = vadd.f32 %v10006_v42, %v1630_v62  ;;  %v2319_v1 = vadd.f32 %v2299_v60, %v2242_v6  ;;  %v2243_v62 = vadd.f32 %v2236_v53, %v10055_v43 }
 0x2cc   :  { %v10069_v4 = vpop.f32.mrf.mxu2  ;;  %v1784_v56 = vadd.f32 %v10027_v59, %v1707_v5  ;;  %v2320_v60 = vadd.f32 %v10063_v63, %v2243_v62 }
 0x2cd   :  { %v2447_v18 = vpop.f32.mrf.mxu3 }
 0x2ce   :  { %v1861_v55 = vadd.f32 %v10039_v14, %v1784_v56 }
 0x2d2   :  { %v2367_v9 = vpop.f32.mrf.mxu0  ;;  %v2381_v10 = vpop.f32.mrf.mxu1 }
 0x2d4   :  { %v10073_v11 = vpop.f32.mrf.mxu2 }
 0x2d5   :  { %v10085_v32 = vpop.f32.mrf.mxu3 }
 0x2da   :  { %v10075_v16 = vpop.f32.mrf.mxu0  ;;  %v10077_v17 = vpop.f32.mrf.mxu1 }
 0x2dc   :  { %v10079_v19 = vpop.f32.mrf.mxu2 }
 0x2dd   :  { %11675 = vst [vmem:[#allocation3_spill] sm:$0xff] %v10079_v19  ;;  %v1706_v19 = vadd.f32 %v10016_v46, %v1629_v35  ;;  %v2541_v26 = vpop.f32.mrf.mxu3  ;;  %v1936_v46 = vadd.f32 %v10041_v15, %v1859_v45  ;;  %v1938_v15 = vadd.f32 %v10045_v30, %v1861_v55 }
 0x2df   :  { %v1783_v57 = vadd.f32 %v10025_v58, %v1706_v19  ;;  %v2013_v58 = vadd.f32 %v10047_v7, %v1936_v46  ;;  %v2241_v19 = vadd.f32 %v2208_v48, %v2164_v34  ;;  %v2015_v40 = vadd.f32 %v10043_v25, %v1938_v15 }
 0x2e1   :  { %v1860_v24 = vadd.f32 %v10037_v13, %v1783_v57  ;;  %v2090_v35 = vadd.f32 %v2056_v38, %v2013_v58  ;;  %v2318_v39 = vadd.f32 %v2285_v54, %v2241_v19  ;;  %v2092_v30 = vadd.f32 %v10053_v8, %v2015_v40 }
 0x2e2   :  { %v2461_v20 = vpop.f32.mrf.mxu0  ;;  %v10081_v21 = vpop.f32.mrf.mxu1 }
 0x2e3   :  { %v1937_v28 = vadd.f32 %v10035_v12, %v1860_v24  ;;  %v2400_v31 = vadd.f32 %v2367_v9, %v2318_v39  ;;  %v2401_v12 = vadd.f32 %v2381_v10, %v2319_v1  ;;  %v2167_v7 = vadd.f32 %v10051_v36, %v2090_v35 }
 0x2e4   :  { %v2527_v22 = vpop.f32.mrf.mxu2  ;;  %v2169_v43 = vadd.f32 %v10057_v50, %v2092_v30  ;;  %v11677_v5 = vld [vmem:[#allocation3_spill] sm:$0xff] }
 0x2e5   :  { %v2014_v13 = vadd.f32 %v10049_v29, %v1937_v28  ;;  %v2543_v57 = vpop.f32.mrf.mxu3  ;;  %v2481_v29 = vadd.f32 %v2461_v20, %v2401_v12  ;;  %v2244_v14 = vadd.f32 %v10059_v51, %v2167_v7  ;;  %v2480_v38 = vadd.f32 %v2447_v18, %v2400_v31 }
 0x2e6   :  { %v2402_v51 = vadd.f32 %v10073_v11, %v2320_v60  ;;  %v2246_v8 = vadd.f32 %v10065_v0, %v2169_v43 }
 0x2e7   :  { %v2091_v42 = vadd.f32 %v2070_v61, %v2014_v13  ;;  %v2560_v54 = vadd.f32 %v2527_v22, %v2480_v38  ;;  %v2561_v9 = vadd.f32 %v2541_v26, %v2481_v29  ;;  %v2796_v29 = vld [vmem:[%s11666_s4] sm:$0xff] }
 0x2e8   :  { %v2482_v63 = vadd.f32 %v10081_v21, %v2402_v51 }
 0x2e9   :  { %v2168_v33 = vadd.f32 %v2147_v49, %v2091_v42  ;;  %v2321_v49 = vadd.f32 %v10067_v2, %v2244_v14  ;;  %v2797_v14 = vld [vmem:[%s11666_s4 + $0x8] sm:$0xff]  ;;  %s8957_s4 = smov 112  }
 0x2ea   :  { %v2463_v37 = vpop.f32.mrf.mxu0  ;;  %v10092_v41 = vpop.f32.mrf.mxu1 }
 0x2eb   :  { %v2245_v47 = vadd.f32 %v10061_v52, %v2168_v33  ;;  %v2403_v25 = vadd.f32 %v10075_v16, %v2321_v49 }
 0x2ec   :  { %v10098_v27 = vpop.f32.mrf.mxu2 }
 0x2ed   :  { %v2322_v36 = vadd.f32 %v10069_v4, %v2245_v47  ;;  %v2635_v4 = vpop.f32.mrf.mxu3  ;;  %v2483_v50 = vadd.f32 %v10085_v32, %v2403_v25 }
 0x2ef   :  { %v2404_v10 = vadd.f32 %v10077_v17, %v2322_v36  ;;  %v11676_v17 = vld [vmem:[#allocation2_spill] sm:$0xff]  ;;  %v2563_v0 = vadd.f32 %v10098_v27, %v2483_v50 }
 0x2f0   :  { %v2323_v26 = vadd.f32 %v11676_v17, %v2246_v8 }
 0x2f1   :  { %v2484_v22 = vadd.f32 %v2463_v37, %v2404_v10 }
 0x2f2   :  { %v2555_v23 = vpop.f32.mrf.mxu0  ;;  %v2607_v3 = vpop.f32.mrf.mxu1  ;;  %v2405_v21 = vadd.f32 %v11677_v5, %v2323_v26 }
 0x2f3   :  { %v2640_v53 = vadd.f32 %v2607_v3, %v2560_v54  ;;  %v2562_v16 = vadd.f32 %v2555_v23, %v2482_v63  ;;  %v2564_v45 = vadd.f32 %v2543_v57, %v2484_v22 }
 0x2f4   :  { %v2621_v44 = vpop.f32.mrf.mxu2  ;;  %v2485_v32 = vadd.f32 %v10092_v41, %v2405_v21  ;;  %v8706_v21 = vld [vmem:[%s11667_s5] sm:$0xff] }
 0x2f5   :  { %v2641_v52 = vadd.f32 %v2621_v44, %v2561_v9  ;;  %v2642_v46 = vadd.f32 %v2635_v4, %v2562_v16  ;;  %v2637_v44 = vpop.f32.mrf.mxu3 }
 0x2fa   :  { %v2557_v59 = vpop.f32.mrf.mxu0  ;;  %v2609_v48 = vpop.f32.mrf.mxu1 }
 0x2fb   :  { %v2643_v37 = vadd.f32 %v2609_v48, %v2563_v0  ;;  %v2565_v19 = vadd.f32 %v2557_v59, %v2485_v32  ;;  %v8708_v32 = vld [vmem:[%s11667_s5 + $0x10] sm:$0xff] }
 0x2fc   :  { %v2623_v61 = vpop.f32.mrf.mxu2 }
 0x2fd   :  { %v2644_v34 = vadd.f32 %v2623_v61, %v2564_v45  ;;  %v2645_v13 = vadd.f32 %v2637_v44, %v2565_v19  ;;  %v6406_v44 = vld [vmem:[%s11668_s6 + $0x70] sm:$0xff] }
 0x302   :  { %v2687_v18 = vpop.f32.mrf.mxu0  ;;  %v2701_v20 = vpop.f32.mrf.mxu1 }
 0x303   :  { %v2720_v2 = vadd.f32 %v2687_v18, %v2640_v53  ;;  %v10127_v24 = vadd.f32 %v2701_v20, %v2641_v52 }
 0x304   :  { %v2715_v11 = vpop.f32.mrf.mxu2 }
 0x305   :  { %2730 = vrot.lane.b32.xlu0 %v2720_v2, %s8934_s23  ;;  %2732 = vrot.lane.b32.xlu1 %v10127_v24, %s8934_s23  ;;  %v2722_v23 = vadd.f32 %v2715_v11, %v2642_v46 }
 0x30a   :  { %v2689_v3 = vpop.f32.mrf.mxu0  ;;  %v2703_v56 = vpop.f32.mrf.mxu1 }
 0x30b   :  { %v2723_v28 = vadd.f32 %v2689_v3, %v2643_v37  ;;  %v2724_v58 = vadd.f32 %v2703_v56, %v2644_v34  ;;  %v8707_v37 = vld [vmem:[%s11667_s5 + $0x8] sm:$0xff]  ;;  %v8709_v56 = vld [vmem:[%s11667_s5 + $0x18] sm:$0xff] }
 0x30c   :  { %v2717_v27 = vpop.f32.mrf.mxu2 }
 0x30d   :  { %2734 = vrot.lane.b32.xlu2 %v2723_v28, %s8934_s23  ;;  %2751 = vrot.lane.b32.xlu1 %v2722_v23, %s8934_s23  ;;  %v2725_v6 = vadd.f32 %v2717_v27, %v2645_v13  ;;  %v6402_v27 = vld [vmem:[%s11668_s6 + $0x50] sm:$0xff]  ;;  %v6405_v13 = vld [vmem:[%s11668_s6 + $0x68] sm:$0xff] }
 0x30e   :  { %2736 = vrot.lane.b32.xlu0 %v2724_v58, %s8934_s23 }
 0x315   :  { %2753 = vrot.lane.b32.xlu2 %v2725_v6, %s8934_s23 }
 0x367   :  { %v2735_v42 = vpop.permute.xlu2 %2734 }
 0x36f   :  { %v2754_v7 = vpop.permute.xlu2 %2753 }
 0x370   :  { %v2764_v62 = vmax.f32 %v2725_v6, %v2754_v7  ;;  %v8710_v6 = vld [vmem:[%s11667_s5 + $0x20] sm:$0xff] }
 0x377   :  { %v2731_v55 = vpop.permute.xlu0 %2730  ;;  %v2733_v35 = vpop.permute.xlu1 %2732 }
 0x378   :  { %v2739_v41 = vsel %vm820_vm6, %v2731_v55, %v2733_v35  ;;  %v2746_v60 = vmax.f32 %v10127_v24, %v2733_v35  ;;  %v6401_v55 = vld [vmem:[%s11668_s6 + $0x48] sm:$0xff] }
 0x379   :  { %v2745_v39 = vmax.f32 %v2720_v2, %v2739_v41  ;;  %v6396_v41 = vld [vmem:[%s11668_s6 + $0x20] sm:$0xff] }
 0x37b   :  { %2771 = vrot.lane.b32.xlu0 %v2745_v39, %s8937_s26 }
 0x37f   :  { %v2752_v1 = vpop.permute.xlu1 %2751 }
 0x380   :  { %v2737_v15 = vpop.permute.xlu0 %2736  ;;  %v2755_v31 = vsel %vm820_vm6, %v2733_v35, %v2752_v1  ;;  %v2762_v33 = vmax.f32 %v2722_v23, %v2752_v1  ;;  %v2832_v23 = vld [vmem:[%s11667_s5 + $0x38] sm:$0xf]  ;;  %v6400_v35 = vld [vmem:[%s11668_s6 + $0x40] sm:$0xff] }
 0x381   :  { %v2740_v12 = vsel %vm820_vm6, %v2735_v42, %v2737_v15  ;;  %v2761_v57 = vmax.f32 %v10127_v24, %v2755_v31  ;;  %v2756_v48 = vsel %vm820_vm6, %v2737_v15, %v2754_v7  ;;  %v2748_v8 = vmax.f32 %v2724_v58, %v2737_v15  ;;  %v8711_v42 = vld [vmem:[%s11667_s5 + $0x28] sm:$0xff]  ;;  %v6395_v1 = vld [vmem:[%s11668_s6 + $0x18] sm:$0xff]  ;;  %v6394_v15 = vld [vmem:[%s11668_s6 + $0x10] sm:$0xff] }
 0x382   :  { %v2747_v59 = vmax.f32 %v2723_v28, %v2740_v12  ;;  %2775 = vrot.lane.b32.xlu2 %v2762_v33, %s8937_s26  ;;  %v2763_v40 = vmax.f32 %v2724_v58, %v2756_v48  ;;  %v8712_v28 = vld [vmem:[%s11667_s5 + $0x30] sm:$0xff]  ;;  %v2997_v58 = vunpack.c.l.b16 %v2832_v23  ;;  %v8713_v33 = vld [vmem:[%s11667_s5 + $0x3c] sm:$0xff]  ;;  %vm6743_vm6 = vcmask 15360  }
 0x383   :  { %2773 = vrot.lane.b32.xlu1 %v2761_v57, %s8937_s26  ;;  %v8716_v12 = vld [vmem:[%s11667_s5 + $0x54] sm:$0xff]  ;;  %v6541_v57 = vld [vmem:[%s11669_s8 + $0x50] sm:$0xf] }
 0x384   :  { %2777 = vrot.lane.b32.xlu0 %v2747_v59, %s8937_s26  ;;  %v3005_v19 = vpack.c.b16 %v2997_v58, %v2997_v58  ;;  %v8720_v48 = vld [vmem:[%s11667_s5 + $0x78] sm:$0xff] }
 0x38a   :  { %2781 = vrot.lane.b32.xlu2 %v2764_v62, %s8937_s26  ;;  %v6537_v62 = vld [vmem:[%s11669_s8 + $0x30] sm:$0xff] }
 0x38b   :  { %2779 = vrot.lane.b32.xlu1 %v2763_v40, %s8937_s26  ;;  %s8958_s26 = smov 116   ;;  %v8714_v40 = vld [vmem:[%s11667_s5 + $0x44] sm:$0xff] }
 0x38c   :  { %2800 = vperm.xlu0 %8928, %v2796_v29   ;;  %v6540_v29 = vld [vmem:[%s11669_s8 + $0x48] sm:$0xff] }
 0x393   :  { %2805 = vperm.xlu1 %8929, %v2797_v14   ;;  %v8717_v14 = vld [vmem:[%s11667_s5 + $0x5c] sm:$0xff] }
 0x3dc   :  { %v2776_v30 = vpop.permute.xlu2 %2775 }
 0x3e4   :  { %v2782_v53 = vpop.permute.xlu2 %2781 }
 0x3ed   :  { %v2772_v38 = vpop.permute.xlu0 %2771 }
 0x3f5   :  { %v2774_v61 = vpop.permute.xlu1 %2773 }
 0x3f6   :  { %v2778_v47 = vpop.permute.xlu0 %2777  ;;  %v2784_v49 = vsel %vm1183_vm9, %v2772_v38, %v2774_v61  ;;  %v2785_v54 = vsel %vm1183_vm9, %v2774_v61, %v2776_v30  ;;  %v6536_v38 = vld [vmem:[%s11669_s8 + $0x28] sm:$0xff]  ;;  %v6535_v61 = vld [vmem:[%s11669_s8 + $0x20] sm:$0xff] }
 0x3f7   :  { %v2792_v43 = vmax.f32 %v2745_v39, %v2784_v49  ;;  %v2793_v25 = vmax.f32 %v2746_v60, %v2785_v54  ;;  %v6399_v39 = vld [vmem:[%s11668_s6 + $0x38] sm:$0xff]  ;;  %v8721_v54 = vld [vmem:[%s11667_s5 + $0x80] sm:$0xff] }
 0x3f8   :  { %v6531_v60 = vld [vmem:[%s11669_s8] sm:$0xff] }
 0x3fd   :  { %v2780_v36 = vpop.permute.xlu1 %2779 }
 0x3fe   :  { %v2801_v9 = vpop.permute.xlu0 %2800  ;;  %v2786_v52 = vsel %vm1183_vm9, %v2778_v47, %v2780_v36  ;;  %v2787_v18 = vsel %vm1183_vm9, %v2780_v36, %v2782_v53  ;;  %v6534_v36 = vld [vmem:[%s11669_s8 + $0x18] sm:$0xff] }
 0x3ff   :  { %v2808_v51 = vadd.f32 %v2801_v9, %v2792_v43  ;;  %v2809_v10 = vadd.f32 %v2801_v9, %v2793_v25  ;;  %v2794_v2 = vmax.f32 %v2747_v59, %v2786_v52  ;;  %v2795_v20 = vmax.f32 %v2748_v8, %v2787_v18  ;;  %v6393_v59 = vld [vmem:[%s11668_s6 + $0x8] sm:$0xff]  ;;  %v6704_v18 = vld [vmem:[%s11670_s10] sm:$0xff] }
 0x400   :  { %v8741_v25 = vld [vmem:[%s11667_s5 + $0x12c] sm:$0xff]  ;;  %v6705_v52 = vld [vmem:[%s11670_s10 + $0x8] sm:$0x3] }
 0x401   :  { %v2812_v63 = vmax.f32 %v2808_v51, 0.0  ;;  %v2813_v22 = vmax.f32 %v2809_v10, 0.0  ;;  %v8715_v51 = vld [vmem:[%s11667_s5 + $0x4c] sm:$0xff]  ;;  %v8718_v10 = vld [vmem:[%s11667_s5 + $0x64] sm:$0xff] }
 0x403   :  { %v2816_v24 = vpack.c.bf16 %v2813_v22, %v2812_v63 }
 0x405   :  { %v2806_v4 = vpop.permute.xlu1 %2805  ;;  %v2889_v0 = vunpack.c.l.b16 %v2816_v24  ;;  %v4861_v34 = vunpack.c.h.b16 %v2816_v24 }
 0x406   :  { %v2810_v50 = vadd.f32 %v2806_v4, %v2794_v2  ;;  %v2811_v16 = vadd.f32 %v2806_v4, %v2795_v20  ;;  %v8722_v20 = vld [vmem:[%s11667_s5 + $0x88] sm:$0xff]  ;;  %v8742_v4 = vld [vmem:[%s11667_s5 + $0x134] sm:$0xff] }
 0x408   :  { %v2814_v11 = vmax.f32 %v2810_v50, 0.0  ;;  %v2815_v17 = vmax.f32 %v2811_v16, 0.0  ;;  %v8719_v50 = vld [vmem:[%s11667_s5 + $0x6c] sm:$0xff]  ;;  %v8727_v16 = vld [vmem:[%s11667_s5 + $0xb4] sm:$0xff] }
 0x40a   :  { %v2817_v26 = vpack.c.bf16 %v2815_v17, %v2814_v11  ;;  %v8723_v11 = vld [vmem:[%s11667_s5 + $0x90] sm:$0xff] }
 0x40b   :  { %v7324_v17 = vld [vmem:[%s11667_s5 + $0x74] sm:$0xf] }
 0x40c   :  { %v2890_v45 = vunpack.c.l.b16 %v2817_v26  ;;  %v4862_v46 = vunpack.c.h.b16 %v2817_v26  ;;  %v2878_v26 = vunpack.c.l.b16 %v7324_v17 }
 0x40e   :  { %v2891_v5 = vpack.c.b16 %v2890_v45, %v2889_v0  ;;  %v10179_v3 = vpack.c.b16 %v4862_v46, %v4861_v34  ;;  %v8743_v45 = vld [vmem:[%s11667_s5 + $0x13c] sm:$0xff] }
 0x410   :  { %3421 = vrot.lane.b32.xlu1 %v2891_v5, %s8957_s4  ;;  %3277 = vrot.lane.b32.xlu0 %v2891_v5, %s8958_s26  ;;  %s8968_s26 = smov 76  }
 0x411   :  { %2892 = vrot.lane.b32.xlu2 %v2891_v5, %s8933_s0  ;;  %3038 = vmatpush.bf16.msrb.mxu0 %v2891_v5  ;;  %s8960_s0 = smov 56  }
 0x412   :  { %8888 = vmatpush.bf16.msrb.mxu1 %v2891_v5 }
 0x414   :  { %7389 = vmatmul.msk.bf16.vlgmr.msrb.gmra.mxu0 %vm2342_vm14, %v8706_v21  ;;  %v8728_v21 = vld [vmem:[%s11667_s5 + $0xbc] sm:$0xff] }
 0x415   :  { %7395 = vmatmul.msk.bf16.vlgmr.msrb.gmra.mxu1 %vm2342_vm14, %v8712_v28  ;;  %v8729_v28 = vld [vmem:[%s11667_s5 + $0xc4] sm:$0xff] }
 0x418   :  { %3565 = vrot.lane.b32.xlu1 %v2891_v5, %s8942_s30  ;;  %3853 = vrot.lane.b32.xlu0 %v2891_v5, %s8946_s17 }
 0x419   :  { %3133 = vrot.lane.b32.xlu2 %v2891_v5, %s8936_s25  ;;  %s8961_s25 = smov 84  }
 0x420   :  { %4429 = vrot.lane.b32.xlu1 %v2891_v5, %s8954_s18  ;;  %3709 = vrot.lane.b32.xlu0 %v2891_v5, %s8944_s15  ;;  %s8962_s15 = smov 4  }
 0x421   :  { %3997 = vrot.lane.b32.xlu2 %v2891_v5, %s8959_s16 }
 0x424   :  { %7390 = vmatmul.msk.bf16.gmra.mxu0 %vm2342_vm14, %v8707_v37  ;;  %v8724_v37 = vld [vmem:[%s11667_s5 + $0x98] sm:$0xff] }
 0x425   :  { %7396 = vmatmul.msk.bf16.gmra.mxu1 %vm2342_vm14, %v3005_v19  ;;  %v8725_v19 = vld [vmem:[%s11667_s5 + $0xa0] sm:$0xff] }
 0x428   :  { %4285 = vrot.lane.b32.xlu1 %v2891_v5, %s8952_s12  ;;  %4573 = vrot.lane.b32.xlu0 %v2891_v5, %s8956_s24  ;;  %s8963_s24 = smov 88  }
 0x429   :  { %4141 = vrot.lane.b32.xlu2 %v2891_v5, %s8960_s0 }
 0x430   :  { %5150 = vrot.lane.b32.xlu1 %v10179_v3, %s8961_s25  ;;  %4717 = vrot.lane.b32.xlu0 %v2891_v5, %s8962_s15  ;;  %v2886_v5 = vpack.c.b16 %v2878_v26, %v2878_v26 }
 0x431   :  { %5006 = vrot.lane.b32.xlu2 %v10179_v3, %s8963_s24 }
 0x434   :  { %7391 = vmatmul.msk.bf16.gmra.mxu0 %vm2342_vm14, %v8708_v32  ;;  %v8744_v32 = vld [vmem:[%s11667_s5 + $0x144] sm:$0xff] }
 0x438   :  { %5726 = vrot.lane.b32.xlu1 %v10179_v3, %s8964_s20  ;;  %5294 = vrot.lane.b32.xlu0 %v10179_v3, %s8965_s21 }
 0x439   :  { %5582 = vrot.lane.b32.xlu2 %v10179_v3, %s8942_s30 }
 0x440   :  { %5870 = vrot.lane.b32.xlu1 %v10179_v3, %s8966_s22  ;;  %6158 = vrot.lane.b32.xlu0 %v10179_v3, %s8967_s3 }
 0x441   :  { %5438 = vrot.lane.b32.xlu2 %v10179_v3, %s8968_s26 }
 0x444   :  { %7392 = vmatmul.msk.bf16.gmra.mxu0 %vm2342_vm14, %v8709_v56  ;;  %v8734_v56 = vld [vmem:[%s11667_s5 + $0xf0] sm:$0xff] }
 0x448   :  { %6479 = vperm.xlu1 %8929, %v6406_v44   ;;  %6014 = vrot.lane.b32.xlu0 %v10179_v3, %s8969_s29 }
 0x449   :  { %6302 = vrot.lane.b32.xlu2 %v10179_v3, %s8952_s12 }
 0x450   :  { %6459 = vperm.xlu1 %8929, %v6402_v27   ;;  %6474 = vperm.xlu0 %8928, %v6405_v13   ;;  %v8745_v13 = vld [vmem:[%s11667_s5 + $0x14c] sm:$0xff] }
 0x454   :  { %7393 = vmatmul.msk.bf16.gmra.mxu0 %vm2342_vm14, %v8710_v6  ;;  %v8730_v6 = vld [vmem:[%s11667_s5 + $0xcc] sm:$0xff] }
 0x458   :  { %6454 = vperm.xlu1 %8929, %v6401_v55   ;;  %6449 = vperm.xlu0 %8928, %v6400_v35   ;;  %v8735_v55 = vld [vmem:[%s11667_s5 + $0xf8] sm:$0xff] }
 0x460   :  { %6429 = vperm.xlu1 %8929, %v6396_v41   ;;  %6444 = vperm.xlu0 %8928, %v6399_v39   ;;  %v8726_v39 = vld [vmem:[%s11667_s5 + $0xa8] sm:$0xff] }
 0x464   :  { %7394 = vmatmul.msk.bf16.gmra.mxu0 %vm2342_vm14, %v8711_v42  ;;  %v8746_v42 = vld [vmem:[%s11667_s5 + $0x154] sm:$0xff] }
 0x468   :  { %6424 = vperm.xlu1 %8929, %v6395_v1   ;;  %6419 = vperm.xlu0 %8928, %v6394_v15   ;;  %v8731_v1 = vld [vmem:[%s11667_s5 + $0xd4] sm:$0xff]  ;;  %v8736_v15 = vld [vmem:[%s11667_s5 + $0x100] sm:$0xff] }
 0x46b   :  { %v2893_v31 = vpop.permute.xlu2 %2892 }
 0x46c   :  { %2927 = vmatpush.bf16.msrb.mxu2 %v2893_v31  ;;  %8887 = vmatpush.bf16.msra.mxu3 %v2893_v31 }
 0x46f   :  { %7353 = vmatmul.msk.bf16.vlgmr.msrb.gmra.mxu2 %vm2342_vm14, %v8713_v33  ;;  %7356 = vmatmul.msk.bf16.vlgmr.msra.gmra.mxu3 %vm2342_vm14, %v8716_v12  ;;  %v7411_v33 = vld [vmem:[%s11667_s5 + $0xb0] sm:$0xf] }
 0x470   :  { %6594 = vperm.xlu1 %8929, %v6541_v57   ;;  %6414 = vperm.xlu0 %8928, %v6393_v59   ;;  %v3124_v12 = vunpack.c.l.b16 %v7411_v33 }
 0x472   :  { %v3132_v57 = vpack.c.b16 %v3124_v12, %v3124_v12  ;;  %v8740_v12 = vld [vmem:[%s11667_s5 + $0x120] sm:$0xff] }
 0x473   :  { %v3134_v7 = vpop.permute.xlu2 %3133 }
 0x474   :  { %3167 = vmatpush.bf16.msra.mxu1 %v3134_v7  ;;  %v8747_v7 = vld [vmem:[%s11667_s5 + $0x15c] sm:$0xff] }
 0x477   :  { %7440 = vmatmul.msk.bf16.vlgmr.msra.gmra.mxu1 %vm2342_vm14, %v8720_v48  ;;  %v8732_v48 = vld [vmem:[%s11667_s5 + $0xdc] sm:$0xff] }
 0x478   :  { %6574 = vperm.xlu1 %8929, %v6537_v62   ;;  %6589 = vperm.xlu0 %8928, %v6540_v29   ;;  %v8737_v62 = vld [vmem:[%s11667_s5 + $0x108] sm:$0xff] }
 0x47b   :  { %v3998_v47 = vpop.permute.xlu2 %3997 }
 0x47f   :  { %7354 = vmatmul.msk.bf16.gmra.mxu2 %vm2342_vm14, %v8714_v40  ;;  %7357 = vmatmul.msk.bf16.gmra.mxu3 %vm2342_vm14, %v8717_v14 }
 0x480   :  { %6569 = vperm.xlu1 %8929, %v6536_v38   ;;  %6564 = vperm.xlu0 %8928, %v6535_v61  }
 0x482   :  { %v3422_v30 = vpop.permute.xlu1 %3421  ;;  %v3278_v49 = vpop.permute.xlu0 %3277 }
 0x483   :  { %3311 = vmatpush.bf16.msra.mxu2 %v3278_v49  ;;  %3455 = vmatpush.bf16.msrb.mxu3 %v3422_v30  ;;  %v4142_v53 = vpop.permute.xlu2 %4141  ;;  %v7564_v30 = vld [vmem:[%s11667_s5 + $0x164] sm:$0xf] }
 0x487   :  { %4031 = vmatpush.bf16.msra.mxu3 %v3998_v47  ;;  %7441 = vmatmul.msk.bf16.gmra.mxu1 %vm2342_vm14, %v8721_v54  ;;  %v8748_v47 = vld [vmem:[%s11667_s5 + $0x168] sm:$0xff] }
 0x488   :  { %6544 = vperm.xlu1 %8929, %v6531_v60   ;;  %6559 = vperm.xlu0 %8928, %v6534_v36   ;;  %v3556_v60 = vunpack.c.l.b16 %v7564_v30 }
 0x48a   :  { %v3566_v9 = vpop.permute.xlu1 %3565  ;;  %v3854_v43 = vpop.permute.xlu0 %3853 }
 0x48b   :  { %3599 = vmatpush.bf16.msra.mxu0 %v3566_v9  ;;  %3887 = vmatpush.bf16.msrb.mxu2 %v3854_v43 }
 0x48e   :  { %7593 = vmatmul.msk.bf16.vlgmr.msra.gmra.mxu0 %vm2342_vm14, %v8741_v25  ;;  %v3564_v25 = vpack.c.b16 %v3556_v60, %v3556_v60 }
 0x48f   :  { %4175 = vmatpush.bf16.msrb.mxu0 %v4142_v53  ;;  %7355 = vmatmul.msk.bf16.gmra.mxu2 %vm2342_vm14, %v8715_v51 }
 0x490   :  { %7358 = vmatmul.msk.bf16.gmra.mxu3 %vm2342_vm14, %v8718_v10  ;;  %6713 = vperm.xlu1 %8929, %v6705_v52   ;;  %v8733_v10 = vld [vmem:[%s11667_s5 + $0xe4] sm:$0xff]  ;;  %v8738_v52 = vld [vmem:[%s11667_s5 + $0x110] sm:$0xff] }
 0x491   :  { %6708 = vperm.xlu0 %8928, %v6704_v18   ;;  %v3040_v0 = vpop.f32.mrf.mxu0 }
 0x492   :  { %v4430_v8 = vpop.permute.xlu1 %4429  ;;  %v3710_v2 = vpop.permute.xlu0 %3709 }
 0x493   :  { %3743 = vmatpush.bf16.msrb.mxu1 %v3710_v2  ;;  %v10345_v34 = vpop.f32.mrf.mxu1 }
 0x497   :  { %7442 = vmatmul.msk.bf16.gmra.mxu1 %vm2342_vm14, %v8722_v20 }
 0x499   :  { %v3042_v46 = vpop.f32.mrf.mxu0 }
 0x49a   :  { %v4286_v63 = vpop.permute.xlu1 %4285  ;;  %v4574_v22 = vpop.permute.xlu0 %4573 }
 0x49b   :  { %4319 = vmatpush.bf16.msra.mxu1 %v4286_v63  ;;  %v10357_v23 = vpop.f32.mrf.mxu1 }
 0x49e   :  { %7594 = vmatmul.msk.bf16.gmra.mxu0 %vm2342_vm14, %v8742_v4 }
 0x49f   :  { %7491 = vmatmul.msk.bf16.vlgmr.msra.gmra.mxu2 %vm2342_vm14, %v8727_v16  ;;  %v7462_v16 = vld [vmem:[%s11667_s5 + $0xec] sm:$0xf] }
 0x4a0   :  { %7359 = vmatmul.msk.bf16.gmra.mxu3 %vm2342_vm14, %v8719_v50  ;;  %4463 = vmatpush.bf16.msra.mxu2 %v4430_v8 }
 0x4a1   :  { %v10359_v58 = vpop.f32.mrf.mxu0 }
 0x4a2   :  { %v4718_v24 = vpop.permute.xlu0 %4717 }
 0x4a3   :  { %4751 = vmatpush.bf16.msra.mxu0 %v4718_v24  ;;  %v10367_v44 = vpop.f32.mrf.mxu1 }
 0x4a7   :  { %7443 = vmatmul.msk.bf16.gmra.mxu1 %vm2342_vm14, %v8723_v11  ;;  %v3268_v11 = vunpack.c.l.b16 %v7462_v16 }
 0x4a9   :  { %v10370_v27 = vpop.f32.mrf.mxu0 }
 0x4ab   :  { %v3077_v35 = vpop.f32.mrf.mxu1 }
 0x4ae   :  { %7595 = vmatmul.msk.bf16.gmra.mxu0 %vm2342_vm14, %v8743_v45 }
 0x4af   :  { %7492 = vmatmul.msk.bf16.gmra.mxu2 %vm2342_vm14, %v8728_v21  ;;  %v3276_v21 = vpack.c.b16 %v3268_v11, %v3268_v11 }
 0x4b0   :  { %7360 = vmatmul.msk.bf16.gmra.mxu3 %vm2342_vm14, %v2886_v5 }
 0x4b1   :  { %v10384_v41 = vpop.f32.mrf.mxu0 }
 0x4b7   :  { %7444 = vmatmul.msk.bf16.gmra.mxu1 %vm2342_vm14, %v8724_v37  ;;  %v8739_v37 = vld [vmem:[%s11667_s5 + $0x118] sm:$0xff] }
 0x4b9   :  { %v10399_v31 = vpop.f32.mrf.mxu0 }
 0x4be   :  { %7596 = vmatmul.msk.bf16.gmra.mxu0 %vm2342_vm14, %v8744_v32 }
 0x4bf   :  { %7493 = vmatmul.msk.bf16.gmra.mxu2 %vm2342_vm14, %v8729_v28 }
 0x4c0   :  { %7542 = vmatmul.msk.bf16.vlgmr.msrb.gmra.mxu3 %vm2342_vm14, %v8734_v56  ;;  %v5295_v56 = vpop.permute.xlu0 %5294 }
 0x4c1   :  { %4607 = vmatpush.bf16.msrb.mxu3 %v4574_v22  ;;  %v3055_v59 = vpop.f32.mrf.mxu0  ;;  %v8749_v22 = vld [vmem:[%s11667_s5 + $0x170] sm:$0xff] }
 0x4c7   :  { %7445 = vmatmul.msk.bf16.gmra.mxu1 %vm2342_vm14, %v8725_v19 }
 0x4c9   :  { %v3057_v29 = vpop.f32.mrf.mxu0 }
 0x4ce   :  { %7597 = vmatmul.msk.bf16.gmra.mxu0 %vm2342_vm14, %v8745_v13 }
 0x4cf   :  { %7494 = vmatmul.msk.bf16.gmra.mxu2 %vm2342_vm14, %v8730_v6  ;;  %v8750_v6 = vld [vmem:[%s11667_s5 + $0x178] sm:$0xff] }
 0x4d0   :  { %7543 = vmatmul.msk.bf16.gmra.mxu3 %vm2342_vm14, %v8735_v55 }
 0x4d1   :  { %v3060_v36 = vpop.f32.mrf.mxu0 }
 0x4d7   :  { %7446 = vmatmul.msk.bf16.gmra.mxu1 %vm2342_vm14, %v8726_v39 }
 0x4d9   :  { %v3062_v50 = vpop.f32.mrf.mxu0 }
 0x4de   :  { %7598 = vmatmul.msk.bf16.gmra.mxu0 %vm2342_vm14, %v8746_v42 }
 0x4df   :  { %7495 = vmatmul.msk.bf16.gmra.mxu2 %vm2342_vm14, %v8731_v1 }
 0x4e0   :  { %7544 = vmatmul.msk.bf16.gmra.mxu3 %vm2342_vm14, %v8736_v15  ;;  %v8770_v15 = vld [vmem:[%s11667_s5 + $0x224] sm:$0xff] }
 0x4e1   :  { %v3065_v28 = vpop.f32.mrf.mxu0 }
 0x4e7   :  { %7447 = vmatmul.msk.bf16.gmra.mxu1 %vm2342_vm14, %v3132_v57  ;;  %v8755_v57 = vld [vmem:[%s11667_s5 + $0x1a4] sm:$0xff] }
 0x4e9   :  { %v3067_v39 = vpop.f32.mrf.mxu0 }
 0x4ee   :  { %7599 = vmatmul.msk.bf16.gmra.mxu0 %vm2342_vm14, %v8747_v7 }
 0x4ef   :  { %7496 = vmatmul.msk.bf16.gmra.mxu2 %vm2342_vm14, %v8732_v48  ;;  %v5007_v48 = vpop.permute.xlu2 %5006 }
 0x4f0   :  { %7545 = vmatmul.msk.bf16.gmra.mxu3 %vm2342_vm14, %v8737_v62 }
 0x4f2   :  { %v2929_v40 = vpop.f32.mrf.mxu2  ;;  %v2944_v14 = vpop.f32.mrf.mxu3 }
 0x4f3   :  { %v3041_v38 = vadd.f32 %v3040_v0, %v2929_v40  ;;  %v10420_v61 = vadd.f32 %v3055_v59, %v2944_v14  ;;  %v8769_v0 = vld [vmem:[%s11667_s5 + $0x21c] sm:$0xff] }
 0x4f4   :  { %v3169_v49 = vpop.f32.mrf.mxu1  ;;  %v8751_v40 = vld [vmem:[%s11667_s5 + $0x180] sm:$0xff] }
 0x4f5   :  { %v10428_v54 = vadd.f32 %v3169_v49, %v3041_v38  ;;  %v7513_v38 = vld [vmem:[%s11667_s5 + $0x128] sm:$0xf] }
 0x4f6   :  { %v3412_v49 = vunpack.c.l.b16 %v7513_v38 }
 0x4f7   :  { %7644 = vmatmul.msk.bf16.vlgmr.msrb.gmra.mxu1 %vm2342_vm14, %v8748_v47 }
 0x4f8   :  { %4896 = vmatpush.bf16.msrb.mxu1 %v10179_v3 }
 0x4fa   :  { %v2931_v9 = vpop.f32.mrf.mxu2  ;;  %v2946_v43 = vpop.f32.mrf.mxu3 }
 0x4fb   :  { %v3043_v53 = vadd.f32 %v3042_v46, %v2931_v9  ;;  %v10432_v51 = vadd.f32 %v3057_v29, %v2946_v43  ;;  %v3420_v43 = vpack.c.b16 %v3412_v49, %v3412_v49 }
 0x4fc   :  { %v3171_v18 = vpop.f32.mrf.mxu1 }
 0x4fd   :  { %v10440_v8 = vadd.f32 %v3171_v18, %v3043_v53 }
 0x4fe   :  { %7600 = vmatmul.msk.bf16.gmra.mxu0 %vm2342_vm14, %v3564_v25  ;;  %v8756_v25 = vld [vmem:[%s11667_s5 + $0x1ac] sm:$0xff] }
 0x4ff   :  { %7497 = vmatmul.msk.bf16.gmra.mxu2 %vm2342_vm14, %v8733_v10 }
 0x500   :  { %7546 = vmatmul.msk.bf16.gmra.mxu3 %vm2342_vm14, %v8738_v52 }
 0x502   :  { %v2934_v3 = vpop.f32.mrf.mxu2  ;;  %v2949_v2 = vpop.f32.mrf.mxu3 }
 0x503   :  { %v3046_v20 = vadd.f32 %v10359_v58, %v2934_v3  ;;  %v10446_v63 = vadd.f32 %v3060_v36, %v2949_v2  ;;  %v8752_v3 = vld [vmem:[%s11667_s5 + $0x188] sm:$0xff] }
 0x504   :  { %v3174_v4 = vpop.f32.mrf.mxu1 }
 0x505   :  { %v10454_v24 = vadd.f32 %v3174_v4, %v3046_v20 }
 0x507   :  { %7645 = vmatmul.msk.bf16.gmra.mxu1 %vm2342_vm14, %v8749_v22 }
 0x50a   :  { %v2936_v17 = vpop.f32.mrf.mxu2  ;;  %v2951_v26 = vpop.f32.mrf.mxu3 }
 0x50b   :  { %v3048_v45 = vadd.f32 %v10370_v27, %v2936_v17  ;;  %v10461_v5 = vadd.f32 %v3062_v50, %v2951_v26  ;;  %v3601_v30 = vpop.f32.mrf.mxu0  ;;  %v8772_v50 = vld [vmem:[%s11667_s5 + $0x234] sm:$0xff] }
 0x50c   :  { %v3176_v46 = vpop.f32.mrf.mxu1 }
 0x50d   :  { %v10466_v32 = vadd.f32 %v3176_v46, %v3048_v45 }
 0x50e   :  { %7797 = vmatmul.msk.bf16.vlgmr.msrb.gmra.mxu0 %vm2342_vm14, %v8769_v0  ;;  %v5151_v0 = vpop.permute.xlu1 %5150 }
 0x50f   :  { %7498 = vmatmul.msk.bf16.gmra.mxu2 %vm2342_vm14, %v3276_v21  ;;  %5328 = vmatpush.bf16.msrb.mxu0 %v5295_v56 }
 0x510   :  { %7547 = vmatmul.msk.bf16.gmra.mxu3 %vm2342_vm14, %v8739_v37 }
 0x512   :  { %v2939_v58 = vpop.f32.mrf.mxu2 }
 0x513   :  { %v2954_v19 = vpop.f32.mrf.mxu3  ;;  %v3051_v27 = vadd.f32 %v10384_v41, %v2939_v58  ;;  %v3603_v10 = vpop.f32.mrf.mxu0 }
 0x514   :  { %v10472_v13 = vadd.f32 %v3065_v28, %v2954_v19  ;;  %v3179_v55 = vpop.f32.mrf.mxu1 }
 0x515   :  { %v10477_v35 = vadd.f32 %v3179_v55, %v3051_v27 }
 0x517   :  { %7646 = vmatmul.msk.bf16.gmra.mxu1 %vm2342_vm14, %v8750_v6  ;;  %v8773_v6 = vld [vmem:[%s11667_s5 + $0x23c] sm:$0xff] }
 0x51a   :  { %v2941_v42 = vpop.f32.mrf.mxu2 }
 0x51b   :  { %v2956_v1 = vpop.f32.mrf.mxu3  ;;  %v3053_v41 = vadd.f32 %v10399_v31, %v2941_v42  ;;  %v3606_v20 = vpop.f32.mrf.mxu0 }
 0x51c   :  { %v10484_v33 = vadd.f32 %v3067_v39, %v2956_v1  ;;  %v3181_v59 = vpop.f32.mrf.mxu1  ;;  %v8758_v39 = vld [vmem:[%s11667_s5 + $0x1bc] sm:$0xff] }
 0x51d   :  { %v10492_v7 = vadd.f32 %v3181_v59, %v3053_v41 }
 0x51e   :  { %7798 = vmatmul.msk.bf16.gmra.mxu0 %vm2342_vm14, %v8770_v15 }
 0x51f   :  { %7695 = vmatmul.msk.bf16.vlgmr.msrb.gmra.mxu2 %vm2342_vm14, %v8755_v57 }
 0x520   :  { %7548 = vmatmul.msk.bf16.gmra.mxu3 %vm2342_vm14, %v8740_v12  ;;  %5040 = vmatpush.bf16.msrb.mxu2 %v5007_v48 }
 0x522   :  { %v3313_v62 = vpop.f32.mrf.mxu2 }
 0x523   :  { %v10497_v31 = vpop.f32.mrf.mxu3  ;;  %v3352_v29 = vadd.f32 %v3313_v62, %v10428_v54  ;;  %v8771_v54 = vld [vmem:[%s11667_s5 + $0x22c] sm:$0xff]  ;;  %v3608_v26 = vpop.f32.mrf.mxu0 }
 0x524   :  { %v3184_v14 = vpop.f32.mrf.mxu1  ;;  %v3071_v59 = vadd.f32 %v10345_v34, %v10497_v31  ;;  %v8774_v34 = vld [vmem:[%s11667_s5 + $0x244] sm:$0xff] }
 0x525   :  { %v10507_v47 = vadd.f32 %v3184_v14, %v10420_v61 }
 0x527   :  { %7647 = vmatmul.msk.bf16.gmra.mxu1 %vm2342_vm14, %v8751_v40 }
 0x52a   :  { %v3315_v36 = vpop.f32.mrf.mxu2 }
 0x52b   :  { %v10510_v60 = vpop.f32.mrf.mxu3  ;;  %v3353_v9 = vadd.f32 %v3315_v36, %v10440_v8  ;;  %v3611_v58 = vpop.f32.mrf.mxu0  ;;  %v8759_v36 = vld [vmem:[%s11667_s5 + $0x1c4] sm:$0xff] }
 0x52c   :  { %v3186_v61 = vpop.f32.mrf.mxu1  ;;  %v3073_v31 = vadd.f32 %v10357_v23, %v10510_v60 }
 0x52d   :  { %v10520_v53 = vadd.f32 %v3186_v61, %v10432_v51 }
 0x52e   :  { %7799 = vmatmul.msk.bf16.gmra.mxu0 %vm2342_vm14, %v8771_v54  ;;  %v8764_v54 = vld [vmem:[%s11667_s5 + $0x1f0] sm:$0xff] }
 0x52f   :  { %7696 = vmatmul.msk.bf16.gmra.mxu2 %vm2342_vm14, %v8756_v25 }
 0x530   :  { %7549 = vmatmul.msk.bf16.gmra.mxu3 %vm2342_vm14, %v3420_v43  ;;  %v7615_v43 = vld [vmem:[%s11667_s5 + $0x1a0] sm:$0xf] }
 0x531   :  { %v3700_v60 = vunpack.c.l.b16 %v7615_v43  ;;  %v8797_v43 = vld [vmem:[%s11667_s5 + $0x30c] sm:$0xff] }
 0x532   :  { %v3318_v18 = vpop.f32.mrf.mxu2 }
 0x533   :  { %v10525_v52 = vpop.f32.mrf.mxu3  ;;  %v3354_v8 = vadd.f32 %v3318_v18, %v10454_v24  ;;  %v8757_v24 = vld [vmem:[%s11667_s5 + $0x1b4] sm:$0xff]  ;;  %v3613_v41 = vpop.f32.mrf.mxu0 }
 0x534   :  { %v3189_v2 = vpop.f32.mrf.mxu1  ;;  %v3076_v18 = vadd.f32 %v10367_v44, %v10525_v52 }
 0x535   :  { %v10532_v51 = vadd.f32 %v3189_v2, %v10446_v63  ;;  %v8762_v63 = vld [vmem:[%s11667_s5 + $0x1e0] sm:$0xff]  ;;  %v3708_v2 = vpack.c.b16 %v3700_v60, %v3700_v60 }
 0x537   :  { %7648 = vmatmul.msk.bf16.gmra.mxu1 %vm2342_vm14, %v8752_v3 }
 0x53a   :  { %v3320_v4 = vpop.f32.mrf.mxu2 }
 0x53b   :  { %v2966_v22 = vpop.f32.mrf.mxu3  ;;  %v3355_v16 = vadd.f32 %v3320_v4, %v10466_v32  ;;  %v8753_v32 = vld [vmem:[%s11667_s5 + $0x190] sm:$0xff]  ;;  %v3616_v14 = vpop.f32.mrf.mxu0 }
 0x53c   :  { %v3191_v11 = vpop.f32.mrf.mxu1 }
 0x53d   :  { %v10546_v17 = vadd.f32 %v3191_v11, %v10461_v5  ;;  %v8765_v11 = vld [vmem:[%s11667_s5 + $0x1f8] sm:$0xff] }
 0x53e   :  { %7800 = vmatmul.msk.bf16.gmra.mxu0 %vm2342_vm14, %v8772_v50 }
 0x53f   :  { %7697 = vmatmul.msk.bf16.gmra.mxu2 %vm2342_vm14, %v8757_v24 }
 0x540   :  { %7746 = vmatmul.msk.bf16.vlgmr.msra.gmra.mxu3 %vm2342_vm14, %v8762_v63  ;;  %v8775_v63 = vld [vmem:[%s11667_s5 + $0x24c] sm:$0xff] }
 0x541   :  { %5184 = vmatpush.bf16.msra.mxu3 %v5151_v0  ;;  %v10630_v0 = vpop.permute.xlu2 %5582 }
 0x542   :  { %v3323_v45 = vpop.f32.mrf.mxu2 }
 0x543   :  { %v3457_v21 = vpop.f32.mrf.mxu3  ;;  %v3356_v37 = vadd.f32 %v3323_v45, %v10477_v35  ;;  %v3618_v23 = vpop.f32.mrf.mxu0 }
 0x544   :  { %v3496_v46 = vadd.f32 %v3457_v21, %v3352_v29  ;;  %v3194_v5 = vpop.f32.mrf.mxu1 }
 0x545   :  { %v10556_v28 = vadd.f32 %v3194_v5, %v10472_v13  ;;  %v8763_v13 = vld [vmem:[%s11667_s5 + $0x1e8] sm:$0xff]  ;;  %v8776_v5 = vld [vmem:[%s11667_s5 + $0x258] sm:$0xff] }
 0x546   :  { %v10558_v56 = vadd.f32 %v3601_v30, %v3496_v46 }
 0x547   :  { %7649 = vmatmul.msk.bf16.gmra.mxu1 %vm2342_vm14, %v8753_v32 }
 0x54a   :  { %v3325_v19 = vpop.f32.mrf.mxu2 }
 0x54b   :  { %v3459_v27 = vpop.f32.mrf.mxu3  ;;  %v3357_v55 = vadd.f32 %v3325_v19, %v10492_v7  ;;  %v3621_v50 = vpop.f32.mrf.mxu0 }
 0x54c   :  { %v3497_v35 = vadd.f32 %v3459_v27, %v3353_v9  ;;  %v3196_v42 = vpop.f32.mrf.mxu1 }
 0x54d   :  { %v10572_v1 = vadd.f32 %v3196_v42, %v10484_v33  ;;  %v8754_v33 = vld [vmem:[%s11667_s5 + $0x198] sm:$0xff] }
 0x54e   :  { %v10574_v15 = vadd.f32 %v3603_v10, %v3497_v35  ;;  %7801 = vmatmul.msk.bf16.gmra.mxu0 %vm2342_vm14, %v8773_v6 }
 0x54f   :  { %7698 = vmatmul.msk.bf16.gmra.mxu2 %vm2342_vm14, %v8758_v39  ;;  %v5439_v39 = vpop.permute.xlu2 %5438 }
 0x550   :  { %7747 = vmatmul.msk.bf16.gmra.mxu3 %vm2342_vm14, %v8763_v13 }
 0x552   :  { %v3328_v12 = vpop.f32.mrf.mxu2 }
 0x553   :  { %v3462_v57 = vpop.f32.mrf.mxu3  ;;  %v3358_v7 = vadd.f32 %v3328_v12, %v10507_v47  ;;  %v3623_v21 = vpop.f32.mrf.mxu0 }
 0x554   :  { %v3498_v48 = vadd.f32 %v3462_v57, %v3354_v8  ;;  %v3199_v62 = vpop.f32.mrf.mxu1  ;;  %v8761_v57 = vld [vmem:[%s11667_s5 + $0x1d4] sm:$0xff] }
 0x555   :  { %v10585_v29 = vadd.f32 %v3199_v62, %v3071_v59 }
 0x556   :  { %v10587_v40 = vadd.f32 %v3606_v20, %v3498_v48 }
 0x557   :  { %7650 = vmatmul.msk.bf16.gmra.mxu1 %vm2342_vm14, %v8754_v33 }
 0x55a   :  { %v3330_v38 = vpop.f32.mrf.mxu2 }
 0x55b   :  { %v3464_v30 = vpop.f32.mrf.mxu3  ;;  %v3359_v47 = vadd.f32 %v3330_v38, %v10520_v53 }
 0x55c   :  { %v3499_v49 = vadd.f32 %v3464_v30, %v3355_v16  ;;  %v3201_v9 = vpop.f32.mrf.mxu1  ;;  %v8777_v30 = vld [vmem:[%s11667_s5 + $0x260] sm:$0xff] }
 0x55d   :  { %v10605_v25 = vadd.f32 %v3201_v9, %v3073_v31  ;;  %v10672_v31 = vpop.permute.xlu1 %5726 }
 0x55e   :  { %v10607_v61 = vadd.f32 %v3608_v26, %v3499_v49  ;;  %7802 = vmatmul.msk.bf16.gmra.mxu0 %vm2342_vm14, %v8774_v34 }
 0x55f   :  { %7699 = vmatmul.msk.bf16.gmra.mxu2 %vm2342_vm14, %v8759_v36 }
 0x560   :  { %7748 = vmatmul.msk.bf16.gmra.mxu3 %vm2342_vm14, %v8764_v54 }
 0x562   :  { %v3333_v53 = vpop.f32.mrf.mxu2 }
 0x563   :  { %v3467_v10 = vpop.f32.mrf.mxu3  ;;  %v3360_v8 = vadd.f32 %v3333_v53, %v10532_v51  ;;  %v8760_v51 = vld [vmem:[%s11667_s5 + $0x1cc] sm:$0xff] }
 0x564   :  { %v3500_v3 = vadd.f32 %v3467_v10, %v3356_v37  ;;  %v3204_v20 = vpop.f32.mrf.mxu1  ;;  %v8767_v10 = vld [vmem:[%s11667_s5 + $0x208] sm:$0xff] }
 0x565   :  { %v10615_v22 = vadd.f32 %v3204_v20, %v3076_v18 }
 0x566   :  { %v10617_v4 = vadd.f32 %v3611_v58, %v3500_v3  ;;  %v7768_v58 = vld [vmem:[%s11667_s5 + $0x254] sm:$0xf] }
 0x567   :  { %7651 = vmatmul.msk.bf16.gmra.mxu1 %vm2342_vm14, %v3708_v2  ;;  %v4132_v35 = vunpack.c.l.b16 %v7768_v58  ;;  %v5871_v2 = vpop.permute.xlu1 %5870 }
 0x569   :  { %v4140_v42 = vpack.c.b16 %v4132_v35, %v4132_v35 }
 0x56a   :  { %v3335_v16 = vpop.f32.mrf.mxu2 }
 0x56b   :  { %v3469_v24 = vpop.f32.mrf.mxu3  ;;  %v3361_v44 = vadd.f32 %v3335_v16, %v10546_v17 }
 0x56c   :  { %v3501_v52 = vadd.f32 %v3469_v24, %v3357_v55  ;;  %v3206_v26 = vpop.f32.mrf.mxu1  ;;  %v3626_v55 = vpop.f32.mrf.mxu0  ;;  %v8778_v24 = vld [vmem:[%s11667_s5 + $0x268] sm:$0xff] }
 0x56e   :  { %v10632_v45 = vadd.f32 %v3613_v41, %v3501_v52  ;;  %7803 = vmatmul.msk.bf16.gmra.mxu0 %vm2342_vm14, %v8775_v63 }
 0x56f   :  { %7700 = vmatmul.msk.bf16.gmra.mxu2 %vm2342_vm14, %v8760_v51 }
 0x570   :  { %7749 = vmatmul.msk.bf16.gmra.mxu3 %vm2342_vm14, %v8765_v11 }
 0x572   :  { %v3338_v17 = vpop.f32.mrf.mxu2 }
 0x573   :  { %v3472_v37 = vpop.f32.mrf.mxu3  ;;  %v3362_v46 = vadd.f32 %v3338_v17, %v10556_v28 }
 0x574   :  { %v3502_v32 = vadd.f32 %v3472_v37, %v3358_v7  ;;  %v3745_v19 = vpop.f32.mrf.mxu1  ;;  %v3628_v33 = vpop.f32.mrf.mxu0 }
 0x575   :  { %v10647_v6 = vadd.f32 %v3745_v19, %v10558_v56  ;;  %v8766_v56 = vld [vmem:[%s11667_s5 + $0x200] sm:$0xff] }
 0x576   :  { %v10644_v27 = vadd.f32 %v3616_v14, %v3502_v32 }
 0x577   :  { %7848 = vmatmul.msk.bf16.vlgmr.msra.gmra.mxu1 %vm2342_vm14, %v8776_v5 }
 0x578   :  { %5472 = vmatpush.bf16.msra.mxu1 %v5439_v39 }
 0x57a   :  { %v3340_v28 = vpop.f32.mrf.mxu2 }
 0x57b   :  { %v3474_v13 = vpop.f32.mrf.mxu3  ;;  %v3363_v41 = vadd.f32 %v3340_v28, %v10572_v1 }
 0x57c   :  { %v3503_v12 = vadd.f32 %v3474_v13, %v3359_v47  ;;  %v3747_v59 = vpop.f32.mrf.mxu1  ;;  %v3631_v36 = vpop.f32.mrf.mxu0 }
 0x57d   :  { %v10660_v48 = vadd.f32 %v3747_v59, %v10574_v15  ;;  %v7666_v15 = vld [vmem:[%s11667_s5 + $0x1dc] sm:$0xf] }
 0x57e   :  { %v10657_v7 = vadd.f32 %v3618_v23, %v3503_v12  ;;  %7804 = vmatmul.msk.bf16.gmra.mxu0 %vm2342_vm14, %v4140_v42 }
 0x57f   :  { %7701 = vmatmul.msk.bf16.gmra.mxu2 %vm2342_vm14, %v8761_v57 }
 0x580   :  { %7750 = vmatmul.msk.bf16.gmra.mxu3 %vm2342_vm14, %v8766_v56  ;;  %v8784_v56 = vld [vmem:[%s11667_s5 + $0x29c] sm:$0xff] }
 0x582   :  { %v3343_v1 = vpop.f32.mrf.mxu2 }
 0x583   :  { %v3477_v62 = vpop.f32.mrf.mxu3  ;;  %v3364_v14 = vadd.f32 %v3343_v1, %v10585_v29  ;;  %v3844_v29 = vunpack.c.l.b16 %v7666_v15 }
 0x584   :  { %v3504_v38 = vadd.f32 %v3477_v62, %v3360_v8  ;;  %v3750_v34 = vpop.f32.mrf.mxu1  ;;  %v3633_v3 = vpop.f32.mrf.mxu0 }
 0x585   :  { %v10677_v49 = vadd.f32 %v3750_v34, %v10587_v40  ;;  %v3852_v53 = vpack.c.b16 %v3844_v29, %v3844_v29  ;;  %v8798_v29 = vld [vmem:[%s11667_s5 + $0x314] sm:$0xff] }
 0x586   :  { %v10674_v47 = vadd.f32 %v3621_v50, %v3504_v38 }
 0x587   :  { %7849 = vmatmul.msk.bf16.gmra.mxu1 %vm2342_vm14, %v8777_v30  ;;  %v8780_v30 = vld [vmem:[%s11667_s5 + $0x278] sm:$0xff] }
 0x58a   :  { %v3345_v54 = vpop.f32.mrf.mxu2 }
 0x58b   :  { %v3479_v9 = vpop.f32.mrf.mxu3  ;;  %v3365_v23 = vadd.f32 %v3345_v54, %v10605_v25 }
 0x58c   :  { %v3505_v60 = vadd.f32 %v3479_v9, %v3361_v44  ;;  %v3752_v40 = vpop.f32.mrf.mxu1  ;;  %v3636_v52 = vpop.f32.mrf.mxu0 }
 0x58d   :  { %v10690_v8 = vadd.f32 %v3752_v40, %v10607_v61 }
 0x58e   :  { %v10687_v18 = vadd.f32 %v3623_v21, %v3505_v60  ;;  %8001 = vmatmul.msk.bf16.vlgmr.msra.gmra.mxu0 %vm2342_vm14, %v8797_v43  ;;  %v8783_v21 = vld [vmem:[%s11667_s5 + $0x294] sm:$0xff]  ;;  %v8785_v43 = vld [vmem:[%s11667_s5 + $0x2a4] sm:$0xff] }
 0x58f   :  { %7702 = vmatmul.msk.bf16.gmra.mxu2 %vm2342_vm14, %v3852_v53  ;;  %5904 = vmatpush.bf16.msra.mxu0 %v5871_v2  ;;  %v8781_v2 = vld [vmem:[%s11667_s5 + $0x280] sm:$0xff] }
 0x590   :  { %7751 = vmatmul.msk.bf16.gmra.mxu3 %vm2342_vm14, %v8767_v10 }
 0x592   :  { %v3348_v25 = vpop.f32.mrf.mxu2 }
 0x593   :  { %v3482_v20 = vpop.f32.mrf.mxu3  ;;  %v3366_v50 = vadd.f32 %v3348_v25, %v10615_v22  ;;  %v8768_v22 = vld [vmem:[%s11667_s5 + $0x210] sm:$0xff] }
 0x594   :  { %v3506_v16 = vadd.f32 %v3482_v20, %v3362_v46  ;;  %v3755_v61 = vpop.f32.mrf.mxu1  ;;  %v3638_v46 = vpop.f32.mrf.mxu0 }
 0x595   :  { %v10702_v44 = vadd.f32 %v3755_v61, %v10617_v4 }
 0x596   :  { %v10699_v63 = vadd.f32 %v3626_v55, %v3506_v16  ;;  %v8779_v55 = vld [vmem:[%s11667_s5 + $0x270] sm:$0xff] }
 0x597   :  { %7850 = vmatmul.msk.bf16.gmra.mxu1 %vm2342_vm14, %v8778_v24 }
 0x59a   :  { %v3350_v51 = vpop.f32.mrf.mxu2 }
 0x59b   :  { %v3484_v11 = vpop.f32.mrf.mxu3 }
 0x59c   :  { %v3507_v26 = vadd.f32 %v3484_v11, %v3363_v41  ;;  %v3757_v17 = vpop.f32.mrf.mxu1 }
 0x59d   :  { %v10714_v4 = vadd.f32 %v3757_v17, %v10632_v45  ;;  %v7717_v45 = vld [vmem:[%s11667_s5 + $0x218] sm:$0xf] }
 0x59e   :  { %v10711_v37 = vadd.f32 %v3628_v33, %v3507_v26  ;;  %v3988_v13 = vunpack.c.l.b16 %v7717_v45  ;;  %8002 = vmatmul.msk.bf16.gmra.mxu0 %vm2342_vm14, %v8798_v29 }
 0x59f   :  { %7899 = vmatmul.msk.bf16.vlgmr.msra.gmra.mxu2 %vm2342_vm14, %v8783_v21 }
 0x5a0   :  { %7752 = vmatmul.msk.bf16.gmra.mxu3 %vm2342_vm14, %v8768_v22  ;;  %5616 = vmatpush.bf16.msra.mxu2 %v10630_v0  ;;  %v4177_v0 = vpop.f32.mrf.mxu0  ;;  %v3996_v57 = vpack.c.b16 %v3988_v13, %v3988_v13  ;;  %v8792_v13 = vld [vmem:[%s11667_s5 + $0x2e0] sm:$0xff] }
 0x5a2   :  { %v3889_v5 = vpop.f32.mrf.mxu2 }
 0x5a3   :  { %v3487_v32 = vpop.f32.mrf.mxu3  ;;  %v3928_v19 = vadd.f32 %v3889_v5, %v10647_v6 }
 0x5a4   :  { %v3508_v58 = vadd.f32 %v3487_v32, %v3364_v14  ;;  %v3760_v35 = vpop.f32.mrf.mxu1  ;;  %v8782_v32 = vld [vmem:[%s11667_s5 + $0x288] sm:$0xff] }
 0x5a5   :  { %v10729_v28 = vadd.f32 %v3760_v35, %v10644_v27 }
 0x5a6   :  { %v10726_v39 = vadd.f32 %v3631_v36, %v3508_v58 }
 0x5a7   :  { %7851 = vmatmul.msk.bf16.gmra.mxu1 %vm2342_vm14, %v8779_v55  ;;  %v8800_v55 = vld [vmem:[%s11667_s5 + $0x324] sm:$0xff] }
 0x5a8   :  { %v4179_v1 = vpop.f32.mrf.mxu0 }
 0x5aa   :  { %v3891_v6 = vpop.f32.mrf.mxu2 }
 0x5ab   :  { %v3489_v42 = vpop.f32.mrf.mxu3  ;;  %v3929_v12 = vadd.f32 %v3891_v6, %v10660_v48  ;;  %v7819_v6 = vld [vmem:[%s11667_s5 + $0x290] sm:$0xf] }
 0x5ac   :  { %v3509_v41 = vadd.f32 %v3489_v42, %v3365_v23  ;;  %v3762_v59 = vpop.f32.mrf.mxu1 }
 0x5ad   :  { %v10739_v27 = vadd.f32 %v3762_v59, %v10657_v7 }
 0x5ae   :  { %v10736_v33 = vadd.f32 %v3633_v3, %v3509_v41 }
 0x5af   :  { %7900 = vmatmul.msk.bf16.gmra.mxu2 %vm2342_vm14, %v8784_v56  ;;  %v4276_v56 = vunpack.c.l.b16 %v7819_v6 }
 0x5b0   :  { %7753 = vmatmul.msk.bf16.gmra.mxu3 %vm2342_vm14, %v3996_v57  ;;  %v4182_v36 = vpop.f32.mrf.mxu0 }
 0x5b2   :  { %v3894_v14 = vpop.f32.mrf.mxu2 }
 0x5b3   :  { %v3492_v62 = vpop.f32.mrf.mxu3  ;;  %v3930_v48 = vadd.f32 %v3894_v14, %v10677_v49  ;;  %v4284_v14 = vpack.c.b16 %v4276_v56, %v4276_v56 }
 0x5b4   :  { %v3510_v38 = vadd.f32 %v3492_v62, %v3366_v50  ;;  %v3765_v34 = vpop.f32.mrf.mxu1 }
 0x5b5   :  { %v10750_v7 = vadd.f32 %v3765_v34, %v10674_v47  ;;  %v8790_v47 = vld [vmem:[%s11667_s5 + $0x2d0] sm:$0xff] }
 0x5b6   :  { %v10747_v15 = vadd.f32 %v3636_v52, %v3510_v38  ;;  %v8791_v52 = vld [vmem:[%s11667_s5 + $0x2d8] sm:$0xff]  ;;  %v8801_v34 = vld [vmem:[%s11667_s5 + $0x32c] sm:$0xff] }
 0x5b7   :  { %7852 = vmatmul.msk.bf16.gmra.mxu1 %vm2342_vm14, %v8780_v30 }
 0x5b8   :  { %v4184_v53 = vpop.f32.mrf.mxu0 }
 0x5ba   :  { %v3896_v54 = vpop.f32.mrf.mxu2 }
 0x5bb   :  { %v3494_v49 = vpop.f32.mrf.mxu3  ;;  %v3931_v9 = vadd.f32 %v3896_v54, %v10690_v8  ;;  %v8793_v54 = vld [vmem:[%s11667_s5 + $0x2e8] sm:$0xff] }
 0x5bc   :  { %v3767_v23 = vpop.f32.mrf.mxu1 }
 0x5bd   :  { %v10765_v60 = vadd.f32 %v3767_v23, %v10687_v18 }
 0x5bf   :  { %7901 = vmatmul.msk.bf16.gmra.mxu2 %vm2342_vm14, %v8785_v43  ;;  %v10847_v43 = vpop.permute.xlu0 %6158 }
 0x5c0   :  { %7950 = vmatmul.msk.bf16.vlgmr.msrb.gmra.mxu3 %vm2342_vm14, %v8790_v47  ;;  %v4187_v50 = vpop.f32.mrf.mxu0 }
 0x5c1   :  { %5760 = vmatpush.bf16.msrb.mxu3 %v10672_v31  ;;  %v8799_v31 = vld [vmem:[%s11667_s5 + $0x31c] sm:$0xff] }
 0x5c2   :  { %v3899_v10 = vpop.f32.mrf.mxu2  ;;  %8003 = vmatmul.msk.bf16.gmra.mxu0 %vm2342_vm14, %v8799_v31  ;;  %v8802_v31 = vld [vmem:[%s11667_s5 + $0x334] sm:$0xff] }
 0x5c3   :  { %v4033_v40 = vpop.f32.mrf.mxu3  ;;  %v3932_v8 = vadd.f32 %v3899_v10, %v10702_v44 }
 0x5c4   :  { %v4072_v3 = vadd.f32 %v4033_v40, %v3928_v19  ;;  %v3770_v25 = vpop.f32.mrf.mxu1 }
 0x5c5   :  { %v10775_v18 = vadd.f32 %v3770_v25, %v10699_v63  ;;  %v8786_v63 = vld [vmem:[%s11667_s5 + $0x2ac] sm:$0xff] }
 0x5c6   :  { %v10777_v20 = vadd.f32 %v4177_v0, %v4072_v3 }
 0x5c7   :  { %7853 = vmatmul.msk.bf16.gmra.mxu1 %vm2342_vm14, %v8781_v2 }
 0x5c8   :  { %v4189_v22 = vpop.f32.mrf.mxu0 }
 0x5ca   :  { %v3901_v16 = vpop.f32.mrf.mxu2 }
 0x5cb   :  { %v4035_v24 = vpop.f32.mrf.mxu3  ;;  %v3933_v61 = vadd.f32 %v3901_v16, %v10714_v4  ;;  %v6015_v16 = vpop.permute.xlu0 %6014 }
 0x5cc   :  { %v4073_v44 = vadd.f32 %v4035_v24, %v3929_v12  ;;  %v3772_v51 = vpop.f32.mrf.mxu1 }
 0x5cd   :  { %v10792_v11 = vadd.f32 %v3772_v51, %v10711_v37 }
 0x5ce   :  { %v10794_v26 = vadd.f32 %v4179_v1, %v4073_v44 }
 0x5cf   :  { %7902 = vmatmul.msk.bf16.gmra.mxu2 %vm2342_vm14, %v8786_v63  ;;  %v8794_v63 = vld [vmem:[%s11667_s5 + $0x2f0] sm:$0xff] }
 0x5d0   :  { %7951 = vmatmul.msk.bf16.gmra.mxu3 %vm2342_vm14, %v8791_v52  ;;  %v4192_v19 = vpop.f32.mrf.mxu0 }
 0x5d2   :  { %v3904_v21 = vpop.f32.mrf.mxu2  ;;  %8004 = vmatmul.msk.bf16.gmra.mxu0 %vm2342_vm14, %v8800_v55 }
 0x5d3   :  { %v4038_v17 = vpop.f32.mrf.mxu3  ;;  %v3934_v4 = vadd.f32 %v3904_v21, %v10729_v28 }
 0x5d4   :  { %v4074_v46 = vadd.f32 %v4038_v17, %v3930_v48  ;;  %v3775_v5 = vpop.f32.mrf.mxu1 }
 0x5d5   :  { %v10803_v37 = vadd.f32 %v3775_v5, %v10726_v39  ;;  %v8787_v39 = vld [vmem:[%s11667_s5 + $0x2b4] sm:$0xff] }
 0x5d6   :  { %v10805_v58 = vadd.f32 %v4182_v36, %v4074_v46 }
 0x5d7   :  { %7854 = vmatmul.msk.bf16.gmra.mxu1 %vm2342_vm14, %v8782_v32  ;;  %v8805_v32 = vld [vmem:[%s11667_s5 + $0x350] sm:$0xff] }
 0x5d8   :  { %v4194_v57 = vpop.f32.mrf.mxu0 }
 0x5da   :  { %v3906_v35 = vpop.f32.mrf.mxu2 }
 0x5db   :  { %v4040_v45 = vpop.f32.mrf.mxu3  ;;  %v3935_v28 = vadd.f32 %v3906_v35, %v10739_v27 }
 0x5dc   :  { %v4075_v0 = vadd.f32 %v4040_v45, %v3931_v9  ;;  %v3777_v42 = vpop.f32.mrf.mxu1 }
 0x5dd   :  { %v10823_v41 = vadd.f32 %v3777_v42, %v10736_v33 }
 0x5de   :  { %v10825_v12 = vadd.f32 %v4184_v53, %v4075_v0 }
 0x5df   :  { %7903 = vmatmul.msk.bf16.gmra.mxu2 %vm2342_vm14, %v8787_v39 }
 0x5e0   :  { %7952 = vmatmul.msk.bf16.gmra.mxu3 %vm2342_vm14, %v8792_v13  ;;  %v4197_v30 = vpop.f32.mrf.mxu0 }
 0x5e2   :  { %v3909_v59 = vpop.f32.mrf.mxu2  ;;  %8005 = vmatmul.msk.bf16.gmra.mxu0 %vm2342_vm14, %v8801_v34 }
 0x5e3   :  { %v4043_v27 = vpop.f32.mrf.mxu3  ;;  %v3936_v1 = vadd.f32 %v3909_v59, %v10750_v7 }
 0x5e4   :  { %v4076_v62 = vadd.f32 %v4043_v27, %v3932_v8  ;;  %v3780_v38 = vpop.f32.mrf.mxu1  ;;  %v8804_v8 = vld [vmem:[%s11667_s5 + $0x348] sm:$0xff] }
 0x5e5   :  { %v10831_v48 = vadd.f32 %v3780_v38, %v10747_v15  ;;  %v8788_v15 = vld [vmem:[%s11667_s5 + $0x2bc] sm:$0xff]  ;;  %v7972_v38 = vld [vmem:[%s11667_s5 + $0x344] sm:$0xf] }
 0x5e6   :  { %v10833_v33 = vadd.f32 %v4187_v50, %v4076_v62 }
 0x5e7   :  { %7855 = vmatmul.msk.bf16.gmra.mxu1 %vm2342_vm14, %v4284_v14  ;;  %v8806_v14 = vld [vmem:[%s11667_s5 + $0x358] sm:$0xff] }
 0x5e8   :  { %v4199_v23 = vpop.f32.mrf.mxu0 }
 0x5ea   :  { %v3911_v36 = vpop.f32.mrf.mxu2 }
 0x5eb   :  { %v4045_v29 = vpop.f32.mrf.mxu3  ;;  %v3937_v7 = vadd.f32 %v3911_v36, %v10765_v60 }
 0x5ec   :  { %v4077_v49 = vadd.f32 %v4045_v29, %v3933_v61  ;;  %v3782_v9 = vpop.f32.mrf.mxu1 }
 0x5ed   :  { %v8811_v9 = vld [vmem:[%s11667_s5 + $0x384] sm:$0xff] }
 0x5ee   :  { %v10849_v47 = vadd.f32 %v4189_v22, %v4077_v49 }
 0x5ef   :  { %7904 = vmatmul.msk.bf16.gmra.mxu2 %vm2342_vm14, %v8788_v15 }
 0x5f0   :  { %7953 = vmatmul.msk.bf16.gmra.mxu3 %vm2342_vm14, %v8793_v54  ;;  %v4202_v50 = vpop.f32.mrf.mxu0  ;;  %v8796_v54 = vld [vmem:[%s11667_s5 + $0x300] sm:$0xff] }
 0x5f2   :  { %v3914_v60 = vpop.f32.mrf.mxu2  ;;  %8006 = vmatmul.msk.bf16.gmra.mxu0 %vm2342_vm14, %v8802_v31 }
 0x5f3   :  { %v4048_v53 = vpop.f32.mrf.mxu3  ;;  %v3938_v10 = vadd.f32 %v3914_v60, %v10775_v18 }
 0x5f4   :  { %v4078_v40 = vadd.f32 %v4048_v53, %v3934_v4  ;;  %v4321_v3 = vpop.f32.mrf.mxu1 }
 0x5f5   :  { %v10860_v25 = vadd.f32 %v4321_v3, %v10777_v20  ;;  %v8789_v20 = vld [vmem:[%s11667_s5 + $0x2c4] sm:$0xff] }
 0x5f6   :  { %v10857_v2 = vadd.f32 %v4192_v19, %v4078_v40 }
 0x5f7   :  { %8052 = vmatmul.msk.bf16.vlgmr.msrb.gmra.mxu1 %vm2342_vm14, %v8804_v8 }
 0x5f8   :  { %6048 = vmatpush.bf16.msrb.mxu1 %v6015_v16  ;;  %v4204_v21 = vpop.f32.mrf.mxu0 }
 0x5fa   :  { %v3916_v18 = vpop.f32.mrf.mxu2 }
 0x5fb   :  { %v4050_v24 = vpop.f32.mrf.mxu3  ;;  %v3939_v61 = vadd.f32 %v3916_v18, %v10792_v11 }
 0x5fc   :  { %v4079_v44 = vadd.f32 %v4050_v24, %v3935_v28  ;;  %v4323_v52 = vpop.f32.mrf.mxu1  ;;  %v8825_v24 = vld [vmem:[%s11667_s5 + $0x3fc] sm:$0xff] }
 0x5fd   :  { %v10877_v22 = vadd.f32 %v4323_v52, %v10794_v26  ;;  %v7870_v26 = vld [vmem:[%s11667_s5 + $0x2cc] sm:$0xf] }
 0x5fe   :  { %v10874_v51 = vadd.f32 %v4194_v57, %v4079_v44  ;;  %v4420_v45 = vunpack.c.l.b16 %v7870_v26  ;;  %v8808_v26 = vld [vmem:[%s11667_s5 + $0x368] sm:$0xff] }
 0x5ff   :  { %7905 = vmatmul.msk.bf16.gmra.mxu2 %vm2342_vm14, %v8789_v20 }
 0x600   :  { %7954 = vmatmul.msk.bf16.gmra.mxu3 %vm2342_vm14, %v8794_v63  ;;  %v4207_v35 = vpop.f32.mrf.mxu0  ;;  %v4428_v42 = vpack.c.b16 %v4420_v45, %v4420_v45 }
 0x602   :  { %v3919_v11 = vpop.f32.mrf.mxu2 }
 0x603   :  { %v4053_v17 = vpop.f32.mrf.mxu3  ;;  %v3940_v4 = vadd.f32 %v3919_v11, %v10803_v37  ;;  %v8803_v37 = vld [vmem:[%s11667_s5 + $0x33c] sm:$0xff] }
 0x604   :  { %v4080_v46 = vadd.f32 %v4053_v17, %v3936_v1  ;;  %v4326_v5 = vpop.f32.mrf.mxu1  ;;  %8007 = vmatmul.msk.bf16.gmra.mxu0 %vm2342_vm14, %v8803_v37 }
 0x605   :  { %v10891_v55 = vadd.f32 %v4326_v5, %v10805_v58  ;;  %v8795_v58 = vld [vmem:[%s11667_s5 + $0x2f8] sm:$0xff] }
 0x606   :  { %v10888_v19 = vadd.f32 %v4197_v30, %v4080_v46  ;;  %v4708_v30 = vunpack.c.l.b16 %v7972_v38 }
 0x607   :  { %8053 = vmatmul.msk.bf16.gmra.mxu1 %vm2342_vm14, %v8805_v32 }
 0x608   :  { %v4209_v59 = vpop.f32.mrf.mxu0 }
 0x60a   :  { %v3921_v28 = vpop.f32.mrf.mxu2 }
 0x60b   :  { %v4055_v0 = vpop.f32.mrf.mxu3  ;;  %v3941_v39 = vadd.f32 %v3921_v28, %v10823_v41  ;;  %v8826_v28 = vld [vmem:[%s11667_s5 + $0x404] sm:$0xff] }
 0x60c   :  { %v4081_v13 = vadd.f32 %v4055_v0, %v3937_v7  ;;  %v4328_v6 = vpop.f32.mrf.mxu1  ;;  %v4716_v7 = vpack.c.b16 %v4708_v30, %v4708_v30  ;;  %v8827_v30 = vld [vmem:[%s11667_s5 + $0x40c] sm:$0xff] }
 0x60d   :  { %v10905_v56 = vadd.f32 %v4328_v6, %v10825_v12 }
 0x60e   :  { %v10902_v57 = vadd.f32 %v4199_v23, %v4081_v13  ;;  %v8813_v13 = vld [vmem:[%s11667_s5 + $0x394] sm:$0xff] }
 0x60f   :  { %7906 = vmatmul.msk.bf16.gmra.mxu2 %vm2342_vm14, %v4428_v42 }
 0x610   :  { %7955 = vmatmul.msk.bf16.gmra.mxu3 %vm2342_vm14, %v8795_v58  ;;  %v4212_v29 = vpop.f32.mrf.mxu0 }
 0x612   :  { %v3924_v27 = vpop.f32.mrf.mxu2 }
 0x613   :  { %v4058_v1 = vpop.f32.mrf.mxu3  ;;  %v3942_v41 = vadd.f32 %v3924_v27, %v10831_v48 }
 0x614   :  { %v4082_v62 = vadd.f32 %v4058_v1, %v3938_v10  ;;  %v4331_v12 = vpop.f32.mrf.mxu1  ;;  %8008 = vmatmul.msk.bf16.gmra.mxu0 %vm2342_vm14, %v4716_v7 }
 0x615   :  { %v10919_v36 = vadd.f32 %v4331_v12, %v10833_v33 }
 0x616   :  { %v10916_v34 = vadd.f32 %v4202_v50, %v4082_v62  ;;  %v8807_v50 = vld [vmem:[%s11667_s5 + $0x360] sm:$0xff]  ;;  %v8809_v62 = vld [vmem:[%s11667_s5 + $0x370] sm:$0xff] }
 0x617   :  { %8054 = vmatmul.msk.bf16.gmra.mxu1 %vm2342_vm14, %v8806_v14 }
 0x618   :  { %v4214_v53 = vpop.f32.mrf.mxu0 }
 0x61a   :  { %v3926_v48 = vpop.f32.mrf.mxu2 }
 0x61b   :  { %v4060_v49 = vpop.f32.mrf.mxu3 }
 0x61c   :  { %v4083_v15 = vadd.f32 %v4060_v49, %v3939_v61  ;;  %v4333_v23 = vpop.f32.mrf.mxu1  ;;  %v8819_v49 = vld [vmem:[%s11667_s5 + $0x3c8] sm:$0xff] }
 0x61d   :  { %v10932_v60 = vadd.f32 %v4333_v23, %v10849_v47  ;;  %v7921_v47 = vld [vmem:[%s11667_s5 + $0x308] sm:$0xf] }
 0x61e   :  { %v10929_v33 = vadd.f32 %v4204_v21, %v4083_v15 }
 0x61f   :  { %8103 = vmatmul.msk.bf16.vlgmr.msrb.gmra.mxu2 %vm2342_vm14, %v8811_v9 }
 0x620   :  { %7956 = vmatmul.msk.bf16.gmra.mxu3 %vm2342_vm14, %v8796_v54  ;;  %6192 = vmatpush.bf16.msrb.mxu2 %v10847_v43  ;;  %v4753_v43 = vpop.f32.mrf.mxu0 }
 0x622   :  { %v4465_v40 = vpop.f32.mrf.mxu2 }
 0x623   :  { %v4063_v10 = vpop.f32.mrf.mxu3  ;;  %v4504_v3 = vadd.f32 %v4465_v40, %v10860_v25  ;;  %v4564_v25 = vunpack.c.l.b16 %v7921_v47  ;;  %v8828_v47 = vld [vmem:[%s11667_s5 + $0x414] sm:$0xff] }
 0x624   :  { %v4084_v8 = vadd.f32 %v4063_v10, %v3940_v4  ;;  %v4336_v31 = vpop.f32.mrf.mxu1  ;;  %8205 = vmatmul.msk.bf16.vlgmr.msrb.gmra.mxu0 %vm2342_vm14, %v8825_v24 }
 0x625   :  { %v10947_v18 = vadd.f32 %v4336_v31, %v10857_v2  ;;  %v4572_v52 = vpack.c.b16 %v4564_v25, %v4564_v25  ;;  %v8812_v2 = vld [vmem:[%s11667_s5 + $0x38c] sm:$0xff] }
 0x626   :  { %v10944_v16 = vadd.f32 %v4207_v35, %v4084_v8  ;;  %v8810_v8 = vld [vmem:[%s11667_s5 + $0x378] sm:$0xff] }
 0x627   :  { %8055 = vmatmul.msk.bf16.gmra.mxu1 %vm2342_vm14, %v8807_v50 }
 0x628   :  { %v4755_v4 = vpop.f32.mrf.mxu0 }
 0x62a   :  { %v4467_v44 = vpop.f32.mrf.mxu2 }
 0x62b   :  { %v4065_v61 = vpop.f32.mrf.mxu3  ;;  %v4505_v63 = vadd.f32 %v4467_v44, %v10877_v22 }
 0x62c   :  { %v4085_v20 = vadd.f32 %v4065_v61, %v3941_v39  ;;  %v4338_v21 = vpop.f32.mrf.mxu1  ;;  %v8820_v61 = vld [vmem:[%s11667_s5 + $0x3d0] sm:$0xff] }
 0x62d   :  { %v10961_v17 = vadd.f32 %v4338_v21, %v10874_v51 }
 0x62e   :  { %v10958_v11 = vadd.f32 %v4209_v59, %v4085_v20  ;;  %v6303_v59 = vpop.permute.xlu2 %6302  ;;  %v8023_v20 = vld [vmem:[%s11667_s5 + $0x380] sm:$0xf] }
 0x62f   :  { %8104 = vmatmul.msk.bf16.gmra.mxu2 %vm2342_vm14, %v8812_v2  ;;  %v4852_v21 = vunpack.c.l.b16 %v8023_v20 }
 0x630   :  { %7957 = vmatmul.msk.bf16.gmra.mxu3 %vm2342_vm14, %v4572_v52  ;;  %v4758_v45 = vpop.f32.mrf.mxu0 }
 0x632   :  { %v4470_v32 = vpop.f32.mrf.mxu2 }
 0x633   :  { %v4068_v46 = vpop.f32.mrf.mxu3  ;;  %v4506_v22 = vadd.f32 %v4470_v32, %v10891_v55 }
 0x634   :  { %v4086_v5 = vadd.f32 %v4068_v46, %v3942_v41  ;;  %v4341_v35 = vpop.f32.mrf.mxu1  ;;  %8206 = vmatmul.msk.bf16.gmra.mxu0 %vm2342_vm14, %v8826_v28 }
 0x635   :  { %v10972_v51 = vadd.f32 %v4341_v35, %v10888_v19  ;;  %v8818_v19 = vld [vmem:[%s11667_s5 + $0x3c0] sm:$0xff] }
 0x636   :  { %v10969_v37 = vadd.f32 %v4212_v29, %v4086_v5  ;;  %v4860_v5 = vpack.c.b16 %v4852_v21, %v4852_v21 }
 0x637   :  { %8056 = vmatmul.msk.bf16.gmra.mxu1 %vm2342_vm14, %v8808_v26 }
 0x638   :  { %v4760_v6 = vpop.f32.mrf.mxu0 }
 0x63a   :  { %v4472_v0 = vpop.f32.mrf.mxu2 }
 0x63b   :  { %v4070_v55 = vpop.f32.mrf.mxu3  ;;  %v4507_v39 = vadd.f32 %v4472_v0, %v10905_v56 }
 0x63c   :  { %v4343_v42 = vpop.f32.mrf.mxu1 }
 0x63d   :  { %v10987_v58 = vadd.f32 %v4343_v42, %v10902_v57 }
 0x63f   :  { %8105 = vmatmul.msk.bf16.gmra.mxu2 %vm2342_vm14, %v8813_v13 }
 0x640   :  { %8154 = vmatmul.msk.bf16.vlgmr.msra.gmra.mxu3 %vm2342_vm14, %v8818_v19  ;;  %v4763_v12 = vpop.f32.mrf.mxu0 }
 0x641   :  { %6336 = vmatpush.bf16.msra.mxu3 %v6303_v59 }
 0x642   :  { %v4475_v56 = vpop.f32.mrf.mxu2 }
 0x643   :  { %v4609_v27 = vpop.f32.mrf.mxu3  ;;  %v4508_v1 = vadd.f32 %v4475_v56, %v10919_v36 }
 0x644   :  { %v4648_v41 = vadd.f32 %v4609_v27, %v4504_v3  ;;  %v4346_v14 = vpop.f32.mrf.mxu1  ;;  %8207 = vmatmul.msk.bf16.gmra.mxu0 %vm2342_vm14, %v8827_v30  ;;  %v8832_v27 = vld [vmem:[%s11667_s5 + $0x438] sm:$0xff] }
 0x645   :  { %v10996_v57 = vadd.f32 %v4346_v14, %v10916_v34  ;;  %v8814_v34 = vld [vmem:[%s11667_s5 + $0x39c] sm:$0xff] }
 0x646   :  { %v10998_v38 = vadd.f32 %v4753_v43, %v4648_v41 }
 0x647   :  { %8057 = vmatmul.msk.bf16.gmra.mxu1 %vm2342_vm14, %v8809_v62 }
 0x648   :  { %v4765_v23 = vpop.f32.mrf.mxu0 }
 0x64a   :  { %v4477_v36 = vpop.f32.mrf.mxu2 }
 0x64b   :  { %v4611_v29 = vpop.f32.mrf.mxu3  ;;  %v4509_v7 = vadd.f32 %v4477_v36, %v10932_v60 }
 0x64c   :  { %v4649_v48 = vadd.f32 %v4611_v29, %v4505_v63  ;;  %v4348_v15 = vpop.f32.mrf.mxu1 }
 0x64d   :  { %v11013_v54 = vadd.f32 %v4348_v15, %v10929_v33 }
 0x64e   :  { %v11015_v9 = vadd.f32 %v4755_v4, %v4649_v48 }
 0x64f   :  { %8106 = vmatmul.msk.bf16.gmra.mxu2 %vm2342_vm14, %v8814_v34 }
 0x650   :  { %8155 = vmatmul.msk.bf16.gmra.mxu3 %vm2342_vm14, %v8819_v49  ;;  %v4768_v31 = vpop.f32.mrf.mxu0 }
 0x652   :  { %v4480_v60 = vpop.f32.mrf.mxu2 }
 0x653   :  { %v4614_v53 = vpop.f32.mrf.mxu3  ;;  %v4510_v10 = vadd.f32 %v4480_v60, %v10947_v18 }
 0x654   :  { %v4650_v40 = vadd.f32 %v4614_v53, %v4506_v22  ;;  %v4351_v3 = vpop.f32.mrf.mxu1  ;;  %8208 = vmatmul.msk.bf16.gmra.mxu0 %vm2342_vm14, %v8828_v47 }
 0x655   :  { %v11024_v33 = vadd.f32 %v4351_v3, %v10944_v16  ;;  %v8815_v16 = vld [vmem:[%s11667_s5 + $0x3a4] sm:$0xff] }
 0x656   :  { %v11026_v50 = vadd.f32 %v4758_v45, %v4650_v40  ;;  %v8829_v45 = vld [vmem:[%s11667_s5 + $0x41c] sm:$0xff] }
 0x657   :  { %8058 = vmatmul.msk.bf16.gmra.mxu1 %vm2342_vm14, %v8810_v8 }
 0x658   :  { %v4770_v2 = vpop.f32.mrf.mxu0 }
 0x65a   :  { %v4482_v18 = vpop.f32.mrf.mxu2 }
 0x65b   :  { %v4616_v43 = vpop.f32.mrf.mxu3  ;;  %v4511_v24 = vadd.f32 %v4482_v18, %v10961_v17 }
 0x65c   :  { %v4651_v25 = vadd.f32 %v4616_v43, %v4507_v39  ;;  %v4353_v44 = vpop.f32.mrf.mxu1  ;;  %v8821_v39 = vld [vmem:[%s11667_s5 + $0x3d8] sm:$0xff] }
 0x65d   :  { %v11044_v63 = vadd.f32 %v4353_v44, %v10958_v11 }
 0x65e   :  { %v11046_v52 = vadd.f32 %v4760_v6, %v4651_v25 }
 0x65f   :  { %8107 = vmatmul.msk.bf16.gmra.mxu2 %vm2342_vm14, %v8815_v16 }
 0x660   :  { %8156 = vmatmul.msk.bf16.gmra.mxu3 %vm2342_vm14, %v8820_v61  ;;  %v4773_v35 = vpop.f32.mrf.mxu0 }
 0x662   :  { %v4485_v17 = vpop.f32.mrf.mxu2 }
 0x663   :  { %v4619_v4 = vpop.f32.mrf.mxu3  ;;  %v4512_v46 = vadd.f32 %v4485_v17, %v10972_v51 }
 0x664   :  { %v4652_v32 = vadd.f32 %v4619_v4, %v4508_v1  ;;  %v4356_v22 = vpop.f32.mrf.mxu1  ;;  %8209 = vmatmul.msk.bf16.gmra.mxu0 %vm2342_vm14, %v8829_v45 }
 0x665   :  { %v11052_v26 = vadd.f32 %v4356_v22, %v10969_v37  ;;  %v8816_v37 = vld [vmem:[%s11667_s5 + $0x3ac] sm:$0xff] }
 0x666   :  { %v11054_v11 = vadd.f32 %v4763_v12, %v4652_v32  ;;  %v8830_v12 = vld [vmem:[%s11667_s5 + $0x424] sm:$0xff]  ;;  %v8176_v32 = vld [vmem:[%s11667_s5 + $0x434] sm:$0xf] }
 0x667   :  { %8059 = vmatmul.msk.bf16.gmra.mxu1 %vm2342_vm14, %v4860_v5  ;;  %v5285_v5 = vunpack.c.l.b16 %v8176_v32 }
 0x668   :  { %v4775_v42 = vpop.f32.mrf.mxu0 }
 0x66a   :  { %v4487_v28 = vpop.f32.mrf.mxu2 }
 0x66b   :  { %v4621_v55 = vpop.f32.mrf.mxu3  ;;  %v4513_v51 = vadd.f32 %v4487_v28, %v10987_v58  ;;  %v5293_v28 = vpack.c.b16 %v5285_v5, %v5285_v5 }
 0x66c   :  { %v4653_v0 = vadd.f32 %v4621_v55, %v4509_v7  ;;  %v4358_v13 = vpop.f32.mrf.mxu1  ;;  %v8817_v7 = vld [vmem:[%s11667_s5 + $0x3b4] sm:$0xff] }
 0x66e   :  { %v11068_v19 = vadd.f32 %v4765_v23, %v4653_v0  ;;  %v8824_v0 = vld [vmem:[%s11667_s5 + $0x3f0] sm:$0xff] }
 0x66f   :  { %8108 = vmatmul.msk.bf16.gmra.mxu2 %vm2342_vm14, %v8816_v37  ;;  %v8839_v37 = vld [vmem:[%s11667_s5 + $0x474] sm:$0xff] }
 0x670   :  { %8157 = vmatmul.msk.bf16.gmra.mxu3 %vm2342_vm14, %v8821_v39  ;;  %v4778_v14 = vpop.f32.mrf.mxu0 }
 0x672   :  { %v4490_v6 = vpop.f32.mrf.mxu2 }
 0x673   :  { %v4624_v59 = vpop.f32.mrf.mxu3  ;;  %v4514_v58 = vadd.f32 %v4490_v6, %v10996_v57 }
 0x674   :  { %v4654_v56 = vadd.f32 %v4624_v59, %v4510_v10  ;;  %v4898_v1 = vpop.f32.mrf.mxu1  ;;  %8210 = vmatmul.msk.bf16.gmra.mxu0 %vm2342_vm14, %v8830_v12  ;;  %v8833_v10 = vld [vmem:[%s11667_s5 + $0x440] sm:$0xff] }
 0x675   :  { %v11079_v62 = vadd.f32 %v4898_v1, %v10998_v38  ;;  %v8822_v38 = vld [vmem:[%s11667_s5 + $0x3e0] sm:$0xff] }
 0x676   :  { %v11076_v41 = vadd.f32 %v4768_v31, %v4654_v56 }
 0x677   :  { %8256 = vmatmul.msk.bf16.vlgmr.msra.gmra.mxu1 %vm2342_vm14, %v8832_v27  ;;  %v8835_v27 = vld [vmem:[%s11667_s5 + $0x450] sm:$0xff] }
 0x678   :  { %v4780_v15 = vpop.f32.mrf.mxu0 }
 0x67a   :  { %v4492_v57 = vpop.f32.mrf.mxu2 }
 0x67b   :  { %v4626_v30 = vpop.f32.mrf.mxu3  ;;  %v4515_v36 = vadd.f32 %v4492_v57, %v11013_v54 }
 0x67c   :  { %v4655_v29 = vadd.f32 %v4626_v30, %v4511_v24  ;;  %v4900_v48 = vpop.f32.mrf.mxu1  ;;  %v8853_v30 = vld [vmem:[%s11667_s5 + $0x4ec] sm:$0xff] }
 0x67d   :  { %v11096_v49 = vadd.f32 %v4900_v48, %v11015_v9  ;;  %v8074_v9 = vld [vmem:[%s11667_s5 + $0x3bc] sm:$0xf] }
 0x67e   :  { %v11093_v34 = vadd.f32 %v4770_v2, %v4655_v29  ;;  %v4997_v47 = vunpack.c.l.b16 %v8074_v9  ;;  %v8836_v9 = vld [vmem:[%s11667_s5 + $0x458] sm:$0xff] }
 0x67f   :  { %8109 = vmatmul.msk.bf16.gmra.mxu2 %vm2342_vm14, %v8817_v7 }
 0x680   :  { %8158 = vmatmul.msk.bf16.gmra.mxu3 %vm2342_vm14, %v8822_v38  ;;  %v5005_v16 = vpack.c.b16 %v4997_v47, %v4997_v47 }
 0x681   :  { %v4783_v31 = vpop.f32.mrf.mxu0 }
 0x682   :  { %v4495_v54 = vpop.f32.mrf.mxu2 }
 0x683   :  { %v4629_v23 = vpop.f32.mrf.mxu3  ;;  %v4516_v60 = vadd.f32 %v4495_v54, %v11024_v33  ;;  %v8831_v33 = vld [vmem:[%s11667_s5 + $0x42c] sm:$0xff] }
 0x684   :  { %v4656_v53 = vadd.f32 %v4629_v23, %v4512_v46  ;;  %v4903_v40 = vpop.f32.mrf.mxu1  ;;  %8211 = vmatmul.msk.bf16.gmra.mxu0 %vm2342_vm14, %v8831_v33  ;;  %v8834_v46 = vld [vmem:[%s11667_s5 + $0x448] sm:$0xff] }
 0x685   :  { %v11110_v3 = vadd.f32 %v4903_v40, %v11026_v50  ;;  %v8823_v50 = vld [vmem:[%s11667_s5 + $0x3e8] sm:$0xff] }
 0x686   :  { %v11107_v8 = vadd.f32 %v4773_v35, %v4656_v53 }
 0x687   :  { %8257 = vmatmul.msk.bf16.gmra.mxu1 %vm2342_vm14, %v8833_v10 }
 0x689   :  { %v4785_v2 = vpop.f32.mrf.mxu0 }
 0x68a   :  { %v4497_v18 = vpop.f32.mrf.mxu2 }
 0x68b   :  { %v4631_v43 = vpop.f32.mrf.mxu3  ;;  %v4517_v24 = vadd.f32 %v4497_v18, %v11044_v63  ;;  %v8854_v18 = vld [vmem:[%s11667_s5 + $0x4f4] sm:$0xff] }
 0x68c   :  { %v4657_v25 = vadd.f32 %v4631_v43, %v4513_v51  ;;  %v4905_v61 = vpop.f32.mrf.mxu1 }
 0x68d   :  { %v11124_v20 = vadd.f32 %v4905_v61, %v11046_v52 }
 0x68e   :  { %v11121_v44 = vadd.f32 %v4775_v42, %v4657_v25  ;;  %v8841_v25 = vld [vmem:[%s11667_s5 + $0x484] sm:$0xff] }
 0x68f   :  { %8110 = vmatmul.msk.bf16.gmra.mxu2 %vm2342_vm14, %v5005_v16 }
 0x690   :  { %8159 = vmatmul.msk.bf16.gmra.mxu3 %vm2342_vm14, %v8823_v50 }
 0x691   :  { %v4788_v45 = vpop.f32.mrf.mxu0 }
 0x692   :  { %v4500_v21 = vpop.f32.mrf.mxu2 }
 0x693   :  { %v4634_v17 = vpop.f32.mrf.mxu3  ;;  %v4518_v63 = vadd.f32 %v4500_v21, %v11052_v26 }
 0x694   :  { %v4658_v4 = vadd.f32 %v4634_v17, %v4514_v58  ;;  %v4908_v52 = vpop.f32.mrf.mxu1  ;;  %8212 = vmatmul.msk.bf16.gmra.mxu0 %vm2342_vm14, %v5293_v28 }
 0x695   :  { %v11138_v35 = vadd.f32 %v4908_v52, %v11054_v11  ;;  %v8855_v52 = vld [vmem:[%s11667_s5 + $0x4fc] sm:$0xff] }
 0x696   :  { %v11135_v22 = vadd.f32 %v4778_v14, %v4658_v4 }
 0x697   :  { %8258 = vmatmul.msk.bf16.gmra.mxu1 %vm2342_vm14, %v8834_v46 }
 0x699   :  { %v4790_v42 = vpop.f32.mrf.mxu0 }
 0x69a   :  { %v4502_v26 = vpop.f32.mrf.mxu2 }
 0x69b   :  { %v4636_v55 = vpop.f32.mrf.mxu3  ;;  %v8847_v26 = vld [vmem:[%s11667_s5 + $0x4b8] sm:$0xff] }
 0x69c   :  { %v4659_v51 = vadd.f32 %v4636_v55, %v4515_v36  ;;  %v4910_v39 = vpop.f32.mrf.mxu1 }
 0x69d   :  { %v11151_v13 = vadd.f32 %v4910_v39, %v11068_v19  ;;  %v8125_v19 = vld [vmem:[%s11667_s5 + $0x3f8] sm:$0xf] }
 0x69e   :  { %v11148_v11 = vadd.f32 %v4780_v15, %v4659_v51 }
 0x69f   :  { %8307 = vmatmul.msk.bf16.vlgmr.msra.gmra.mxu2 %vm2342_vm14, %v8839_v37 }
 0x6a0   :  { %8160 = vmatmul.msk.bf16.gmra.mxu3 %vm2342_vm14, %v8824_v0 }
 0x6a1   :  { %v5330_v57 = vpop.f32.mrf.mxu0 }
 0x6a2   :  { %v5042_v59 = vpop.f32.mrf.mxu2 }
 0x6a3   :  { %v4639_v6 = vpop.f32.mrf.mxu3  ;;  %v5081_v56 = vadd.f32 %v5042_v59, %v11079_v62  ;;  %v5141_v62 = vunpack.c.l.b16 %v8125_v19  ;;  %v8838_v59 = vld [vmem:[%s11667_s5 + $0x468] sm:$0xff] }
 0x6a4   :  { %v4660_v58 = vadd.f32 %v4639_v6, %v4516_v60  ;;  %v4913_v1 = vpop.f32.mrf.mxu1  ;;  %8409 = vmatmul.msk.bf16.vlgmr.msra.gmra.mxu0 %vm2342_vm14, %v8853_v30 }
 0x6a5   :  { %v11165_v12 = vadd.f32 %v4913_v1, %v11076_v41  ;;  %v5149_v48 = vpack.c.b16 %v5141_v62, %v5141_v62  ;;  %v8840_v41 = vld [vmem:[%s11667_s5 + $0x47c] sm:$0xff]  ;;  %v8856_v1 = vld [vmem:[%s11667_s5 + $0x504] sm:$0xff] }
 0x6a6   :  { %v11162_v14 = vadd.f32 %v4783_v31, %v4660_v58  ;;  %v8848_v62 = vld [vmem:[%s11667_s5 + $0x4c0] sm:$0xff] }
 0x6a7   :  { %8259 = vmatmul.msk.bf16.gmra.mxu1 %vm2342_vm14, %v8835_v27 }
 0x6a9   :  { %v5332_v60 = vpop.f32.mrf.mxu0 }
 0x6aa   :  { %v5044_v29 = vpop.f32.mrf.mxu2 }
 0x6ab   :  { %v4641_v36 = vpop.f32.mrf.mxu3  ;;  %v5082_v38 = vadd.f32 %v5044_v29, %v11096_v49  ;;  %v8227_v29 = vld [vmem:[%s11667_s5 + $0x470] sm:$0xf] }
 0x6ac   :  { %v4661_v7 = vadd.f32 %v4641_v36, %v4517_v24  ;;  %v4915_v15 = vpop.f32.mrf.mxu1 }
 0x6ad   :  { %v11179_v23 = vadd.f32 %v4915_v15, %v11093_v34 }
 0x6ae   :  { %v11176_v54 = vadd.f32 %v4785_v2, %v4661_v7 }
 0x6af   :  { %8308 = vmatmul.msk.bf16.gmra.mxu2 %vm2342_vm14, %v8840_v41  ;;  %v5429_v41 = vunpack.c.l.b16 %v8227_v29 }
 0x6b0   :  { %8161 = vmatmul.msk.bf16.gmra.mxu3 %vm2342_vm14, %v5149_v48 }
 0x6b1   :  { %v5335_v47 = vpop.f32.mrf.mxu0 }
 0x6b2   :  { %v5047_v10 = vpop.f32.mrf.mxu2 }
 0x6b3   :  { %v4644_v53 = vpop.f32.mrf.mxu3  ;;  %v5083_v49 = vadd.f32 %v5047_v10, %v11110_v3  ;;  %v5437_v10 = vpack.c.b16 %v5429_v41, %v5429_v41 }
 0x6b4   :  { %v4662_v40 = vadd.f32 %v4644_v53, %v4518_v63  ;;  %v4918_v31 = vpop.f32.mrf.mxu1  ;;  %8410 = vmatmul.msk.bf16.gmra.mxu0 %vm2342_vm14, %v8854_v18  ;;  %v8837_v63 = vld [vmem:[%s11667_s5 + $0x460] sm:$0xff] }
 0x6b5   :  { %v11190_v34 = vadd.f32 %v4918_v31, %v11107_v8  ;;  %v8846_v8 = vld [vmem:[%s11667_s5 + $0x4b0] sm:$0xff] }
 0x6b6   :  { %v11187_v33 = vadd.f32 %v4788_v45, %v4662_v40  ;;  %v8857_v31 = vld [vmem:[%s11667_s5 + $0x50c] sm:$0xff] }
 0x6b7   :  { %8260 = vmatmul.msk.bf16.gmra.mxu1 %vm2342_vm14, %v8836_v9 }
 0x6b9   :  { %v5337_v61 = vpop.f32.mrf.mxu0 }
 0x6ba   :  { %v5049_v43 = vpop.f32.mrf.mxu2 }
 0x6bb   :  { %v4646_v3 = vpop.f32.mrf.mxu3  ;;  %v5084_v24 = vadd.f32 %v5049_v43, %v11124_v20  ;;  %v8849_v43 = vld [vmem:[%s11667_s5 + $0x4c8] sm:$0xff] }
 0x6bc   :  { %v4920_v16 = vpop.f32.mrf.mxu1 }
 0x6bd   :  { %v11205_v50 = vadd.f32 %v4920_v16, %v11121_v44 }
 0x6bf   :  { %8309 = vmatmul.msk.bf16.gmra.mxu2 %vm2342_vm14, %v8841_v25 }
 0x6c0   :  { %8358 = vmatmul.msk.bf16.vlgmr.msrb.gmra.mxu3 %vm2342_vm14, %v8846_v8 }
 0x6c1   :  { %v5340_v32 = vpop.f32.mrf.mxu0 }
 0x6c2   :  { %v5052_v2 = vpop.f32.mrf.mxu2 }
 0x6c3   :  { %v5186_v21 = vpop.f32.mrf.mxu3  ;;  %v5085_v20 = vadd.f32 %v5052_v2, %v11138_v35 }
 0x6c4   :  { %v5225_v17 = vadd.f32 %v5186_v21, %v5081_v56  ;;  %v4923_v4 = vpop.f32.mrf.mxu1  ;;  %8411 = vmatmul.msk.bf16.gmra.mxu0 %vm2342_vm14, %v8855_v52  ;;  %v8860_v21 = vld [vmem:[%s11667_s5 + $0x528] sm:$0xff] }
 0x6c5   :  { %v11214_v46 = vadd.f32 %v4923_v4, %v11135_v22  ;;  %v8842_v22 = vld [vmem:[%s11667_s5 + $0x48c] sm:$0xff] }
 0x6c6   :  { %v11216_v44 = vadd.f32 %v5330_v57, %v5225_v17 }
 0x6c7   :  { %8261 = vmatmul.msk.bf16.gmra.mxu1 %vm2342_vm14, %v8837_v63 }
 0x6c9   :  { %v5342_v37 = vpop.f32.mrf.mxu0 }
 0x6ca   :  { %v5054_v5 = vpop.f32.mrf.mxu2 }
 0x6cb   :  { %v5188_v35 = vpop.f32.mrf.mxu3  ;;  %v5086_v45 = vadd.f32 %v5054_v5, %v11151_v13 }
 0x6cc   :  { %v5226_v28 = vadd.f32 %v5188_v35, %v5082_v38  ;;  %v4925_v55 = vpop.f32.mrf.mxu1 }
 0x6cd   :  { %v11231_v51 = vadd.f32 %v4925_v55, %v11148_v11 }
 0x6ce   :  { %v11233_v0 = vadd.f32 %v5332_v60, %v5226_v28 }
 0x6cf   :  { %8310 = vmatmul.msk.bf16.gmra.mxu2 %vm2342_vm14, %v8842_v22 }
 0x6d0   :  { %8359 = vmatmul.msk.bf16.gmra.mxu3 %vm2342_vm14, %v8847_v26 }
 0x6d1   :  { %v5345_v27 = vpop.f32.mrf.mxu0 }
 0x6d2   :  { %v5057_v39 = vpop.f32.mrf.mxu2 }
 0x6d3   :  { %v5191_v13 = vpop.f32.mrf.mxu3  ;;  %v5087_v42 = vadd.f32 %v5057_v39, %v11165_v12 }
 0x6d4   :  { %v5227_v6 = vadd.f32 %v5191_v13, %v5083_v49  ;;  %v4928_v58 = vpop.f32.mrf.mxu1  ;;  %8412 = vmatmul.msk.bf16.gmra.mxu0 %vm2342_vm14, %v8856_v1 }
 0x6d5   :  { %v11242_v11 = vadd.f32 %v4928_v58, %v11162_v14  ;;  %v8843_v14 = vld [vmem:[%s11667_s5 + $0x494] sm:$0xff] }
 0x6d6   :  { %v11244_v56 = vadd.f32 %v5335_v47, %v5227_v6 }
 0x6d7   :  { %8262 = vmatmul.msk.bf16.gmra.mxu1 %vm2342_vm14, %v8838_v59 }
 0x6d9   :  { %v5347_v48 = vpop.f32.mrf.mxu0 }
 0x6da   :  { %v5059_v19 = vpop.f32.mrf.mxu2 }
 0x6db   :  { %v5193_v12 = vpop.f32.mrf.mxu3  ;;  %v5088_v57 = vadd.f32 %v5059_v19, %v11179_v23 }
 0x6dc   :  { %v5228_v30 = vadd.f32 %v5193_v12, %v5084_v24  ;;  %v4930_v36 = vpop.f32.mrf.mxu1 }
 0x6dd   :  { %v11262_v7 = vadd.f32 %v4930_v36, %v11176_v54 }
 0x6de   :  { %v11264_v38 = vadd.f32 %v5337_v61, %v5228_v30 }
 0x6df   :  { %8311 = vmatmul.msk.bf16.gmra.mxu2 %vm2342_vm14, %v8843_v14 }
 0x6e0   :  { %8360 = vmatmul.msk.bf16.gmra.mxu3 %vm2342_vm14, %v8848_v62 }
 0x6e1   :  { %v5350_v9 = vpop.f32.mrf.mxu0 }
 0x6e2   :  { %v5062_v15 = vpop.f32.mrf.mxu2 }
 0x6e3   :  { %v5196_v23 = vpop.f32.mrf.mxu3  ;;  %v5089_v60 = vadd.f32 %v5062_v15, %v11190_v34 }
 0x6e4   :  { %v5229_v53 = vadd.f32 %v5196_v23, %v5085_v20  ;;  %v4933_v40 = vpop.f32.mrf.mxu1  ;;  %8413 = vmatmul.msk.bf16.gmra.mxu0 %vm2342_vm14, %v8857_v31  ;;  %v8862_v23 = vld [vmem:[%s11667_s5 + $0x538] sm:$0xff] }
 0x6e5   :  { %v11270_v49 = vadd.f32 %v4933_v40, %v11187_v33  ;;  %v8844_v33 = vld [vmem:[%s11667_s5 + $0x49c] sm:$0xff] }
 0x6e6   :  { %v11272_v54 = vadd.f32 %v5340_v32, %v5229_v53  ;;  %v8858_v32 = vld [vmem:[%s11667_s5 + $0x514] sm:$0xff] }
 0x6e7   :  { %8263 = vmatmul.msk.bf16.gmra.mxu1 %vm2342_vm14, %v5437_v10 }
 0x6e9   :  { %v11288_v8 = vpop.f32.mrf.mxu0 }
 0x6ea   :  { %v5064_v47 = vpop.f32.mrf.mxu2 }
 0x6eb   :  { %v5198_v18 = vpop.f32.mrf.mxu3  ;;  %v5090_v34 = vadd.f32 %v5064_v47, %v11205_v50 }
 0x6ec   :  { %v5230_v3 = vadd.f32 %v5198_v18, %v5086_v45  ;;  %v4935_v24 = vpop.f32.mrf.mxu1  ;;  %v8845_v45 = vld [vmem:[%s11667_s5 + $0x4a4] sm:$0xff] }
 0x6ee   :  { %v11286_v25 = vadd.f32 %v5342_v37, %v5230_v3  ;;  %v8867_v3 = vld [vmem:[%s11667_s5 + $0x564] sm:$0xff] }
 0x6ef   :  { %8312 = vmatmul.msk.bf16.gmra.mxu2 %vm2342_vm14, %v8844_v33 }
 0x6f0   :  { %8361 = vmatmul.msk.bf16.gmra.mxu3 %vm2342_vm14, %v8849_v43 }
 0x6f1   :  { %v5355_v4 = vpop.f32.mrf.mxu0 }
 0x6f2   :  { %v5067_v16 = vpop.f32.mrf.mxu2 }
 0x6f3   :  { %v5201_v50 = vpop.f32.mrf.mxu3  ;;  %v5091_v61 = vadd.f32 %v5067_v16, %v11214_v46 }
 0x6f4   :  { %v5231_v2 = vadd.f32 %v5201_v50, %v5087_v42  ;;  %v5474_v20 = vpop.f32.mrf.mxu1  ;;  %8414 = vmatmul.msk.bf16.gmra.mxu0 %vm2342_vm14, %v8858_v32  ;;  %v8861_v42 = vld [vmem:[%s11667_s5 + $0x530] sm:$0xff] }
 0x6f5   :  { %v11299_v63 = vadd.f32 %v5474_v20, %v11216_v44  ;;  %v8850_v44 = vld [vmem:[%s11667_s5 + $0x4d0] sm:$0xff] }
 0x6f6   :  { %v11296_v17 = vadd.f32 %v5345_v27, %v5231_v2  ;;  %v8863_v2 = vld [vmem:[%s11667_s5 + $0x540] sm:$0xff] }
 0x6f7   :  { %8460 = vmatmul.msk.bf16.vlgmr.msrb.gmra.mxu1 %vm2342_vm14, %v8860_v21 }
 0x6f9   :  { %v11318_v55 = vpop.f32.mrf.mxu0 }
 0x6fa   :  { %v5069_v46 = vpop.f32.mrf.mxu2 }
 0x6fb   :  { %v5203_v52 = vpop.f32.mrf.mxu3  ;;  %v5092_v5 = vadd.f32 %v5069_v46, %v11231_v51 }
 0x6fc   :  { %v5232_v35 = vadd.f32 %v5203_v52, %v5088_v57  ;;  %v5476_v28 = vpop.f32.mrf.mxu1 }
 0x6fd   :  { %v11316_v26 = vadd.f32 %v5476_v28, %v11233_v0  ;;  %v8278_v0 = vld [vmem:[%s11667_s5 + $0x4ac] sm:$0xf] }
 0x6fe   :  { %v11313_v22 = vadd.f32 %v5347_v48, %v5232_v35  ;;  %v5573_v1 = vunpack.c.l.b16 %v8278_v0 }
 0x6ff   :  { %8313 = vmatmul.msk.bf16.gmra.mxu2 %vm2342_vm14, %v8845_v45 }
 0x700   :  { %8362 = vmatmul.msk.bf16.gmra.mxu3 %vm2342_vm14, %v8850_v44  ;;  %v5581_v14 = vpack.c.b16 %v5573_v1, %v5573_v1 }
 0x701   :  { %v5360_v27 = vpop.f32.mrf.mxu0 }
 0x702   :  { %v5072_v51 = vpop.f32.mrf.mxu2 }
 0x703   :  { %v5206_v37 = vpop.f32.mrf.mxu3  ;;  %v5093_v39 = vadd.f32 %v5072_v51, %v11242_v11  ;;  %v8859_v11 = vld [vmem:[%s11667_s5 + $0x51c] sm:$0xff] }
 0x704   :  { %v5233_v13 = vadd.f32 %v5206_v37, %v5089_v60  ;;  %v5479_v6 = vpop.f32.mrf.mxu1  ;;  %8415 = vmatmul.msk.bf16.gmra.mxu0 %vm2342_vm14, %v8859_v11 }
 0x705   :  { %v11332_v58 = vadd.f32 %v5479_v6, %v11244_v56  ;;  %v8851_v56 = vld [vmem:[%s11667_s5 + $0x4d8] sm:$0xff] }
 0x706   :  { %v11329_v59 = vadd.f32 %v5350_v9, %v5233_v13 }
 0x707   :  { %8461 = vmatmul.msk.bf16.gmra.mxu1 %vm2342_vm14, %v8861_v42 }
 0x709   :  { %v11348_v29 = vpop.f32.mrf.mxu0 }
 0x70a   :  { %v5074_v19 = vpop.f32.mrf.mxu2 }
 0x70b   :  { %v5208_v12 = vpop.f32.mrf.mxu3  ;;  %v5094_v57 = vadd.f32 %v5074_v19, %v11262_v7  ;;  %v6398_v19 = vld [vmem:[%s11668_s6 + $0x30] sm:$0xff] }
 0x70c   :  { %v11340_v30 = vadd.f32 %v5208_v12, %v5090_v34  ;;  %v5481_v62 = vpop.f32.mrf.mxu1  ;;  %v8852_v34 = vld [vmem:[%s11667_s5 + $0x4e0] sm:$0xff] }
 0x70d   :  { %v11346_v36 = vadd.f32 %v5481_v62, %v11264_v38  ;;  %v8380_v38 = vld [vmem:[%s11667_s5 + $0x524] sm:$0xf] }
 0x70e   :  { %v5861_v53 = vunpack.c.l.b16 %v8380_v38 }
 0x70f   :  { %8314 = vmatmul.msk.bf16.gmra.mxu2 %vm2342_vm14, %v5581_v14  ;;  %v8869_v14 = vld [vmem:[%s11667_s5 + $0x574] sm:$0xff] }
 0x710   :  { %8363 = vmatmul.msk.bf16.gmra.mxu3 %vm2342_vm14, %v8851_v56  ;;  %v5869_v31 = vpack.c.b16 %v5861_v53, %v5861_v53 }
 0x711   :  { %v5365_v9 = vpop.f32.mrf.mxu0 }
 0x712   :  { %v5077_v48 = vpop.f32.mrf.mxu2 }
 0x713   :  { %v5211_v41 = vpop.f32.mrf.mxu3  ;;  %v5095_v7 = vadd.f32 %v5077_v48, %v11270_v49 }
 0x714   :  { %v5235_v15 = vadd.f32 %v5211_v41, %v5091_v61  ;;  %v5484_v60 = vpop.f32.mrf.mxu1  ;;  %8416 = vmatmul.msk.bf16.gmra.mxu0 %vm2342_vm14, %v5869_v31  ;;  %v6392_v31 = vld [vmem:[%s11668_s6] sm:$0xff] }
 0x715   :  { %v11362_v40 = vadd.f32 %v5484_v60, %v11272_v54 }
 0x716   :  { %v11359_v10 = vadd.f32 %v5355_v4, %v5235_v15 }
 0x717   :  { %8462 = vmatmul.msk.bf16.gmra.mxu1 %vm2342_vm14, %v8862_v23  ;;  %v8865_v23 = vld [vmem:[%s11667_s5 + $0x550] sm:$0xff] }
 0x719   :  { %v5367_v43 = vpop.f32.mrf.mxu0 }
 0x71a   :  { %v5079_v49 = vpop.f32.mrf.mxu2 }
 0x71b   :  { %v5213_v47 = vpop.f32.mrf.mxu3 }
 0x71c   :  { %v11366_v18 = vadd.f32 %v5213_v47, %v5092_v5  ;;  %v5486_v54 = vpop.f32.mrf.mxu1 }
 0x71d   :  { %v11375_v33 = vadd.f32 %v5486_v54, %v11286_v25  ;;  %v8329_v25 = vld [vmem:[%s11667_s5 + $0x4e8] sm:$0xf] }
 0x71e   :  { %v5717_v46 = vunpack.c.l.b16 %v8329_v25  ;;  %v5380_v47 = vadd.f32 %v11318_v55, %v11366_v18  ;;  %v8875_v54 = vld [vmem:[%s11667_s5 + $0x5a8] sm:$0xff] }
 0x71f   :  { %8511 = vmatmul.msk.bf16.vlgmr.msrb.gmra.mxu2 %vm2342_vm14, %v8867_v3 }
 0x720   :  { %8364 = vmatmul.msk.bf16.gmra.mxu3 %vm2342_vm14, %v8852_v34  ;;  %v5725_v44 = vpack.c.b16 %v5717_v46, %v5717_v46 }
 0x721   :  { %v5906_v32 = vpop.f32.mrf.mxu0 }
 0x722   :  { %v5618_v16 = vpop.f32.mrf.mxu2 }
 0x723   :  { %v5216_v24 = vpop.f32.mrf.mxu3  ;;  %v5657_v61 = vadd.f32 %v5618_v16, %v11299_v63  ;;  %v6404_v63 = vld [vmem:[%s11668_s6 + $0x60] sm:$0xff] }
 0x724   :  { %v5237_v50 = vadd.f32 %v5216_v24, %v5093_v39  ;;  %v5489_v21 = vpop.f32.mrf.mxu1  ;;  %6469 = vperm.xlu2 %8930, %v6404_v63   ;;  %v6403_v39 = vld [vmem:[%s11668_s6 + $0x58] sm:$0xff] }
 0x725   :  { %v11389_v4 = vadd.f32 %v5489_v21, %v11296_v17  ;;  %v8868_v17 = vld [vmem:[%s11667_s5 + $0x56c] sm:$0xff] }
 0x726   :  { %v11386_v20 = vadd.f32 %v5360_v27, %v5237_v50 }
 0x727   :  { %8463 = vmatmul.msk.bf16.gmra.mxu1 %vm2342_vm14, %v8863_v2 }
 0x729   :  { %v11404_v37 = vpop.f32.mrf.mxu0 }
 0x72a   :  { %v5620_v5 = vpop.f32.mrf.mxu2 }
 0x72b   :  { %v5218_v52 = vpop.f32.mrf.mxu3  ;;  %v5658_v45 = vadd.f32 %v5620_v5, %v11316_v26 }
 0x72c   :  { %v11395_v35 = vadd.f32 %v5218_v52, %v5094_v57  ;;  %v5491_v28 = vpop.f32.mrf.mxu1  ;;  %6464 = vperm.xlu2 %8930, %v6403_v39  }
 0x72d   :  { %v11402_v51 = vadd.f32 %v5491_v28, %v11313_v22  ;;  %v8864_v22 = vld [vmem:[%s11667_s5 + $0x548] sm:$0xff] }
 0x72e   :  { %v5382_v52 = vadd.f32 %v11348_v29, %v11395_v35 }
 0x72f   :  { %8512 = vmatmul.msk.bf16.gmra.mxu2 %vm2342_vm14, %v8868_v17  ;;  %v8431_v17 = vld [vmem:[%s11667_s5 + $0x560] sm:$0xf] }
 0x730   :  { %8365 = vmatmul.msk.bf16.gmra.mxu3 %vm2342_vm14, %v5725_v44  ;;  %v6005_v29 = vunpack.c.l.b16 %v8431_v17 }
 0x731   :  { %v5911_v1 = vpop.f32.mrf.mxu0 }
 0x732   :  { %v5623_v13 = vpop.f32.mrf.mxu2 }
 0x733   :  { %v5221_v26 = vpop.f32.mrf.mxu3  ;;  %v5659_v6 = vadd.f32 %v5623_v13, %v11332_v58 }
 0x734   :  { %v5239_v42 = vadd.f32 %v5221_v26, %v5095_v7  ;;  %v5494_v0 = vpop.f32.mrf.mxu1  ;;  %6439 = vperm.xlu2 %8930, %v6398_v19   ;;  %v5378_v19 = vadd.f32 %v11288_v8, %v11340_v30 }
 0x735   :  { %v11418_v11 = vadd.f32 %v5494_v0, %v11329_v59  ;;  %v8874_v59 = vld [vmem:[%s11667_s5 + $0x5a0] sm:$0xff] }
 0x736   :  { %v11415_v27 = vadd.f32 %v5365_v9, %v5239_v42  ;;  %v6013_v42 = vpack.c.b16 %v6005_v29, %v6005_v29 }
 0x737   :  { %8464 = vmatmul.msk.bf16.gmra.mxu1 %vm2342_vm14, %v8864_v22 }
 0x739   :  { %v11433_v62 = vpop.f32.mrf.mxu0 }
 0x73a   :  { %v5625_v58 = vpop.f32.mrf.mxu2 }
 0x73b   :  { %v5223_v12 = vpop.f32.mrf.mxu3  ;;  %v5660_v57 = vadd.f32 %v5625_v58, %v11346_v36  ;;  %v6397_v36 = vld [vmem:[%s11668_s6 + $0x28] sm:$0xff] }
 0x73c   :  { %v11431_v56 = vpop.f32.mrf.mxu1  ;;  %6434 = vperm.xlu2 %8930, %v6397_v36  }
 0x73d   :  { %v5522_v12 = vadd.f32 %v11431_v56, %v5378_v19  ;;  %v8880_v19 = vld [vmem:[%s11667_s5 + $0x5d0] sm:$0xff] }
 0x73f   :  { %8513 = vmatmul.msk.bf16.gmra.mxu2 %vm2342_vm14, %v8869_v14 }
 0x740   :  { %8562 = vmatmul.msk.bf16.vlgmr.msra.gmra.mxu3 %vm2342_vm14, %v8874_v59  ;;  %v8872_v59 = vld [vmem:[%s11667_s5 + $0x58c] sm:$0xff] }
 0x741   :  { %v5916_v9 = vpop.f32.mrf.mxu0 }
 0x742   :  { %v5628_v48 = vpop.f32.mrf.mxu2 }
 0x743   :  { %v5762_v41 = vpop.f32.mrf.mxu3  ;;  %v5661_v7 = vadd.f32 %v5628_v48, %v11362_v40 }
 0x744   :  { %v5801_v15 = vadd.f32 %v5762_v41, %v5657_v61  ;;  %v5499_v38 = vpop.f32.mrf.mxu1  ;;  %6409 = vperm.xlu2 %8930, %v6392_v31   ;;  %v8866_v61 = vld [vmem:[%s11667_s5 + $0x558] sm:$0xff] }
 0x745   :  { %v11445_v60 = vadd.f32 %v5499_v38, %v11359_v10  ;;  %v8870_v10 = vld [vmem:[%s11667_s5 + $0x57c] sm:$0xff] }
 0x746   :  { %v11447_v53 = vadd.f32 %v5906_v32, %v5801_v15 }
 0x747   :  { %8465 = vmatmul.msk.bf16.gmra.mxu1 %vm2342_vm14, %v8865_v23 }
 0x749   :  { %v5918_v16 = vpop.f32.mrf.mxu0 }
 0x74a   :  { %v5630_v40 = vpop.f32.mrf.mxu2 }
 0x74b   :  { %v5764_v49 = vpop.f32.mrf.mxu3  ;;  %v5662_v34 = vadd.f32 %v5630_v40, %v11375_v33 }
 0x74c   :  { %v11456_v3 = vadd.f32 %v5764_v49, %v5658_v45  ;;  %v5501_v43 = vpop.f32.mrf.mxu1  ;;  %v8871_v45 = vld [vmem:[%s11667_s5 + $0x584] sm:$0xff] }
 0x74d   :  { %v5524_v24 = vadd.f32 %v5501_v43, %v5380_v47 }
 0x74e   :  { %v5946_v49 = vadd.f32 %v11404_v37, %v11456_v3 }
 0x74f   :  { %8514 = vmatmul.msk.bf16.gmra.mxu2 %vm2342_vm14, %v8870_v10  ;;  %v8873_v10 = vld [vmem:[%s11667_s5 + $0x594] sm:$0xff] }
 0x750   :  { %8563 = vmatmul.msk.bf16.gmra.mxu3 %vm2342_vm14, %v8875_v54 }
 0x751   :  { %v5921_v32 = vpop.f32.mrf.mxu0 }
 0x752   :  { %v5633_v55 = vpop.f32.mrf.mxu2 }
 0x753   :  { %v5767_v18 = vpop.f32.mrf.mxu3  ;;  %v5663_v33 = vadd.f32 %v5633_v55, %v11389_v4 }
 0x754   :  { %v5803_v50 = vadd.f32 %v5767_v18, %v5659_v6  ;;  %v5504_v2 = vpop.f32.mrf.mxu1 }
 0x755   :  { %v11471_v21 = vadd.f32 %v5504_v2, %v11386_v20  ;;  %v8876_v20 = vld [vmem:[%s11667_s5 + $0x5b0] sm:$0xff] }
 0x756   :  { %v11473_v25 = vadd.f32 %v5911_v1, %v5803_v50 }
 0x757   :  { %8466 = vmatmul.msk.bf16.gmra.mxu1 %vm2342_vm14, %v8866_v61 }
 0x759   :  { %v5923_v39 = vpop.f32.mrf.mxu0 }
 0x75a   :  { %v5635_v46 = vpop.f32.mrf.mxu2 }
 0x75b   :  { %v5769_v63 = vpop.f32.mrf.mxu3  ;;  %v5664_v4 = vadd.f32 %v5635_v46, %v11402_v51 }
 0x75c   :  { %v11479_v5 = vadd.f32 %v5769_v63, %v5660_v57  ;;  %v5506_v44 = vpop.f32.mrf.mxu1 }
 0x75d   :  { %v5526_v28 = vadd.f32 %v5506_v44, %v5382_v52 }
 0x75e   :  { %v5948_v52 = vadd.f32 %v11433_v62, %v11479_v5 }
 0x75f   :  { %8515 = vmatmul.msk.bf16.gmra.mxu2 %vm2342_vm14, %v8871_v45 }
 0x760   :  { %8564 = vmatmul.msk.bf16.gmra.mxu3 %vm2342_vm14, %v8876_v20  ;;  %v8879_v20 = vld [vmem:[%s11667_s5 + $0x5c8] sm:$0xff] }
 0x761   :  { %v5926_v1 = vpop.f32.mrf.mxu0 }
 0x762   :  { %v5638_v35 = vpop.f32.mrf.mxu2 }
 0x763   :  { %v5772_v51 = vpop.f32.mrf.mxu3  ;;  %v5665_v26 = vadd.f32 %v5638_v35, %v11418_v11 }
 0x764   :  { %v5805_v13 = vadd.f32 %v5772_v51, %v5661_v7  ;;  %v5509_v6 = vpop.f32.mrf.mxu1 }
 0x765   :  { %v11494_v22 = vadd.f32 %v5509_v6, %v11415_v27  ;;  %v8877_v27 = vld [vmem:[%s11667_s5 + $0x5b8] sm:$0xff] }
 0x766   :  { %v11496_v0 = vadd.f32 %v5916_v9, %v5805_v13 }
 0x767   :  { %8467 = vmatmul.msk.bf16.gmra.mxu1 %vm2342_vm14, %v6013_v42 }
 0x769   :  { %v5928_v41 = vpop.f32.mrf.mxu0 }
 0x76a   :  { %v5640_v58 = vpop.f32.mrf.mxu2 }
 0x76b   :  { %v5774_v57 = vpop.f32.mrf.mxu3  ;;  %v5666_v14 = vadd.f32 %v5640_v58, %v5522_v12 }
 0x76c   :  { %v5806_v11 = vadd.f32 %v5774_v57, %v5662_v34  ;;  %v5511_v36 = vpop.f32.mrf.mxu1 }
 0x76e   :  { %v5950_v48 = vadd.f32 %v5918_v16, %v5806_v11 }
 0x76f   :  { %8516 = vmatmul.msk.bf16.gmra.mxu2 %vm2342_vm14, %v8872_v59 }
 0x770   :  { %8565 = vmatmul.msk.bf16.gmra.mxu3 %vm2342_vm14, %v8877_v27  ;;  %v11563_v27 = vpop.permute.xlu0 %6474 }
 0x771   :  { %v5931_v9 = vpop.f32.mrf.mxu0 }
 0x772   :  { %v5643_v8 = vpop.f32.mrf.mxu2 }
 0x773   :  { %v5777_v30 = vpop.f32.mrf.mxu3  ;;  %v5667_v56 = vadd.f32 %v5643_v8, %v11445_v60  ;;  %v8878_v60 = vld [vmem:[%s11667_s5 + $0x5c0] sm:$0xff] }
 0x774   :  { %v5807_v7 = vadd.f32 %v5777_v30, %v5663_v33  ;;  %v6050_v15 = vpop.f32.mrf.mxu1  ;;  %v8482_v33 = vld [vmem:[%s11667_s5 + $0x59c] sm:$0xf] }
 0x775   :  { %v6089_v38 = vadd.f32 %v6050_v15, %v11447_v53  ;;  %v6538_v15 = vld [vmem:[%s11669_s8 + $0x38] sm:$0xff] }
 0x776   :  { %v11511_v23 = vadd.f32 %v5921_v32, %v5807_v7  ;;  %v6149_v32 = vunpack.c.l.b16 %v8482_v33 }
 0x778   :  { %v6157_v45 = vpack.c.b16 %v6149_v32, %v6149_v32  ;;  %v6532_v32 = vld [vmem:[%s11669_s8 + $0x8] sm:$0xff] }
 0x779   :  { %v5933_v16 = vpop.f32.mrf.mxu0 }
 0x77a   :  { %v5645_v31 = vpop.f32.mrf.mxu2 }
 0x77b   :  { %v5779_v40 = vpop.f32.mrf.mxu3  ;;  %v5668_v47 = vadd.f32 %v5645_v31, %v5524_v24 }
 0x77c   :  { %v5808_v34 = vadd.f32 %v5779_v40, %v5664_v4  ;;  %v6052_v54 = vpop.f32.mrf.mxu1 }
 0x77d   :  { %v11524_v53 = vadd.f32 %v6052_v54, %v5946_v49  ;;  %v6533_v54 = vld [vmem:[%s11669_s8 + $0x10] sm:$0xff] }
 0x77e   :  { %v11522_v43 = vadd.f32 %v5923_v39, %v5808_v34 }
 0x77f   :  { %8517 = vmatmul.msk.bf16.gmra.mxu2 %vm2342_vm14, %v8873_v10  ;;  %v11577_v10 = vpop.permute.xlu0 %6449 }
 0x780   :  { %8566 = vmatmul.msk.bf16.gmra.mxu3 %vm2342_vm14, %v8878_v60 }
 0x781   :  { %v5936_v2 = vpop.f32.mrf.mxu0 }
 0x782   :  { %v5648_v37 = vpop.f32.mrf.mxu2 }
 0x783   :  { %v5782_v3 = vpop.f32.mrf.mxu3  ;;  %v5669_v24 = vadd.f32 %v5648_v37, %v11471_v21 }
 0x784   :  { %v5809_v55 = vadd.f32 %v5782_v3, %v5665_v26  ;;  %v6055_v18 = vpop.f32.mrf.mxu1  ;;  %v11584_v3 = vpop.permute.xlu1 %6479 }
 0x785   :  { %v11535_v61 = vadd.f32 %v6055_v18, %v11473_v25 }
 0x786   :  { %v11532_v50 = vadd.f32 %v5926_v1, %v5809_v55 }
 0x789   :  { %v5938_v25 = vpop.f32.mrf.mxu0 }
 0x78a   :  { %v5650_v46 = vpop.f32.mrf.mxu2 }
 0x78b   :  { %v5784_v63 = vpop.f32.mrf.mxu3  ;;  %v5670_v4 = vadd.f32 %v5650_v46, %v5526_v28 }
 0x78c   :  { %v5810_v21 = vadd.f32 %v5784_v63, %v5666_v14  ;;  %v6057_v44 = vpop.f32.mrf.mxu1 }
 0x78d   :  { %v11544_v39 = vadd.f32 %v6057_v44, %v5948_v52 }
 0x78e   :  { %v11542_v17 = vadd.f32 %v5928_v41, %v5810_v21  ;;  %v11596_v21 = vpop.permute.xlu1 %6459 }
 0x78f   :  { %8518 = vmatmul.msk.bf16.gmra.mxu2 %vm2342_vm14, %v6157_v45 }
 0x790   :  { %8567 = vmatmul.msk.bf16.gmra.mxu3 %vm2342_vm14, %v8879_v20 }
 0x791   :  { %v5941_v13 = vpop.f32.mrf.mxu0 }
 0x792   :  { %v5653_v29 = vpop.f32.mrf.mxu2 }
 0x793   :  { %v5787_v35 = vpop.f32.mrf.mxu3  ;;  %v5671_v62 = vadd.f32 %v5653_v29, %v11494_v22  ;;  %v6539_v22 = vld [vmem:[%s11669_s8 + $0x40] sm:$0xff] }
 0x794   :  { %v5811_v5 = vadd.f32 %v5787_v35, %v5667_v56  ;;  %v6060_v28 = vpop.f32.mrf.mxu1  ;;  %6584 = vperm.xlu2 %8930, %v6539_v22  }
 0x795   :  { %v6093_v26 = vadd.f32 %v6060_v28, %v11496_v0  ;;  %v11561_v0 = vpop.permute.xlu2 %6469 }
 0x796   :  { %v11549_v51 = vadd.f32 %v5931_v9, %v5811_v5  ;;  %v11600_v5 = vpop.permute.xlu1 %6454 }
 0x799   :  { %v5943_v14 = vpop.f32.mrf.mxu0 }
 0x79a   :  { %v5655_v42 = vpop.f32.mrf.mxu2 }
 0x79b   :  { %v5789_v6 = vpop.f32.mrf.mxu3 }
 0x79c   :  { %v5812_v1 = vadd.f32 %v5789_v6, %v5668_v47  ;;  %v6062_v12 = vpop.f32.mrf.mxu1  ;;  %6579 = vperm.xlu2 %8930, %v6538_v15  }
 0x79d   :  { %v6094_v57 = vadd.f32 %v6062_v12, %v5950_v48  ;;  %v8533_v48 = vld [vmem:[%s11667_s5 + $0x5d8] sm:$0xf]  ;;  %v11574_v9 = vpop.permute.xlu2 %6464 }
 0x79e   :  { %v11555_v58 = vadd.f32 %v5933_v16, %v5812_v1  ;;  %v6293_v7 = vunpack.c.l.b16 %v8533_v48 }
 0x7a0   :  { %8568 = vmatmul.msk.bf16.gmra.mxu3 %vm2342_vm14, %v8880_v19  ;;  %v6301_v47 = vpack.c.b16 %v6293_v7, %v6293_v7 }
 0x7a2   :  { %v6194_v59 = vpop.f32.mrf.mxu2 }
 0x7a3   :  { %v5792_v11 = vpop.f32.mrf.mxu3  ;;  %v6233_v41 = vadd.f32 %v6194_v59, %v6089_v38 }
 0x7a4   :  { %v5813_v36 = vadd.f32 %v5792_v11, %v5669_v24  ;;  %v6065_v8 = vpop.f32.mrf.mxu1  ;;  %6554 = vperm.xlu2 %8930, %v6533_v54   ;;  %v6430_v11 = vpop.permute.xlu1 %6429 }
 0x7a5   :  { %v6095_v56 = vadd.f32 %v6065_v8, %v11511_v23  ;;  %v11587_v55 = vpop.permute.xlu2 %6439 }
 0x7a6   :  { %v11568_v30 = vadd.f32 %v5936_v2, %v5813_v36  ;;  %v11590_v2 = vpop.permute.xlu0 %6444 }
 0x7aa   :  { %v6196_v40 = vpop.f32.mrf.mxu2 }
 0x7ab   :  { %v5794_v31 = vpop.f32.mrf.mxu3  ;;  %v6234_v49 = vadd.f32 %v6196_v40, %v11524_v53 }
 0x7ac   :  { %v5814_v38 = vadd.f32 %v5794_v31, %v5670_v4  ;;  %v6067_v34 = vpop.f32.mrf.mxu1  ;;  %6549 = vperm.xlu2 %8930, %v6532_v32  }
 0x7ad   :  { %v6096_v23 = vadd.f32 %v6067_v34, %v11522_v43  ;;  %v6435_v45 = vpop.permute.xlu2 %6434 }
 0x7ae   :  { %v5958_v60 = vadd.f32 %v5938_v25, %v5814_v38  ;;  %v6420_v20 = vpop.permute.xlu0 %6419 }
 0x7b0   :  { %8569 = vmatmul.msk.bf16.gmra.mxu3 %vm2342_vm14, %v6301_v47 }
 0x7b2   :  { %v6199_v37 = vpop.f32.mrf.mxu2 }
 0x7b3   :  { %v5797_v16 = vpop.f32.mrf.mxu3  ;;  %v6235_v53 = vadd.f32 %v6199_v37, %v11535_v61 }
 0x7b4   :  { %v5815_v24 = vadd.f32 %v5797_v16, %v5671_v62  ;;  %v6070_v18 = vpop.f32.mrf.mxu1 }
 0x7b5   :  { %v6097_v43 = vadd.f32 %v6070_v18, %v11532_v50  ;;  %v6410_v28 = vpop.permute.xlu2 %6409 }
 0x7b6   :  { %v5959_v33 = vadd.f32 %v5941_v13, %v5815_v24  ;;  %v6415_v19 = vpop.permute.xlu0 %6414 }
 0x7ba   :  { %v6201_v63 = vpop.f32.mrf.mxu2 }
 0x7bb   :  { %v5799_v46 = vpop.f32.mrf.mxu3  ;;  %v6236_v52 = vadd.f32 %v6201_v63, %v11544_v39 }
 0x7bc   :  { %v6072_v4 = vpop.f32.mrf.mxu1 }
 0x7bd   :  { %v6098_v61 = vadd.f32 %v6072_v4, %v11542_v17 }
 0x7c2   :  { %v6204_v44 = vpop.f32.mrf.mxu2 }
 0x7c3   :  { %v6338_v50 = vpop.f32.mrf.mxu3  ;;  %v6237_v25 = vadd.f32 %v6204_v44, %v6093_v26 }
 0x7c4   :  { %v6377_v29 = vadd.f32 %v6338_v50, %v6233_v41  ;;  %v6075_v35 = vpop.f32.mrf.mxu1 }
 0x7c5   :  { %v6099_v62 = vadd.f32 %v6075_v35, %v11549_v51 }
 0x7c6   :  { %v6482_v39 = vadd.f32 %v6410_v28, %v6377_v29 }
 0x7c8   :  { %v6497_v14 = vmax.f32 %v6482_v39, 0.0 }
 0x7ca   :  { %v6206_v13 = vpop.f32.mrf.mxu2 }
 0x7cb   :  { %v6340_v42 = vpop.f32.mrf.mxu3  ;;  %v6238_v6 = vadd.f32 %v6206_v13, %v6094_v57 }
 0x7cc   :  { %v6378_v1 = vadd.f32 %v6340_v42, %v6234_v49  ;;  %v6077_v12 = vpop.f32.mrf.mxu1 }
 0x7cd   :  { %v11603_v22 = vadd.f32 %v6077_v12, %v11555_v58  ;;  %v6425_v58 = vpop.permute.xlu1 %6424 }
 0x7ce   :  { %v6483_v17 = vadd.f32 %v6415_v19, %v6378_v1 }
 0x7d0   :  { %v6498_v26 = vmax.f32 %v6483_v17, 0.0 }
 0x7d2   :  { %v11605_v59 = vpack.c.bf16 %v6498_v26, %v6497_v14  ;;  %v6209_v51 = vpop.f32.mrf.mxu2 }
 0x7d3   :  { %v6343_v36 = vpop.f32.mrf.mxu3  ;;  %v6239_v41 = vadd.f32 %v6209_v51, %v6095_v56 }
 0x7d4   :  { %v6379_v8 = vadd.f32 %v6343_v36, %v6235_v53  ;;  %v6080_v48 = vpop.f32.mrf.mxu1 }
 0x7d5   :  { %v11608_v7 = vadd.f32 %v6080_v48, %v11568_v30 }
 0x7d6   :  { %v6484_v31 = vadd.f32 %v6420_v20, %v6379_v8 }
 0x7d8   :  { %v6499_v54 = vmax.f32 %v6484_v31, 0.0 }
 0x7da   :  { %v6211_v57 = vpop.f32.mrf.mxu2 }
 0x7db   :  { %v6345_v15 = vpop.f32.mrf.mxu3  ;;  %v6240_v40 = vadd.f32 %v6211_v57, %v6096_v23 }
 0x7dc   :  { %v6380_v38 = vadd.f32 %v6345_v15, %v6236_v52  ;;  %v6082_v49 = vpop.f32.mrf.mxu1 }
 0x7dd   :  { %v6102_v34 = vadd.f32 %v6082_v49, %v5958_v60 }
 0x7de   :  { %v6485_v47 = vadd.f32 %v6425_v58, %v6380_v38 }
 0x7e0   :  { %v6500_v16 = vmax.f32 %v6485_v47, 0.0 }
 0x7e2   :  { %v11610_v37 = vpack.c.bf16 %v6500_v16, %v6499_v54  ;;  %v6214_v24 = vpop.f32.mrf.mxu2 }
 0x7e3   :  { %v6348_v56 = vpop.f32.mrf.mxu3  ;;  %v6241_v53 = vadd.f32 %v6214_v24, %v6097_v43 }
 0x7e4   :  { %v6381_v18 = vadd.f32 %v6348_v56, %v6237_v25  ;;  %v6085_v32 = vpop.f32.mrf.mxu1 }
 0x7e5   :  { %v6103_v30 = vadd.f32 %v6085_v32, %v5959_v33 }
 0x7e6   :  { %v6486_v4 = vadd.f32 %v6430_v11, %v6381_v18 }
 0x7e8   :  { %v6501_v50 = vmax.f32 %v6486_v4, 0.0 }
 0x7ea   :  { %v6216_v46 = vpop.f32.mrf.mxu2 }
 0x7eb   :  { %v6350_v63 = vpop.f32.mrf.mxu3  ;;  %v6242_v20 = vadd.f32 %v6216_v46, %v6098_v61 }
 0x7ec   :  { %v6382_v23 = vadd.f32 %v6350_v63, %v6238_v6  ;;  %v6087_v52 = vpop.f32.mrf.mxu1 }
 0x7ee   :  { %v6487_v44 = vadd.f32 %v6435_v45, %v6382_v23 }
 0x7f0   :  { %v6502_v29 = vmax.f32 %v6487_v44, 0.0 }
 0x7f2   :  { %v6514_v60 = vpack.c.bf16 %v6502_v29, %v6501_v50  ;;  %v6219_v35 = vpop.f32.mrf.mxu2  ;;  %v6595_v29 = vpop.permute.xlu1 %6594 }
 0x7f3   :  { %v6353_v28 = vpop.f32.mrf.mxu3  ;;  %v6243_v13 = vadd.f32 %v6219_v35, %v6099_v62 }
 0x7f4   :  { %v6383_v42 = vadd.f32 %v6353_v28, %v6239_v41 }
 0x7f6   :  { %v6488_v43 = vadd.f32 %v11587_v55, %v6383_v42 }
 0x7f8   :  { %v6503_v19 = vmax.f32 %v6488_v43, 0.0 }
 0x7fa   :  { %v6221_v39 = vpop.f32.mrf.mxu2  ;;  %v6575_v35 = vpop.permute.xlu1 %6574 }
 0x7fb   :  { %v6355_v1 = vpop.f32.mrf.mxu3 }
 0x7fc   :  { %v6384_v25 = vadd.f32 %v6355_v1, %v6240_v40  ;;  %v6590_v1 = vpop.permute.xlu0 %6589 }
 0x7fe   :  { %v6489_v33 = vadd.f32 %v11590_v2, %v6384_v25  ;;  %v6244_v2 = vadd.f32 %v6221_v39, %v11603_v22 }
 0x800   :  { %v6504_v12 = vmax.f32 %v6489_v33, 0.0 }
 0x802   :  { %v6515_v61 = vpack.c.bf16 %v6504_v12, %v6503_v19  ;;  %v6224_v6 = vpop.f32.mrf.mxu2 }
 0x803   :  { %v6358_v17 = vpop.f32.mrf.mxu3 }
 0x804   :  { %v6385_v45 = vadd.f32 %v6358_v17, %v6241_v53 }
 0x806   :  { %v6490_v11 = vadd.f32 %v11577_v10, %v6385_v45  ;;  %v6565_v45 = vpop.permute.xlu0 %6564 }
 0x808   :  { %v6505_v36 = vmax.f32 %v6490_v11, 0.0 }
 0x80a   :  { %v6226_v14 = vpop.f32.mrf.mxu2 }
 0x80b   :  { %v6360_v26 = vpop.f32.mrf.mxu3  ;;  %v6246_v24 = vadd.f32 %v6226_v14, %v6102_v34  ;;  %v8884_v34 = vld [vmem:[%s11671_s7 + $0x18] sm:$0xff] }
 0x80c   :  { %v6386_v51 = vadd.f32 %v6360_v26, %v6242_v20 }
 0x80e   :  { %v6491_v62 = vadd.f32 %v11600_v5, %v6386_v51  ;;  %v6245_v5 = vadd.f32 %v6224_v6, %v11608_v7  ;;  %v6560_v11 = vpop.permute.xlu0 %6559 }
 0x810   :  { %v6506_v41 = vmax.f32 %v6491_v62, 0.0 }
 0x812   :  { %v6516_v8 = vpack.c.bf16 %v6506_v41, %v6505_v36  ;;  %v6229_v55 = vpop.f32.mrf.mxu2 }
 0x813   :  { %v6363_v48 = vpop.f32.mrf.mxu3 }
 0x814   :  { %v6387_v57 = vadd.f32 %v6363_v48, %v6243_v13  ;;  %v6570_v13 = vpop.permute.xlu1 %6569 }
 0x816   :  { %v6492_v40 = vadd.f32 %v11596_v21, %v6387_v57  ;;  %v6247_v21 = vadd.f32 %v6229_v55, %v6103_v30 }
 0x818   :  { %v6507_v49 = vmax.f32 %v6492_v40, 0.0 }
 0x81a   :  { %v6231_v31 = vpop.f32.mrf.mxu2 }
 0x81b   :  { %v6365_v15 = vpop.f32.mrf.mxu3 }
 0x81c   :  { %v6388_v38 = vadd.f32 %v6365_v15, %v6244_v2  ;;  %v6545_v43 = vpop.permute.xlu1 %6544 }
 0x81e   :  { %v6493_v58 = vadd.f32 %v11574_v9, %v6388_v38 }
 0x820   :  { %v6508_v10 = vmax.f32 %v6493_v58, 0.0 }
 0x822   :  { %v6517_v47 = vpack.c.bf16 %v6508_v10, %v6507_v49 }
 0x823   :  { %v6368_v54 = vpop.f32.mrf.mxu3 }
 0x824   :  { %v6389_v16 = vadd.f32 %v6368_v54, %v6245_v5 }
 0x826   :  { %v6494_v53 = vadd.f32 %v11561_v0, %v6389_v16  ;;  %v8881_v0 = vld [vmem:[%s11671_s7] sm:$0xff] }
 0x828   :  { %v6509_v32 = vmax.f32 %v6494_v53, 0.0 }
 0x82b   :  { %v6370_v56 = vpop.f32.mrf.mxu3 }
 0x82c   :  { %v6390_v18 = vadd.f32 %v6370_v56, %v6246_v24 }
 0x82e   :  { %v6495_v22 = vadd.f32 %v11563_v27, %v6390_v18  ;;  %v8882_v27 = vld [vmem:[%s11671_s7 + $0x8] sm:$0xff] }
 0x830   :  { %v6510_v46 = vmax.f32 %v6495_v22, 0.0 }
 0x832   :  { %v6518_v63 = vpack.c.bf16 %v6510_v46, %v6509_v32 }
 0x833   :  { %v6373_v4 = vpop.f32.mrf.mxu3 }
 0x834   :  { %v6391_v9 = vadd.f32 %v6373_v4, %v6247_v21 }
 0x836   :  { %v6496_v20 = vadd.f32 %v11584_v3, %v6391_v9  ;;  %v8883_v3 = vld [vmem:[%s11671_s7 + $0x10] sm:$0xff] }
 0x838   :  { %v6511_v23 = vmax.f32 %v6496_v20, 0.0 }
 0x83a   :  { %v6519_v52 = vpack.c.bf16 %v6511_v23, %v6511_v23  ;;  %v8598_v23 = vld [vmem:[%s11672_s9] sm:$0xf] }
 0x83b   :  { %v6375_v44 = vpop.f32.mrf.mxu3 }
 0x83c   :  { %v6645_v7 = vsel %vm827_vm3, %v6519_v52, 0  ;;  %vm6725_vm3 = vcmask 1041408   ;;  %v8886_v52 = vld [vmem:[%s11672_s9] sm:$0x10] }
 0x83d   :  { %6647 = vmatpush.bf16.msrb.mxu0 %v6645_v7  ;;  %v8599_v44 = vor.u32 %v8886_v52, %v8598_v23  ;;  %v6709_v7 = vpop.permute.xlu0 %6708 }
 0x841   :  { %6648 = vmatpush.bf16.msrb.mxu0 %v6518_v63 }
 0x845   :  { %6649 = vmatpush.bf16.msrb.mxu0 %v6517_v47 }
 0x849   :  { %6650 = vmatpush.bf16.msrb.mxu0 %v6516_v8 }
 0x84d   :  { %6651 = vmatpush.bf16.msrb.mxu0 %v6515_v61 }
 0x851   :  { %6652 = vmatpush.bf16.msrb.mxu0 %v6514_v60  ;;  %v6585_v60 = vpop.permute.xlu2 %6584 }
 0x855   :  { %6653 = vmatpush.bf16.msrb.mxu0 %v11610_v37  ;;  %v6530_v37 = vld [vmem:[%s11671_s7 + $0x28] sm:$0x3] }
 0x856   :  { %v6618_v30 = vunpack.c.l.b16 %v6530_v37 }
 0x858   :  { %v6624_v50 = vpack.c.b16 %v6618_v30, %v6618_v30 }
 0x859   :  { %6654 = vmatpush.bf16.msrb.mxu0 %v11605_v59  ;;  %v8885_v59 = vld [vmem:[%s11671_s7 + $0x20] sm:$0xff]  ;;  %v6580_v28 = vpop.permute.xlu2 %6579 }
 0x85c   :  { %8590 = vmatmul.msk.bf16.vlgmr.msrb.gmra.mxu0 %vm1106_vm8, %v8881_v0 }
 0x861   :  { %v6555_v42 = vpop.permute.xlu2 %6554 }
 0x869   :  { %v6550_v33 = vpop.permute.xlu2 %6549 }
 0x86c   :  { %8591 = vmatmul.msk.bf16.gmra.mxu0 %vm1106_vm8, %v8882_v27 }
 0x87c   :  { %8592 = vmatmul.msk.bf16.gmra.mxu0 %vm1106_vm8, %v8883_v3  ;;  %v6714_v3 = vpop.permute.xlu1 %6713 }
 0x88c   :  { %8593 = vmatmul.msk.bf16.gmra.mxu0 %vm1106_vm8, %v8884_v34 }
 0x89c   :  { %8594 = vmatmul.msk.bf16.gmra.mxu0 %vm1106_vm8, %v8885_v59 }
 0x8ac   :  { %8595 = vmatmul.msk.bf16.gmra.mxu0 %vm1106_vm8, %v6624_v50  ;;  %vm6745_vm8 = vcmask 9216  }
 0x8d9   :  { %v6656_v39 = vpop.f32.mrf.mxu0 }
 0x8da   :  { %v6657_v25 = vadd.f32 %v6656_v39, %v6545_v43 }
 0x8dc   :  { %v6685_v61 = vmax.f32 %v6657_v25, 0.0 }
 0x8e1   :  { %v6658_v19 = vpop.f32.mrf.mxu0 }
 0x8e2   :  { %v6659_v12 = vadd.f32 %v6658_v19, %v6550_v33 }
 0x8e4   :  { %v6686_v6 = vmax.f32 %v6659_v12, 0.0 }
 0x8e6   :  { %v6696_v17 = vpack.c.bf16 %v6686_v6, %v6685_v61 }
 0x8e9   :  { %v6661_v14 = vpop.f32.mrf.mxu0 }
 0x8ea   :  { %v6662_v26 = vadd.f32 %v6661_v14, %v6555_v42 }
 0x8ec   :  { %v6687_v36 = vmax.f32 %v6662_v26, 0.0 }
 0x8f1   :  { %v6663_v51 = vpop.f32.mrf.mxu0 }
 0x8f2   :  { %v6664_v62 = vadd.f32 %v6663_v51, %v6560_v11 }
 0x8f4   :  { %v6688_v41 = vmax.f32 %v6664_v62, 0.0 }
 0x8f6   :  { %v6697_v8 = vpack.c.bf16 %v6688_v41, %v6687_v36 }
 0x8f9   :  { %v6666_v55 = vpop.f32.mrf.mxu0 }
 0x8fa   :  { %v6667_v46 = vadd.f32 %v6666_v55, %v6565_v45 }
 0x8fc   :  { %v6689_v9 = vmax.f32 %v6667_v46, 0.0 }
 0x901   :  { %v6668_v48 = vpop.f32.mrf.mxu0 }
 0x902   :  { %v6669_v18 = vadd.f32 %v6668_v48, %v6570_v13 }
 0x904   :  { %v6690_v63 = vmax.f32 %v6669_v18, 0.0 }
 0x906   :  { %v6698_v20 = vpack.c.bf16 %v6690_v63, %v6689_v9 }
 0x909   :  { %v6671_v57 = vpop.f32.mrf.mxu0 }
 0x90a   :  { %v6672_v24 = vadd.f32 %v6671_v57, %v6575_v35 }
 0x90c   :  { %v6691_v21 = vmax.f32 %v6672_v24, 0.0 }
 0x911   :  { %v6673_v2 = vpop.f32.mrf.mxu0 }
 0x912   :  { %v6674_v54 = vadd.f32 %v6673_v2, %v6580_v28 }
 0x914   :  { %v6692_v22 = vmax.f32 %v6674_v54, 0.0 }
 0x916   :  { %v6699_v4 = vpack.c.bf16 %v6692_v22, %v6691_v21 }
 0x919   :  { %v6676_v15 = vpop.f32.mrf.mxu0 }
 0x91a   :  { %v6677_v10 = vadd.f32 %v6676_v15, %v6585_v60 }
 0x91c   :  { %v6693_v56 = vmax.f32 %v6677_v10, 0.0 }
 0x921   :  { %v6678_v31 = vpop.f32.mrf.mxu0 }
 0x922   :  { %v6679_v58 = vadd.f32 %v6678_v31, %v6590_v1 }
 0x924   :  { %v6694_v5 = vmax.f32 %v6679_v58, 0.0 }
 0x926   :  { %v6700_v32 = vpack.c.bf16 %v6694_v5, %v6693_v56 }
 0x929   :  { %v6681_v40 = vpop.f32.mrf.mxu0 }
 0x92a   :  { %v6682_v38 = vadd.f32 %v6681_v40, %v6595_v29 }
 0x92c   :  { %v6695_v49 = vmax.f32 %v6682_v38, 0.0 }
 0x92e   :  { %v6701_v47 = vpack.c.bf16 %v6695_v49, %v6695_v49 }
 0x930   :  { %v6727_v16 = vsel %vm6725_vm3, %v6701_v47, 0 }
 0x931   :  { %v6683_v53 = vpop.f32.mrf.mxu0  ;;  %6731 = vmatpush.bf16.msra.mxu1 %v6727_v16 }
 0x935   :  { %6732 = vmatpush.bf16.msra.mxu1 %v6700_v32 }
 0x939   :  { %6733 = vmatpush.bf16.msra.mxu1 %v6699_v4 }
 0x93d   :  { %6734 = vmatpush.bf16.msra.mxu1 %v6698_v20 }
 0x941   :  { %6735 = vmatpush.bf16.msra.mxu1 %v6697_v8 }
 0x945   :  { %6736 = vmatpush.bf16.msra.mxu1 %v6696_v17 }
 0x948   :  { %8600 = vmatmul.msk.bf16.vlgmr.msra.gmra.mxu1 %vm6721_vm4, %v8599_v44 }
 0x9c5   :  { %v6738_v0 = vpop.f32.mrf.mxu1 }
 0x9c6   :  { %v6739_v27 = vadd.f32 %v6738_v0, %v6709_v7 }
 0x9c8   :  { %6744 = vst.msk [vmem:[%s11673_s11] sm:$0xff] %vm6743_vm6, %v6739_v27 }
 0x9cd   :  { %v6740_v34 = vpop.f32.mrf.mxu1 }
 0x9ce   :  { %v6741_v59 = vadd.f32 %v6740_v34, %v6714_v3 }
 0x9d0   :  { %6746 = vst.msk [vmem:[%s11673_s11 + $0x8] sm:$0x3] %vm6745_vm8, %v6741_v59 }

</bundles_post_ra>
